<compile_context>
chip_gen: v6e
topology: v6e:2x2x1
jax: 0.10.0
libtpu: 0.0.40
codegen_flags: <defaults>
</compile_context>

<pallas_src>
import numpy as np

import jax
import jax.numpy as jnp
from jax import lax
from jax.experimental import pallas as pl
from jax.experimental.pallas import tpu as pltpu


# ------------------------------- Pallas kernel ------------------------------ #

def _lenet5_kernel(x_ref, m1_ref, b1_ref, m2_ref, b2_ref,
                   w1_ref, c1_ref, w2_ref, c2_ref, w3_ref, c3_ref, o_ref):
    """Whole LeNet-5 forward for one batch tile.

    x_ref : [TB, 32, 128]  image; row 8*r + m holds original H row 4*m + r;
            lane w*3 + c holds pixel (w, channel c) (lanes 96..127 are zero pad).
    m1    : [640, 256] conv1 strip matrix; rows kh*128 + (w*3+c),
            cols j*128 + (pw*6 + co)        (j = 2x2-pool W offset).
    m2    : [640, 256] conv2 strip matrix; rows kh*128 + (pw*6+c),
            cols j2*128 + (pw2*16 + c2).
    w1/c1, w2/c2, w3/c3 : lane-padded FC weights / biases.
    o_ref : [TB, 1, 128] logits (lanes 10..127 are exactly zero).
    """
    m1 = m1_ref[...]
    m2 = m2_ref[...]
    b1 = b1_ref[...]
    b2 = b2_ref[...]
    w1 = w1_ref[...]
    w2 = w2_ref[...]
    w3 = w3_ref[...]
    c1 = c1_ref[...]
    c2 = c2_ref[...]
    c3 = c3_ref[...]

    tb = o_ref.shape[0]
    outs = []
    for t in range(tb):                                   # unrolled per-sample work
        x = x_ref[t]                                      # [32, 128]
        xb = [x[8 * r:8 * r + 8, :] for r in range(4)]    # H rows grouped by (row % 4)

        # ---- conv1 (5x5, VALID) + bias + 2x2/2 max pool, as 4 strip GEMMs -------
        # strip r computes conv output rows 4*m + r (m = 0..6) for BOTH pool W offsets.
        def strip1(r):
            parts = []
            for kh in range(5):
                s = r + kh                                # image row 4*m + s
                parts.append(xb[s % 4][s // 4: s // 4 + 7, :])
            return jnp.concatenate(parts, axis=-1)        # [7, 640]

        y = [jnp.dot(strip1(r), m1, preferred_element_type=jnp.float32)
             for r in range(4)]                           # [7, 256] each
        # W pooling = max of the two 128-lane halves; H pooling = max over row parity.
        pe1 = jnp.maximum(jnp.maximum(y[0][:, 0:128], y[0][:, 128:256]),
                          jnp.maximum(y[1][:, 0:128], y[1][:, 128:256])) + b1  # rows 0,2,..,12
        po1 = jnp.maximum(jnp.maximum(y[2][:, 0:128], y[2][:, 128:256]),
                          jnp.maximum(y[3][:, 0:128], y[3][:, 128:256])) + b1  # rows 1,3,..,13

        # ---- conv2 (5x5) + bias + 2x2/2 max pool, as 2 strip GEMMs --------------
        # strip i2 computes conv2 output rows 2*ph2 + i2 (ph2 = 0..4).
        def strip2(i2):
            parts = []
            for kh in range(5):
                s = i2 + kh                               # pooled1 row 2*ph2 + s
                blk = pe1 if s % 2 == 0 else po1
                parts.append(blk[s // 2: s // 2 + 5, :])
            return jnp.concatenate(parts, axis=-1)        # [5, 640]

        z0 = jnp.dot(strip2(0), m2, preferred_element_type=jnp.float32)        # [5, 256]
        z1 = jnp.dot(strip2(1), m2, preferred_element_type=jnp.float32)
        pooled2 = jnp.maximum(jnp.maximum(z0[:, 0:128], z0[:, 128:256]),
                              jnp.maximum(z1[:, 0:128], z1[:, 128:256])) + b2  # [5, 128]

        # ---- fc1 + ReLU -> fc2 + ReLU -> fc3 ------------------------------------
        # The PyTorch NCHW flatten permutation is folded into w1's row order, so this
        # lane-aligned concat of the 5 pooled rows IS the flatten.
        flat = jnp.concatenate([pooled2[p:p + 1, :] for p in range(5)],
                               axis=-1)                   # [1, 640]
        h = jnp.maximum(jnp.dot(flat, w1, preferred_element_type=jnp.float32) + c1, 0.0)
        h = jnp.maximum(jnp.dot(h, w2, preferred_element_type=jnp.float32) + c2, 0.0)
        outs.append(jnp.dot(h, w3, preferred_element_type=jnp.float32) + c3)   # [1, 128]

    o_ref[...] = jnp.stack(outs, axis=0)                  # [TB, 1, 128] lane-dense store


# ------------------------------- XLA glue ----------------------------------- #

def _prep_input(x):
    """[B,3,32,32] NCHW -> [B,32,128]: lanes = w*3+c (zero-padded to 128), and H rows
    reordered so prep row 8*r + m is original row 4*m + r (pure data movement,
    ~16 KB/sample, one XLA fusion)."""
    B = x.shape[0]
    x = jnp.transpose(x, (0, 2, 3, 1)).reshape(B, 32, 96)
    x = jnp.pad(x, ((0, 0), (0, 0), (0, 32)))
    return jnp.concatenate([x[:, r::4, :] for r in range(4)], axis=1)


def _pick_batch_tile(B):
    """Samples per grid step: amortize per-step overhead, but keep >=2 grid steps so
    both v7x TensorCores get work (v5e/v6e are indifferent)."""
    for tb in (8, 4, 2, 1):
        if B % tb == 0 and B // tb >= 2:
            return tb
    return 1


def lenet5_forward(params, x):
    """x: [b, 3, 32, 32] float32 (NCHW, PyTorch layout) -> logits [b, 10]."""
    B = x.shape[0]
    assert x.shape[1:] == (3, 32, 32), x.shape
    xp = _prep_input(x)
    tb = _pick_batch_tile(B)

    per_sample_flops = 2 * (4 * 7 * 640 * 256 + 2 * 5 * 640 * 256
                            + 640 * 128 + 128 * 128 + 128 * 128)
    weight_bytes = 4 * (2 * 640 * 256 + 640 * 128 + 2 * 128 * 128 + 5 * 128)
    cost = pl.CostEstimate(flops=B * per_sample_flops, transcendentals=0,
                           bytes_accessed=B * (32 * 128 + 128) * 4 + weight_bytes)

    const2 = lambda i: (0, 0)
    out = pl.pallas_call(
        _lenet5_kernel,
        out_shape=jax.ShapeDtypeStruct((B, 1, 128), jnp.float32),
        grid=(B // tb,),
        in_specs=[
            pl.BlockSpec((tb, 32, 128), lambda i: (i, 0, 0)),   # image block
            pl.BlockSpec((640, 256), const2),                   # conv1 strip matrix
            pl.BlockSpec((1, 128), const2),                     # conv1 bias (lane layout)
            pl.BlockSpec((640, 256), const2),                   # conv2 strip matrix
            pl.BlockSpec((1, 128), const2),                     # conv2 bias (lane layout)
            pl.BlockSpec((640, 128), const2),                   # fc1 weight
            pl.BlockSpec((1, 128), const2),                     # fc1 bias
            pl.BlockSpec((128, 128), const2),                   # fc2 weight
            pl.BlockSpec((1, 128), const2),                     # fc2 bias
            pl.BlockSpec((128, 128), const2),                   # fc3 weight
            pl.BlockSpec((1, 128), const2),                     # fc3 bias
        ],
        out_specs=pl.BlockSpec((tb, 1, 128), lambda i: (i, 0, 0)),
        compiler_params=pltpu.CompilerParams(dimension_semantics=("parallel",)),
        cost_estimate=cost,
    )(xp, params["m1"], params["b1"], params["m2"], params["b2"],
      params["w1"], params["c1"], params["w2"], params["c2"],
      params["w3"], params["c3"])
    return out[:, 0, :10]


# ------------------------------ model / params ------------------------------ #

def init_params(key):
    """PyTorch-layout parameters with uniform(-1/sqrt(fan_in), 1/sqrt(fan_in)) init."""
    def uni(k, shape, fan_in):
        bound = 1.0 / float(fan_in) ** 0.5
        return jax.random.uniform(k, shape, jnp.float32, -bound, bound)

    ks = jax.random.split(key, 10)
    return {
        "conv1_w": uni(ks[0], (6, 3, 5, 5), 3 * 25),
        "conv1_b": uni(ks[1], (6,), 3 * 25),
        "conv2_w": uni(ks[2], (16, 6, 5, 5), 6 * 25),
        "conv2_b": uni(ks[3], (16,), 6 * 25),
        "fc1_w": uni(ks[4], (120, 400), 400),
        "fc1_b": uni(ks[5], (120,), 400),
        "fc2_w": uni(ks[6], (84, 120), 120),
        "fc2_b": uni(ks[7], (84,), 120),
        "fc3_w": uni(ks[8], (10, 84), 84),
        "fc3_b": uni(ks[9], (10,), 84),
    }


def prepare_params(p):
    """One-time (offline, numpy) weight relayout into the kernel's GEMM layouts.

    conv strip matrices fold the kernel taps, the 2x2-pool W offset and all lane
    zero-padding; the FC matrices fold the PyTorch NCHW flatten permutation and are
    zero-padded to 128 lanes so the padded positions stay exactly zero end-to-end.
    """
    w1 = np.asarray(p["conv1_w"], np.float32)   # [6, 3, 5, 5]
    b1 = np.asarray(p["conv1_b"], np.float32)
    w2 = np.asarray(p["conv2_w"], np.float32)   # [16, 6, 5, 5]
    b2 = np.asarray(p["conv2_b"], np.float32)
    f1w = np.asarray(p["fc1_w"], np.float32)    # [120, 400]
    f1b = np.asarray(p["fc1_b"], np.float32)
    f2w = np.asarray(p["fc2_w"], np.float32)    # [84, 120]
    f2b = np.asarray(p["fc2_b"], np.float32)
    f3w = np.asarray(p["fc3_w"], np.float32)    # [10, 84]
    f3b = np.asarray(p["fc3_b"], np.float32)

    # conv1: rows kh*128 + (w*3 + ci), cols j*128 + (pw*6 + co); w = 2*pw + j + kw.
    m1 = np.zeros((5, 128, 2, 128), np.float32)
    for kh in range(5):
        for kw in range(5):
            for j in range(2):
                for pw in range(14):
                    w_pos = 2 * pw + j + kw
                    m1[kh, w_pos * 3:w_pos * 3 + 3, j, pw * 6:pw * 6 + 6] = w1[:, :, kh, kw].T
    b1l = np.zeros((1, 128), np.float32)
    b1l[0, :84] = np.tile(b1, 14)

    # conv2: rows kh*128 + (pw*6 + c), cols j2*128 + (pw2*16 + c2); pw = 2*pw2 + j2 + kw.
    m2 = np.zeros((5, 128, 2, 128), np.float32)
    for kh in range(5):
        for kw in range(5):
            for j in range(2):
                for pw2 in range(5):
                    pw = 2 * pw2 + j + kw
                    m2[kh, pw * 6:pw * 6 + 6, j, pw2 * 16:pw2 * 16 + 16] = w2[:, :, kh, kw].T
    b2l = np.zeros((1, 128), np.float32)
    b2l[0, :80] = np.tile(b2, 5)

    # fc1: row ph2*128 + pw2*16 + c2  <->  PyTorch flat index c2*25 + ph2*5 + pw2.
    w1fc = np.zeros((640, 128), np.float32)
    for ph2 in range(5):
        for pw2 in range(5):
            for c2 in range(16):
                w1fc[ph2 * 128 + pw2 * 16 + c2, :120] = f1w[:, c2 * 25 + ph2 * 5 + pw2]
    b1fc = np.zeros((1, 128), np.float32)
    b1fc[0, :120] = f1b

    w2fc = np.zeros((128, 128), np.float32)
    w2fc[:120, :84] = f2w.T
    b2fc = np.zeros((1, 128), np.float32)
    b2fc[0, :84] = f2b

    w3fc = np.zeros((128, 128), np.float32)
    w3fc[:84, :10] = f3w.T
    b3fc = np.zeros((1, 128), np.float32)
    b3fc[0, :10] = f3b

    return {
        "m1": jnp.asarray(m1.reshape(640, 256)), "b1": jnp.asarray(b1l),
        "m2": jnp.asarray(m2.reshape(640, 256)), "b2": jnp.asarray(b2l),
        "w1": jnp.asarray(w1fc), "c1": jnp.asarray(b1fc),
        "w2": jnp.asarray(w2fc), "c2": jnp.asarray(b2fc),
        "w3": jnp.asarray(w3fc), "c3": jnp.asarray(b3fc),
    }


# ------------------------------ reference ----------------------------------- #

def lenet5_reference(p, x):
    """Pure-JAX/XLA reference identical to the PyTorch module (correctness check)."""
    dn = ("NCHW", "OIHW", "NCHW")
    hp = lax.Precision.HIGHEST
    h = lax.conv_general_dilated(x, p["conv1_w"], (1, 1), "VALID",
                                 dimension_numbers=dn, precision=hp)
    h = h + p["conv1_b"][None, :, None, None]
    h = lax.reduce_window(h, -jnp.inf, lax.max, (1, 1, 2, 2), (1, 1, 2, 2), "VALID")
    h = lax.conv_general_dilated(h, p["conv2_w"], (1, 1), "VALID",
                                 dimension_numbers=dn, precision=hp)
    h = h + p["conv2_b"][None, :, None, None]
    h = lax.reduce_window(h, -jnp.inf, lax.max, (1, 1, 2, 2), (1, 1, 2, 2), "VALID")
    flat = h.reshape(x.shape[0], -1)
    h = jnp.maximum(jnp.dot(flat, p["fc1_w"].T, precision=hp) + p["fc1_b"], 0.0)
    h = jnp.maximum(jnp.dot(h, p["fc2_w"].T, precision=hp) + p["fc2_b"], 0.0)
    return jnp.dot(h, p["fc3_w"].T, precision=hp) + p["fc3_b"]


if __name__ == "__main__":
    key = jax.random.PRNGKey(0)
    pkey, xkey = jax.random.split(key)
    raw_params = init_params(pkey)
    params = prepare_params(raw_params)          # one-time layout prep (off the hot path)
    x = jax.random.normal(xkey, (2, 3, 32, 32), dtype=jnp.float32)

    logits = jax.jit(lenet5_forward)(params, x)
    logits = jax.block_until_ready(logits)

    assert logits.shape == (2, 10), logits.shape
    assert logits.dtype == jnp.float32

    ref = lenet5_reference(raw_params, x)
    err = float(jnp.max(jnp.abs(logits - ref)))
    # All-f32 path: tolerance tightened 50x vs. the previous version (was 5e-2).
    assert jnp.allclose(logits, ref, atol=1e-3, rtol=1e-3), err
    print("KERNEL_OK")
</pallas_src>

<mosaic_0001>
module attributes {stable_mosaic.version = 11 : i64} {
  func.func @_lenet5_kernel(%arg0: i32, %arg1: memref<1x32x128xf32, #tpu.memory_space<vmem>>, %arg2: memref<640x256xf32, #tpu.memory_space<vmem>>, %arg3: memref<1x128xf32, #tpu.memory_space<vmem>>, %arg4: memref<640x256xf32, #tpu.memory_space<vmem>>, %arg5: memref<1x128xf32, #tpu.memory_space<vmem>>, %arg6: memref<640x128xf32, #tpu.memory_space<vmem>>, %arg7: memref<1x128xf32, #tpu.memory_space<vmem>>, %arg8: memref<128x128xf32, #tpu.memory_space<vmem>>, %arg9: memref<1x128xf32, #tpu.memory_space<vmem>>, %arg10: memref<128x128xf32, #tpu.memory_space<vmem>>, %arg11: memref<1x128xf32, #tpu.memory_space<vmem>>, %arg12: memref<1x1x128xf32, #tpu.memory_space<vmem>>) attributes {dimension_semantics = [#tpu.dimension_semantics<parallel>], iteration_bounds = array<i64: 2>, scalar_prefetch = 0 : i64, scratch_operands = 0 : i64, tpu.core_type = #tpu.core_type<tc>, window_params = [{transform_indices = @transform_0, window_bounds = array<i64: 1, 32, 128>}, {pipeline_mode = #tpu.pipeline_mode<synchronous>, transform_indices = @transform_1, window_bounds = array<i64: 640, 256>}, {pipeline_mode = #tpu.pipeline_mode<synchronous>, transform_indices = @transform_2, window_bounds = array<i64: 1, 128>}, {pipeline_mode = #tpu.pipeline_mode<synchronous>, transform_indices = @transform_3, window_bounds = array<i64: 640, 256>}, {pipeline_mode = #tpu.pipeline_mode<synchronous>, transform_indices = @transform_4, window_bounds = array<i64: 1, 128>}, {pipeline_mode = #tpu.pipeline_mode<synchronous>, transform_indices = @transform_5, window_bounds = array<i64: 640, 128>}, {pipeline_mode = #tpu.pipeline_mode<synchronous>, transform_indices = @transform_6, window_bounds = array<i64: 1, 128>}, {pipeline_mode = #tpu.pipeline_mode<synchronous>, transform_indices = @transform_7, window_bounds = array<i64: 128, 128>}, {pipeline_mode = #tpu.pipeline_mode<synchronous>, transform_indices = @transform_8, window_bounds = array<i64: 1, 128>}, {pipeline_mode = #tpu.pipeline_mode<synchronous>, transform_indices = @transform_9, window_bounds = array<i64: 128, 128>}, {pipeline_mode = #tpu.pipeline_mode<synchronous>, transform_indices = @transform_10, window_bounds = array<i64: 1, 128>}, {transform_indices = @transform_11, window_bounds = array<i64: 1, 1, 128>}]} {
    %c0 = arith.constant 0 : index
    %c0_0 = arith.constant 0 : index
    %0 = vector.load %arg2[%c0, %c0_0] : memref<640x256xf32, #tpu.memory_space<vmem>>, vector<640x256xf32>
    %c0_1 = arith.constant 0 : index
    %c0_2 = arith.constant 0 : index
    %1 = vector.load %arg4[%c0_1, %c0_2] : memref<640x256xf32, #tpu.memory_space<vmem>>, vector<640x256xf32>
    %c0_3 = arith.constant 0 : index
    %c0_4 = arith.constant 0 : index
    %2 = vector.load %arg3[%c0_3, %c0_4] : memref<1x128xf32, #tpu.memory_space<vmem>>, vector<1x128xf32>
    %c0_5 = arith.constant 0 : index
    %c0_6 = arith.constant 0 : index
    %3 = vector.load %arg5[%c0_5, %c0_6] : memref<1x128xf32, #tpu.memory_space<vmem>>, vector<1x128xf32>
    %c0_7 = arith.constant 0 : index
    %c0_8 = arith.constant 0 : index
    %4 = vector.load %arg6[%c0_7, %c0_8] : memref<640x128xf32, #tpu.memory_space<vmem>>, vector<640x128xf32>
    %c0_9 = arith.constant 0 : index
    %c0_10 = arith.constant 0 : index
    %5 = vector.load %arg8[%c0_9, %c0_10] : memref<128x128xf32, #tpu.memory_space<vmem>>, vector<128x128xf32>
    %c0_11 = arith.constant 0 : index
    %c0_12 = arith.constant 0 : index
    %6 = vector.load %arg10[%c0_11, %c0_12] : memref<128x128xf32, #tpu.memory_space<vmem>>, vector<128x128xf32>
    %c0_13 = arith.constant 0 : index
    %c0_14 = arith.constant 0 : index
    %7 = vector.load %arg7[%c0_13, %c0_14] : memref<1x128xf32, #tpu.memory_space<vmem>>, vector<1x128xf32>
    %c0_15 = arith.constant 0 : index
    %c0_16 = arith.constant 0 : index
    %8 = vector.load %arg9[%c0_15, %c0_16] : memref<1x128xf32, #tpu.memory_space<vmem>>, vector<1x128xf32>
    %c0_17 = arith.constant 0 : index
    %c0_18 = arith.constant 0 : index
    %9 = vector.load %arg11[%c0_17, %c0_18] : memref<1x128xf32, #tpu.memory_space<vmem>>, vector<1x128xf32>
    %c0_19 = arith.constant 0 : index
    %c0_20 = arith.constant 0 : index
    %c0_21 = arith.constant 0 : index
    %10 = vector.load %arg1[%c0_19, %c0_20, %c0_21] : memref<1x32x128xf32, #tpu.memory_space<vmem>>, vector<1x32x128xf32>
    %11 = vector.shape_cast %10 : vector<1x32x128xf32> to vector<32x128xf32>
    %12 = vector.extract_strided_slice %11 {offsets = [0, 0], sizes = [8, 128], strides = [1, 1]} : vector<32x128xf32> to vector<8x128xf32>
    %13 = vector.extract_strided_slice %11 {offsets = [8, 0], sizes = [8, 128], strides = [1, 1]} : vector<32x128xf32> to vector<8x128xf32>
    %14 = vector.extract_strided_slice %11 {offsets = [16, 0], sizes = [8, 128], strides = [1, 1]} : vector<32x128xf32> to vector<8x128xf32>
    %15 = vector.extract_strided_slice %11 {offsets = [24, 0], sizes = [8, 128], strides = [1, 1]} : vector<32x128xf32> to vector<8x128xf32>
    %16 = vector.extract_strided_slice %12 {offsets = [0, 0], sizes = [7, 128], strides = [1, 1]} : vector<8x128xf32> to vector<7x128xf32>
    %17 = vector.extract_strided_slice %13 {offsets = [0, 0], sizes = [7, 128], strides = [1, 1]} : vector<8x128xf32> to vector<7x128xf32>
    %18 = vector.extract_strided_slice %14 {offsets = [0, 0], sizes = [7, 128], strides = [1, 1]} : vector<8x128xf32> to vector<7x128xf32>
    %19 = vector.extract_strided_slice %15 {offsets = [0, 0], sizes = [7, 128], strides = [1, 1]} : vector<8x128xf32> to vector<7x128xf32>
    %20 = vector.extract_strided_slice %12 {offsets = [1, 0], sizes = [7, 128], strides = [1, 1]} : vector<8x128xf32> to vector<7x128xf32>
    %21 = tpu.concatenate %16, %17, %18, %19, %20 in 1 : vector<7x128xf32>, vector<7x128xf32>, vector<7x128xf32>, vector<7x128xf32>, vector<7x128xf32> -> vector<7x640xf32>
    %cst = arith.constant dense<0.000000e+00> : vector<7x256xf32>
    %22 = tpu.matmul %21, %0, %cst {dimension_numbers = #tpu.dot_dimension_numbers<[1], [0], [0], [1], [0, 0, 1, 1], [], []>} : vector<7x640xf32>, vector<640x256xf32>, vector<7x256xf32> -> vector<7x256xf32>
    %23 = vector.extract_strided_slice %13 {offsets = [0, 0], sizes = [7, 128], strides = [1, 1]} : vector<8x128xf32> to vector<7x128xf32>
    %24 = vector.extract_strided_slice %14 {offsets = [0, 0], sizes = [7, 128], strides = [1, 1]} : vector<8x128xf32> to vector<7x128xf32>
    %25 = vector.extract_strided_slice %15 {offsets = [0, 0], sizes = [7, 128], strides = [1, 1]} : vector<8x128xf32> to vector<7x128xf32>
    %26 = vector.extract_strided_slice %12 {offsets = [1, 0], sizes = [7, 128], strides = [1, 1]} : vector<8x128xf32> to vector<7x128xf32>
    %27 = vector.extract_strided_slice %13 {offsets = [1, 0], sizes = [7, 128], strides = [1, 1]} : vector<8x128xf32> to vector<7x128xf32>
    %28 = tpu.concatenate %23, %24, %25, %26, %27 in 1 : vector<7x128xf32>, vector<7x128xf32>, vector<7x128xf32>, vector<7x128xf32>, vector<7x128xf32> -> vector<7x640xf32>
    %cst_22 = arith.constant dense<0.000000e+00> : vector<7x256xf32>
    %29 = tpu.matmul %28, %0, %cst_22 {dimension_numbers = #tpu.dot_dimension_numbers<[1], [0], [0], [1], [0, 0, 1, 1], [], []>} : vector<7x640xf32>, vector<640x256xf32>, vector<7x256xf32> -> vector<7x256xf32>
    %30 = vector.extract_strided_slice %14 {offsets = [0, 0], sizes = [7, 128], strides = [1, 1]} : vector<8x128xf32> to vector<7x128xf32>
    %31 = vector.extract_strided_slice %15 {offsets = [0, 0], sizes = [7, 128], strides = [1, 1]} : vector<8x128xf32> to vector<7x128xf32>
    %32 = vector.extract_strided_slice %12 {offsets = [1, 0], sizes = [7, 128], strides = [1, 1]} : vector<8x128xf32> to vector<7x128xf32>
    %33 = vector.extract_strided_slice %13 {offsets = [1, 0], sizes = [7, 128], strides = [1, 1]} : vector<8x128xf32> to vector<7x128xf32>
    %34 = vector.extract_strided_slice %14 {offsets = [1, 0], sizes = [7, 128], strides = [1, 1]} : vector<8x128xf32> to vector<7x128xf32>
    %35 = tpu.concatenate %30, %31, %32, %33, %34 in 1 : vector<7x128xf32>, vector<7x128xf32>, vector<7x128xf32>, vector<7x128xf32>, vector<7x128xf32> -> vector<7x640xf32>
    %cst_23 = arith.constant dense<0.000000e+00> : vector<7x256xf32>
    %36 = tpu.matmul %35, %0, %cst_23 {dimension_numbers = #tpu.dot_dimension_numbers<[1], [0], [0], [1], [0, 0, 1, 1], [], []>} : vector<7x640xf32>, vector<640x256xf32>, vector<7x256xf32> -> vector<7x256xf32>
    %37 = vector.extract_strided_slice %15 {offsets = [0, 0], sizes = [7, 128], strides = [1, 1]} : vector<8x128xf32> to vector<7x128xf32>
    %38 = vector.extract_strided_slice %12 {offsets = [1, 0], sizes = [7, 128], strides = [1, 1]} : vector<8x128xf32> to vector<7x128xf32>
    %39 = vector.extract_strided_slice %13 {offsets = [1, 0], sizes = [7, 128], strides = [1, 1]} : vector<8x128xf32> to vector<7x128xf32>
    %40 = vector.extract_strided_slice %14 {offsets = [1, 0], sizes = [7, 128], strides = [1, 1]} : vector<8x128xf32> to vector<7x128xf32>
    %41 = vector.extract_strided_slice %15 {offsets = [1, 0], sizes = [7, 128], strides = [1, 1]} : vector<8x128xf32> to vector<7x128xf32>
    %42 = tpu.concatenate %37, %38, %39, %40, %41 in 1 : vector<7x128xf32>, vector<7x128xf32>, vector<7x128xf32>, vector<7x128xf32>, vector<7x128xf32> -> vector<7x640xf32>
    %cst_24 = arith.constant dense<0.000000e+00> : vector<7x256xf32>
    %43 = tpu.matmul %42, %0, %cst_24 {dimension_numbers = #tpu.dot_dimension_numbers<[1], [0], [0], [1], [0, 0, 1, 1], [], []>} : vector<7x640xf32>, vector<640x256xf32>, vector<7x256xf32> -> vector<7x256xf32>
    %44 = vector.extract_strided_slice %22 {offsets = [0, 0], sizes = [7, 128], strides = [1, 1]} : vector<7x256xf32> to vector<7x128xf32>
    %45 = vector.extract_strided_slice %22 {offsets = [0, 128], sizes = [7, 128], strides = [1, 1]} : vector<7x256xf32> to vector<7x128xf32>
    %46 = arith.maximumf %44, %45 : vector<7x128xf32>
    %47 = vector.extract_strided_slice %29 {offsets = [0, 0], sizes = [7, 128], strides = [1, 1]} : vector<7x256xf32> to vector<7x128xf32>
    %48 = vector.extract_strided_slice %29 {offsets = [0, 128], sizes = [7, 128], strides = [1, 1]} : vector<7x256xf32> to vector<7x128xf32>
    %49 = arith.maximumf %47, %48 : vector<7x128xf32>
    %50 = arith.maximumf %46, %49 : vector<7x128xf32>
    %51 = vector.broadcast %2 : vector<1x128xf32> to vector<7x128xf32>
    %52 = arith.addf %50, %51 : vector<7x128xf32>
    %53 = vector.extract_strided_slice %36 {offsets = [0, 0], sizes = [7, 128], strides = [1, 1]} : vector<7x256xf32> to vector<7x128xf32>
    %54 = vector.extract_strided_slice %36 {offsets = [0, 128], sizes = [7, 128], strides = [1, 1]} : vector<7x256xf32> to vector<7x128xf32>
    %55 = arith.maximumf %53, %54 : vector<7x128xf32>
    %56 = vector.extract_strided_slice %43 {offsets = [0, 0], sizes = [7, 128], strides = [1, 1]} : vector<7x256xf32> to vector<7x128xf32>
    %57 = vector.extract_strided_slice %43 {offsets = [0, 128], sizes = [7, 128], strides = [1, 1]} : vector<7x256xf32> to vector<7x128xf32>
    %58 = arith.maximumf %56, %57 : vector<7x128xf32>
    %59 = arith.maximumf %55, %58 : vector<7x128xf32>
    %60 = vector.broadcast %2 : vector<1x128xf32> to vector<7x128xf32>
    %61 = arith.addf %59, %60 : vector<7x128xf32>
    %62 = vector.extract_strided_slice %52 {offsets = [0, 0], sizes = [5, 128], strides = [1, 1]} : vector<7x128xf32> to vector<5x128xf32>
    %63 = vector.extract_strided_slice %61 {offsets = [0, 0], sizes = [5, 128], strides = [1, 1]} : vector<7x128xf32> to vector<5x128xf32>
    %64 = vector.extract_strided_slice %52 {offsets = [1, 0], sizes = [5, 128], strides = [1, 1]} : vector<7x128xf32> to vector<5x128xf32>
    %65 = vector.extract_strided_slice %61 {offsets = [1, 0], sizes = [5, 128], strides = [1, 1]} : vector<7x128xf32> to vector<5x128xf32>
    %66 = vector.extract_strided_slice %52 {offsets = [2, 0], sizes = [5, 128], strides = [1, 1]} : vector<7x128xf32> to vector<5x128xf32>
    %67 = tpu.concatenate %62, %63, %64, %65, %66 in 1 : vector<5x128xf32>, vector<5x128xf32>, vector<5x128xf32>, vector<5x128xf32>, vector<5x128xf32> -> vector<5x640xf32>
    %cst_25 = arith.constant dense<0.000000e+00> : vector<5x256xf32>
    %68 = tpu.matmul %67, %1, %cst_25 {dimension_numbers = #tpu.dot_dimension_numbers<[1], [0], [0], [1], [0, 0, 1, 1], [], []>} : vector<5x640xf32>, vector<640x256xf32>, vector<5x256xf32> -> vector<5x256xf32>
    %69 = vector.extract_strided_slice %61 {offsets = [0, 0], sizes = [5, 128], strides = [1, 1]} : vector<7x128xf32> to vector<5x128xf32>
    %70 = vector.extract_strided_slice %52 {offsets = [1, 0], sizes = [5, 128], strides = [1, 1]} : vector<7x128xf32> to vector<5x128xf32>
    %71 = vector.extract_strided_slice %61 {offsets = [1, 0], sizes = [5, 128], strides = [1, 1]} : vector<7x128xf32> to vector<5x128xf32>
    %72 = vector.extract_strided_slice %52 {offsets = [2, 0], sizes = [5, 128], strides = [1, 1]} : vector<7x128xf32> to vector<5x128xf32>
    %73 = vector.extract_strided_slice %61 {offsets = [2, 0], sizes = [5, 128], strides = [1, 1]} : vector<7x128xf32> to vector<5x128xf32>
    %74 = tpu.concatenate %69, %70, %71, %72, %73 in 1 : vector<5x128xf32>, vector<5x128xf32>, vector<5x128xf32>, vector<5x128xf32>, vector<5x128xf32> -> vector<5x640xf32>
    %cst_26 = arith.constant dense<0.000000e+00> : vector<5x256xf32>
    %75 = tpu.matmul %74, %1, %cst_26 {dimension_numbers = #tpu.dot_dimension_numbers<[1], [0], [0], [1], [0, 0, 1, 1], [], []>} : vector<5x640xf32>, vector<640x256xf32>, vector<5x256xf32> -> vector<5x256xf32>
    %76 = vector.extract_strided_slice %68 {offsets = [0, 0], sizes = [5, 128], strides = [1, 1]} : vector<5x256xf32> to vector<5x128xf32>
    %77 = vector.extract_strided_slice %68 {offsets = [0, 128], sizes = [5, 128], strides = [1, 1]} : vector<5x256xf32> to vector<5x128xf32>
    %78 = arith.maximumf %76, %77 : vector<5x128xf32>
    %79 = vector.extract_strided_slice %75 {offsets = [0, 0], sizes = [5, 128], strides = [1, 1]} : vector<5x256xf32> to vector<5x128xf32>
    %80 = vector.extract_strided_slice %75 {offsets = [0, 128], sizes = [5, 128], strides = [1, 1]} : vector<5x256xf32> to vector<5x128xf32>
    %81 = arith.maximumf %79, %80 : vector<5x128xf32>
    %82 = arith.maximumf %78, %81 : vector<5x128xf32>
    %83 = vector.broadcast %3 : vector<1x128xf32> to vector<5x128xf32>
    %84 = arith.addf %82, %83 : vector<5x128xf32>
    %85 = vector.extract_strided_slice %84 {offsets = [0, 0], sizes = [1, 128], strides = [1, 1]} : vector<5x128xf32> to vector<1x128xf32>
    %86 = vector.extract_strided_slice %84 {offsets = [1, 0], sizes = [1, 128], strides = [1, 1]} : vector<5x128xf32> to vector<1x128xf32>
    %87 = vector.extract_strided_slice %84 {offsets = [2, 0], sizes = [1, 128], strides = [1, 1]} : vector<5x128xf32> to vector<1x128xf32>
    %88 = vector.extract_strided_slice %84 {offsets = [3, 0], sizes = [1, 128], strides = [1, 1]} : vector<5x128xf32> to vector<1x128xf32>
    %89 = vector.extract_strided_slice %84 {offsets = [4, 0], sizes = [1, 128], strides = [1, 1]} : vector<5x128xf32> to vector<1x128xf32>
    %90 = tpu.concatenate %85, %86, %87, %88, %89 in 1 : vector<1x128xf32>, vector<1x128xf32>, vector<1x128xf32>, vector<1x128xf32>, vector<1x128xf32> -> vector<1x640xf32>
    %cst_27 = arith.constant dense<0.000000e+00> : vector<1x128xf32>
    %91 = tpu.matmul %90, %4, %cst_27 {dimension_numbers = #tpu.dot_dimension_numbers<[1], [0], [0], [1], [0, 0, 1, 1], [], []>} : vector<1x640xf32>, vector<640x128xf32>, vector<1x128xf32> -> vector<1x128xf32>
    %92 = arith.addf %91, %7 : vector<1x128xf32>
    %cst_28 = arith.constant 0.000000e+00 : f32
    %93 = vector.broadcast %cst_28 : f32 to vector<1x128xf32>
    %94 = arith.maximumf %92, %93 : vector<1x128xf32>
    %cst_29 = arith.constant dense<0.000000e+00> : vector<1x128xf32>
    %95 = tpu.matmul %94, %5, %cst_29 {dimension_numbers = #tpu.dot_dimension_numbers<[1], [0], [0], [1], [0, 0, 1, 1], [], []>} : vector<1x128xf32>, vector<128x128xf32>, vector<1x128xf32> -> vector<1x128xf32>
    %96 = arith.addf %95, %8 : vector<1x128xf32>
    %cst_30 = arith.constant 0.000000e+00 : f32
    %97 = vector.broadcast %cst_30 : f32 to vector<1x128xf32>
    %98 = arith.maximumf %96, %97 : vector<1x128xf32>
    %cst_31 = arith.constant dense<0.000000e+00> : vector<1x128xf32>
    %99 = tpu.matmul %98, %6, %cst_31 {dimension_numbers = #tpu.dot_dimension_numbers<[1], [0], [0], [1], [0, 0, 1, 1], [], []>} : vector<1x128xf32>, vector<128x128xf32>, vector<1x128xf32> -> vector<1x128xf32>
    %100 = arith.addf %99, %9 : vector<1x128xf32>
    %101 = vector.shape_cast %100 : vector<1x128xf32> to vector<1x1x128xf32>
    %c0_32 = arith.constant 0 : index
    %c0_33 = arith.constant 0 : index
    %c0_34 = arith.constant 0 : index
    %102 = vector.load %arg12[%c0_32, %c0_33, %c0_34] : memref<1x1x128xf32, #tpu.memory_space<vmem>>, vector<1x1x128xf32>
    tpu.vector_store %arg12[%c0_32, %c0_33, %c0_34], %101 {strides = array<i32>} : memref<1x1x128xf32, #tpu.memory_space<vmem>>, vector<1x1x128xf32>,
    return
  }
  func.func @transform_0(%arg0: i32) -> (i32, i32, i32) {
    %c0_i32 = arith.constant 0 : i32
    %c0_i32_0 = arith.constant 0 : i32
    %c0_i32_1 = arith.constant 0 : i32
    return %arg0, %c0_i32, %c0_i32_0 : i32, i32, i32
  }
  func.func @transform_1(%arg0: i32) -> (i32, i32) {
    %c0_i32 = arith.constant 0 : i32
    %c0_i32_0 = arith.constant 0 : i32
    %c0_i32_1 = arith.constant 0 : i32
    return %c0_i32, %c0_i32_0 : i32, i32
  }
  func.func @transform_2(%arg0: i32) -> (i32, i32) {
    %c0_i32 = arith.constant 0 : i32
    %c0_i32_0 = arith.constant 0 : i32
    %c0_i32_1 = arith.constant 0 : i32
    return %c0_i32, %c0_i32_0 : i32, i32
  }
  func.func @transform_3(%arg0: i32) -> (i32, i32) {
    %c0_i32 = arith.constant 0 : i32
    %c0_i32_0 = arith.constant 0 : i32
    %c0_i32_1 = arith.constant 0 : i32
    return %c0_i32, %c0_i32_0 : i32, i32
  }
  func.func @transform_4(%arg0: i32) -> (i32, i32) {
    %c0_i32 = arith.constant 0 : i32
    %c0_i32_0 = arith.constant 0 : i32
    %c0_i32_1 = arith.constant 0 : i32
    return %c0_i32, %c0_i32_0 : i32, i32
  }
  func.func @transform_5(%arg0: i32) -> (i32, i32) {
    %c0_i32 = arith.constant 0 : i32
    %c0_i32_0 = arith.constant 0 : i32
    %c0_i32_1 = arith.constant 0 : i32
    return %c0_i32, %c0_i32_0 : i32, i32
  }
  func.func @transform_6(%arg0: i32) -> (i32, i32) {
    %c0_i32 = arith.constant 0 : i32
    %c0_i32_0 = arith.constant 0 : i32
    %c0_i32_1 = arith.constant 0 : i32
    return %c0_i32, %c0_i32_0 : i32, i32
  }
  func.func @transform_7(%arg0: i32) -> (i32, i32) {
    %c0_i32 = arith.constant 0 : i32
    %c0_i32_0 = arith.constant 0 : i32
    %c0_i32_1 = arith.constant 0 : i32
    return %c0_i32, %c0_i32_0 : i32, i32
  }
  func.func @transform_8(%arg0: i32) -> (i32, i32) {
    %c0_i32 = arith.constant 0 : i32
    %c0_i32_0 = arith.constant 0 : i32
    %c0_i32_1 = arith.constant 0 : i32
    return %c0_i32, %c0_i32_0 : i32, i32
  }
  func.func @transform_9(%arg0: i32) -> (i32, i32) {
    %c0_i32 = arith.constant 0 : i32
    %c0_i32_0 = arith.constant 0 : i32
    %c0_i32_1 = arith.constant 0 : i32
    return %c0_i32, %c0_i32_0 : i32, i32
  }
  func.func @transform_10(%arg0: i32) -> (i32, i32) {
    %c0_i32 = arith.constant 0 : i32
    %c0_i32_0 = arith.constant 0 : i32
    %c0_i32_1 = arith.constant 0 : i32
    return %c0_i32, %c0_i32_0 : i32, i32
  }
  func.func @transform_11(%arg0: i32) -> (i32, i32, i32) {
    %c0_i32 = arith.constant 0 : i32
    %c0_i32_0 = arith.constant 0 : i32
    %c0_i32_1 = arith.constant 0 : i32
    return %arg0, %c0_i32, %c0_i32_0 : i32, i32, i32
  }
}

</mosaic_0001>

<bundles_post_ra>
// kernel: lenet5_forward.1
= control target key start
LH: loop header
LB: loop body
LE: loop exit
PB: predicated region body
PF: predicated region fallthrough
CT: control target
= control target key end

     0   :  { %16 = vsyncpa [#allocation3], 0  ;;  %s5338_s0 = inlined_call_operand.vmem [shape: f32[2,32,128], index: 0, kind: input, shape index: {}]   ;;  %s5339_s1 = inlined_call_operand.hbm [shape: f32[640,256], index: 1, kind: input, shape index: {}]   ;;  %s5340_s2 = inlined_call_operand.vmem [shape: f32[1,128], index: 2, kind: input, shape index: {}]   ;;  %s5341_s3 = inlined_call_operand.hbm [shape: f32[640,256], index: 3, kind: input, shape index: {}]   ;;  %s5342_s4 = inlined_call_operand.vmem [shape: f32[1,128], index: 4, kind: input, shape index: {}]   ;;  %s5343_s5 = inlined_call_operand.vmem [shape: f32[640,128], index: 5, kind: input, shape index: {}]   ;;  %s5344_s6 = inlined_call_operand.vmem [shape: f32[1,128], index: 6, kind: input, shape index: {}]   ;;  %s5345_s7 = inlined_call_operand.vmem [shape: f32[128,128], index: 7, kind: input, shape index: {}]   ;;  %s5346_s8 = inlined_call_operand.vmem [shape: f32[1,128], index: 8, kind: input, shape index: {}]   ;;  %s5347_s9 = inlined_call_operand.vmem [shape: f32[128,128], index: 9, kind: input, shape index: {}]   ;;  %s5348_s10 = inlined_call_operand.vmem [shape: f32[1,128], index: 10, kind: input, shape index: {}]   ;;  %s5349_s11 = inlined_call_operand.hbm [shape: f32[2,1,128], index: 11, kind: output, shape index: {}]  }
   0x1   :  { %17 = vsyncpa [#allocation6], 0 }
   0x2   :  { %18 = vsyncpa [#allocation4], 0 }
   0x3   :  { %20 = vsyncpa [#allocation4 + $0x1], 0  ;;  %s3255_s17 = smov 0   ;;  %s3257_s18 = smov 0  }
   0x4   :  { %s3259_s19 = smov 0   ;;  %s3261_s20 = smov 0  }
   0x5 LB: > { %s3276_s21 = sadd.s32 4294967295, %s3186_s20   ;;  %s2631_s22 = sadd.s32 4294967294, %s3186_s20   ;;  %s3186_s20 = sphi %s3261_s20, %s6268_s20   ;;  %s3182_s19 = sphi %s3259_s19, %s6267_s19   ;;  %s3178_s18 = sphi %s3257_s18, %s6266_s18   ;;  %s3174_s17 = sphi %s3255_s17, %s6265_s17  }
   0x6   : > { %s3280_s23 = sadd.s32 1, %s3186_s20   ;;  %s269_s24 = sadd.s32 1, %s3182_s19 }
   0x7   : > { %s266_s25 = ssub.s32 %s3186_s20, %s3280_s23  ;;  %p279_p0 = scmp.ne.s32.totalorder %s3182_s19, %s3178_s18 }
   0x8   : > { %p267_p1 = scmp.eq.s32.totalorder %s266_s25, 0  ;;  %p280_p2 = scmp.eq.s32.totalorder %s3276_s21, 1 }
   0x9   : > { %p285_p3 = scmp.ne.s32.totalorder %s3178_s18, %s3174_s17  ;;  %p286_p4 = scmp.eq.s32.totalorder %s2631_s22, 1 }
   0xa   : > { %s3291_s26 = scalar_select %p267_p1, %s3182_s19, %s269_s24  }
   0xb   : > { %p3293_p5 = por %p280_p2, %p279_p0  ;;  %p3297_p6 = por %p286_p4, %p285_p3 }
   0xc   : > { %5716 = sst [smem:[#allocation11_spill]] %s3291_s26  ;;  %p2632_p7 = scmp.ge.s32.totalorder %s3186_s20, 1 }
   0xd   : > { %s5718_s28 = scalar_select %p3297_p6, 1, 0 }
   0xe   : > { %p293_p8 = scmp.lt.s32.totalorder %s3186_s20, 3  ;;  %p5350_p9 = scmp.eq.s32.totalorder %s3276_s21, 0 }
   0xf   : > { %s3188_s30 = smov [#allocation2]   ;;  %s3189_s14 = smov [#allocation5]  }
  0x10   : > { %p3304_p10 = pnand %p2632_p7, %p293_p8  ;;  %s305_s12 = sshll.u32 %s3188_s30, 4  ;;  %s306_s12 = int_to_ptr.vmem [resolvable:$true] %s305_s12 }
  0x11   : > { %s321_s15 = sshll.u32 %s3189_s14, 4  ;;  %s3077_s16 = scalar_lea.vmem %s306_s12, 20480  ;;  %s322_s15 = int_to_ptr.vmem [resolvable:$true] %s321_s15 }
  0x12   : > { %p2883_p11 = pneg %p3304_p10  ;;  %p3078_p0 = scmp.ne.s32.totalorder %s306_s12, %s3077_s16 }
  0x13   : > { %p3085_p3 = scmp.lt.s32.totalorder %s306_s12, %s306_s12  ;;  %p3086_p4 = scmp.lt.s32.totalorder %s3077_s16, %s3077_s16 }
  0x14   : > { %p3312_p12 = pnand %p5350_p9, %p2883_p11 }
  0x15   : > { %p3087_p7 = por %p3086_p4, %p3085_p3 }
  0x16   : > { %p3068_p13 = pneg %p3312_p12 }
  0x18   : > { %p3080_p1 = pnand %p3078_p0, %p3068_p13 }
  0x1a   : > { %p3081_p2 = pneg %p3080_p1 }
  0x1c   : > { %p3088_p8 = pnand %p3087_p7, %p3081_p2 }
  0x1e   : > { %3091 = shalt.err (!%p3088_p8)
}
  0x1f   : > { %s3190_s22 = smov 256   ;;  %s3191_s24 = smov 16  }
  0x20   : > { %2886 = dma.hbm_to_vmem [thread:$0]  (!%p3312_p12), %s5339_s1, 20480, %s306_s12, [#allocation3], %s3190_s22, %s3190_s22, %s3191_s24  }
  0x21   : > { %s3103_s14 = scalar_lea.vmem %s322_s15, 20480  ;;  %p3111_p9 = scmp.lt.s32.totalorder %s322_s15, %s322_s15 }
  0x22   : > { %p3104_p11 = scmp.ne.s32.totalorder %s322_s15, %s3103_s14  ;;  %p3112_p6 = scmp.lt.s32.totalorder %s3103_s14, %s3103_s14 }
  0x24   : > { %p3106_p0 = pnand %p3104_p11, %p3068_p13  ;;  %p3113_p3 = por %p3112_p6, %p3111_p9 }
  0x26   : > { %p3107_p1 = pneg %p3106_p0 }
  0x28   : > { %p3114_p2 = pnand %p3113_p3, %p3107_p1 }
  0x2a   : > { %3117 = shalt.err (!%p3114_p2)
}
  0x2b   : > { %2889 = dma.hbm_to_vmem [thread:$0]  (!%p3312_p12), %s5341_s3, 20480, %s322_s15, [#allocation6], %s3190_s22, %s3190_s22, %s3191_s24  }
  0x2c   : > { %366 = sbr.rel (%p3304_p10) target bundleno = 1534 (0x5fe), region = 64 }
  0x31   : > { %p5721_p4 = scmp.eq.s32.totalorder %s3276_s21, 0 }
  0x33   : > { %3161 = dma.done.wait (%p5721_p4), [#allocation3], 20480   ;;  %p5722_p13 = pmov %p5721_p4 }
  0x34   : > { %p5723_p7 = pmov %p5721_p4 }
  0x35   : > { %3163 = vsyncadd (%p5722_p13), [#allocation3], 4294946816 }
  0x36   : > { %3165 = dma.done.wait (%p5723_p7), [#allocation6], 20480   ;;  %p5724_p6 = pmov %p5721_p4 }
  0x37   : > { %v3344_v0 = vld [vmem:[#allocation2 + $0xf8] sm:$0xff]  ;;  %v3348_v2 = vld [vmem:[#allocation2 + $0xf0] sm:$0xff]  ;;  %v3354_v4 = vld [vmem:[#allocation2 + $0xe8] sm:$0xff]  ;;  %p409_p9 = scmp.lt.s32.totalorder %s3276_s21, 1  ;;  %vm3193_vm0 = vmmov 0   ;;  %s407_s24 = sand.u32 1, %s3178_s18  }
  0x38   : > { %3167 = vsyncadd (%p5724_p6), [#allocation6], 4294946816  ;;  %5725 = vst [vmem:[#allocation12_spill] sm:$0xff] %v3344_v0  ;;  %v3346_v1 = vld [vmem:[#allocation2 + $0x2f8] sm:$0xff]  ;;  %858 = vmatprep.subr.mxu0 %v3344_v0  ;;  %v3352_v3 = vld [vmem:[#allocation2 + $0x2f0] sm:$0xff]  ;;  %s2643_s14 = sshll.u32 %s3276_s21, 4 }
  0x39   : > { %5726 = vst [vmem:[#allocation13_spill] sm:$0xff] %v3348_v2  ;;  %929 = vmatprep.subr.mxu1 %v3346_v1  ;;  %5727 = vst [vmem:[#allocation14_spill] sm:$0xff] %v3354_v4  ;;  %v3356_v5 = vld [vmem:[#allocation2 + $0x2e8] sm:$0xff]  ;;  %859 = vmatpush1.msra.mxu0 %v3348_v2  ;;  %v3360_v6 = vld [vmem:[#allocation2 + $0xe0] sm:$0xff]  ;;  %s3666_s26 = scalar_select %p409_p9, %s3276_s21, 1 }
  0x3a   : > { %930 = vmatpush1.msra.mxu1 %v3352_v3  ;;  %5728 = vst [vmem:[#allocation15_spill] sm:$0xff] %v3360_v6  ;;  %v3362_v7 = vld [vmem:[#allocation2 + $0x2e0] sm:$0xff]  ;;  %v3364_v8 = vld [vmem:[#allocation2 + $0xd8] sm:$0xff]  ;;  %860 = vmatprep.subr.mxu0 %v3354_v4  ;;  %v3370_v10 = vld [vmem:[#allocation2 + $0xd0] sm:$0xff]  ;;  %s408_s16 = scalar_lea.vmem [#allocation7], %s407_s24  ;;  %s5303_s13 = scalar_lea.hbm %s5349_s11, %s2643_s14 }
  0x3b   : > { %5729 = vst [vmem:[#allocation16_spill] sm:$0xff] %v3364_v8  ;;  %931 = vmatprep.subr.mxu1 %v3356_v5  ;;  %v3368_v9 = vld [vmem:[#allocation2 + $0x2d8] sm:$0xff]  ;;  %5730 = vst [vmem:[#allocation17_spill] sm:$0xff] %v3370_v10  ;;  %v3372_v11 = vld [vmem:[#allocation2 + $0x2d0] sm:$0xff]  ;;  %861 = vmatpush1.msra.mxu0 %v3360_v6  ;;  %s2646_s29 = sshll.u32 %s3666_s26, 5  ;;  %s2554_s26 = sshll.u32 %s408_s16, 4  ;;  %s2555_s26 = int_to_ptr.vmem [resolvable:$true] %s2554_s26 }
  0x3c   : > { %932 = vmatpush1.msra.mxu1 %v3362_v7  ;;  %v3376_v12 = vld [vmem:[#allocation2 + $0xc8] sm:$0xff]  ;;  %862 = vmatprep.subr.mxu0 %v3364_v8  ;;  %v3382_v14 = vld [vmem:[#allocation2 + $0xc0] sm:$0xff]  ;;  %v3388_v16 = vld [vmem:[#allocation2 + $0xb8] sm:$0xff]  ;;  %s3714_s15 = scalar_lea.vmem %s5338_s0, %s2646_s29  ;;  %s3118_s22 = scalar_lea.vmem %s2555_s26, 16 }
  0x3d   : > { %5731 = vst [vmem:[#allocation18_spill] sm:$0xff] %v3376_v12  ;;  %v3378_v13 = vld [vmem:[#allocation2 + $0x2c8] sm:$0xff]  ;;  %933 = vmatprep.subr.mxu1 %v3368_v9  ;;  %5732 = vst [vmem:[#allocation19_spill] sm:$0xff] %v3382_v14  ;;  %v3384_v15 = vld [vmem:[#allocation2 + $0x2c0] sm:$0xff]  ;;  %863 = vmatpush1.msra.mxu0 %v3370_v10  ;;  %p3119_p10 = scmp.ne.s32.totalorder %s2555_s26, %s3118_s22  ;;  %s3194_s25 = smov [#allocation7]  }
  0x3e   : > { %934 = vmatpush1.msra.mxu1 %v3372_v11  ;;  %5733 = vst [vmem:[#allocation20_spill] sm:$0xff] %v3388_v16  ;;  %v3390_v17 = vld [vmem:[#allocation2 + $0x2b8] sm:$0xff]  ;;  %864 = vmatprep.subr.mxu0 %v3376_v12  ;;  %v3394_v18 = vld [vmem:[#allocation2 + $0xb0] sm:$0xff]  ;;  %v3400_v20 = vld [vmem:[#allocation2 + $0xa8] sm:$0xff]  ;;  %s3122_s21 = sshll.u32 %s3194_s25, 4  ;;  %s3123_s21 = int_to_ptr.vmem [resolvable:$false] %s3122_s21 }
  0x3f   : > { %935 = vmatprep.subr.mxu1 %v3378_v13  ;;  %5734 = vst [vmem:[#allocation21_spill] sm:$0xff] %v3394_v18  ;;  %v3396_v19 = vld [vmem:[#allocation2 + $0x2b0] sm:$0xff]  ;;  %865 = vmatpush1.msra.mxu0 %v3382_v14  ;;  %5735 = vst [vmem:[#allocation22_spill] sm:$0xff] %v3400_v20  ;;  %v3402_v21 = vld [vmem:[#allocation2 + $0x2a8] sm:$0xff]  ;;  %p3120_p12 = pnand %p3119_p10, %p3293_p5  ;;  %s3124_s30 = scalar_lea.vmem %s3123_s21, 32 }
  0x40   : > { %936 = vmatpush1.msra.mxu1 %v3384_v15  ;;  %5736 = vst [vmem:[#allocation23_spill] sm:$0xff] %v3402_v21  ;;  %866 = vmatprep.subr.mxu0 %v3388_v16  ;;  %v3406_v22 = vld [vmem:[#allocation2 + $0xa0] sm:$0xff]  ;;  %v3412_v24 = vld [vmem:[#allocation2 + $0x98] sm:$0xff]  ;;  %v3418_v26 = vld [vmem:[#allocation2 + $0x90] sm:$0xff]  ;;  %p3125_p11 = scmp.lt.s32.totalorder %s2555_s26, %s3123_s21  ;;  %p3126_p0 = scmp.lt.s32.totalorder %s3124_s30, %s3118_s22 }
  0x41   : > { %937 = vmatprep.subr.mxu1 %v3390_v17  ;;  %5737 = vst [vmem:[#allocation24_spill] sm:$0xff] %v3406_v22  ;;  %v3408_v23 = vld [vmem:[#allocation2 + $0x2a0] sm:$0xff]  ;;  %867 = vmatpush1.msra.mxu0 %v3394_v18  ;;  %5739 = vst [vmem:[#allocation26_spill] sm:$0xff] %v3412_v24  ;;  %v3414_v25 = vld [vmem:[#allocation2 + $0x298] sm:$0xff]  ;;  %p3121_p8 = pneg %p3120_p12 }
  0x42   : > { %5738 = vst [vmem:[#allocation25_spill] sm:$0xff] %v3408_v23  ;;  %938 = vmatpush1.msra.mxu1 %v3396_v19  ;;  %5740 = vst [vmem:[#allocation27_spill] sm:$0xff] %v3414_v25  ;;  %868 = vmatprep.subr.mxu0 %v3400_v20  ;;  %v3420_v27 = vld [vmem:[#allocation2 + $0x290] sm:$0xff]  ;;  %v3424_v28 = vld [vmem:[#allocation2 + $0x88] sm:$0xff]  ;;  %p3127_p1 = por %p3126_p0, %p3125_p11 }
  0x43   : > { %939 = vmatprep.subr.mxu1 %v3402_v21  ;;  %5741 = vst [vmem:[#allocation28_spill] sm:$0xff] %v3418_v26  ;;  %5742 = vst [vmem:[#allocation29_spill] sm:$0xff] %v3420_v27  ;;  %869 = vmatpush1.msra.mxu0 %v3406_v22  ;;  %v3426_v29 = vld [vmem:[#allocation2 + $0x288] sm:$0xff]  ;;  %v3430_v30 = vld [vmem:[#allocation2 + $0x80] sm:$0xff] }
  0x44   : > { %940 = vmatpush1.msra.mxu1 %v3408_v23  ;;  %5743 = vst [vmem:[#allocation30_spill] sm:$0xff] %v3424_v28  ;;  %5744 = vst [vmem:[#allocation31_spill] sm:$0xff] %v3426_v29  ;;  %870 = vmatprep.subr.mxu0 %v3412_v24  ;;  %v3432_v31 = vld [vmem:[#allocation2 + $0x280] sm:$0xff]  ;;  %v3436_v32 = vld [vmem:[#allocation2 + $0x78] sm:$0xff]  ;;  %p3128_p3 = pnand %p3127_p1, %p3121_p8 }
  0x45   : > { %941 = vmatprep.subr.mxu1 %v3414_v25  ;;  %5745 = vst [vmem:[#allocation32_spill] sm:$0xff] %v3430_v30  ;;  %5746 = vst [vmem:[#allocation33_spill] sm:$0xff] %v3432_v31  ;;  %871 = vmatpush1.msra.mxu0 %v3418_v26  ;;  %v3438_v33 = vld [vmem:[#allocation2 + $0x278] sm:$0xff]  ;;  %v3442_v34 = vld [vmem:[#allocation2 + $0x70] sm:$0xff] }
  0x46   : > { %942 = vmatpush1.msra.mxu1 %v3420_v27  ;;  %5747 = vst [vmem:[#allocation34_spill] sm:$0xff] %v3436_v32  ;;  %5748 = vst [vmem:[#allocation35_spill] sm:$0xff] %v3438_v33  ;;  %872 = vmatprep.subr.mxu0 %v3424_v28  ;;  %v3444_v35 = vld [vmem:[#allocation2 + $0x270] sm:$0xff]  ;;  %v3448_v36 = vld [vmem:[#allocation2 + $0x68] sm:$0xff] }
  0x47   : > { %943 = vmatprep.subr.mxu1 %v3426_v29  ;;  %5749 = vst [vmem:[#allocation36_spill] sm:$0xff] %v3442_v34  ;;  %5750 = vst [vmem:[#allocation37_spill] sm:$0xff] %v3444_v35  ;;  %873 = vmatpush1.msra.mxu0 %v3430_v30  ;;  %v3450_v37 = vld [vmem:[#allocation2 + $0x268] sm:$0xff]  ;;  %v3454_v38 = vld [vmem:[#allocation2 + $0x60] sm:$0xff] }
  0x48   : > { %944 = vmatpush1.msra.mxu1 %v3432_v31  ;;  %5751 = vst [vmem:[#allocation38_spill] sm:$0xff] %v3448_v36  ;;  %5752 = vst [vmem:[#allocation39_spill] sm:$0xff] %v3450_v37  ;;  %874 = vmatprep.subr.mxu0 %v3436_v32  ;;  %v3456_v39 = vld [vmem:[#allocation2 + $0x260] sm:$0xff]  ;;  %v3460_v40 = vld [vmem:[#allocation2 + $0x58] sm:$0xff] }
  0x49   : > { %945 = vmatprep.subr.mxu1 %v3438_v33  ;;  %5753 = vst [vmem:[#allocation40_spill] sm:$0xff] %v3454_v38  ;;  %5754 = vst [vmem:[#allocation41_spill] sm:$0xff] %v3456_v39  ;;  %875 = vmatpush1.msra.mxu0 %v3442_v34  ;;  %v3462_v41 = vld [vmem:[#allocation2 + $0x258] sm:$0xff]  ;;  %v3466_v42 = vld [vmem:[#allocation2 + $0x50] sm:$0xff] }
  0x4a   : > { %946 = vmatpush1.msra.mxu1 %v3444_v35  ;;  %5755 = vst [vmem:[#allocation42_spill] sm:$0xff] %v3460_v40  ;;  %5756 = vst [vmem:[#allocation43_spill] sm:$0xff] %v3462_v41  ;;  %876 = vmatprep.subr.mxu0 %v3448_v36  ;;  %v3468_v43 = vld [vmem:[#allocation2 + $0x250] sm:$0xff]  ;;  %v3472_v44 = vld [vmem:[#allocation2 + $0x48] sm:$0xff] }
  0x4b   : > { %947 = vmatprep.subr.mxu1 %v3450_v37  ;;  %5757 = vst [vmem:[#allocation44_spill] sm:$0xff] %v3466_v42  ;;  %5758 = vst [vmem:[#allocation45_spill] sm:$0xff] %v3468_v43  ;;  %877 = vmatpush1.msra.mxu0 %v3454_v38  ;;  %v3474_v45 = vld [vmem:[#allocation2 + $0x248] sm:$0xff]  ;;  %v3478_v46 = vld [vmem:[#allocation2 + $0x40] sm:$0xff] }
  0x4c   : > { %948 = vmatpush1.msra.mxu1 %v3456_v39  ;;  %5759 = vst [vmem:[#allocation46_spill] sm:$0xff] %v3472_v44  ;;  %5760 = vst [vmem:[#allocation47_spill] sm:$0xff] %v3474_v45  ;;  %878 = vmatprep.subr.mxu0 %v3460_v40  ;;  %v3480_v47 = vld [vmem:[#allocation2 + $0x240] sm:$0xff]  ;;  %v3484_v48 = vld [vmem:[#allocation2 + $0x38] sm:$0xff] }
  0x4d   : > { %949 = vmatprep.subr.mxu1 %v3462_v41  ;;  %5761 = vst [vmem:[#allocation48_spill] sm:$0xff] %v3478_v46  ;;  %5762 = vst [vmem:[#allocation49_spill] sm:$0xff] %v3480_v47  ;;  %879 = vmatpush1.msra.mxu0 %v3466_v42  ;;  %v3486_v49 = vld [vmem:[#allocation2 + $0x238] sm:$0xff]  ;;  %v3490_v50 = vld [vmem:[#allocation2 + $0x30] sm:$0xff] }
  0x4e   : > { %950 = vmatpush1.msra.mxu1 %v3468_v43  ;;  %5763 = vst [vmem:[#allocation50_spill] sm:$0xff] %v3484_v48  ;;  %5764 = vst [vmem:[#allocation51_spill] sm:$0xff] %v3486_v49  ;;  %880 = vmatprep.subr.mxu0 %v3472_v44  ;;  %v3492_v51 = vld [vmem:[#allocation2 + $0x230] sm:$0xff]  ;;  %v3496_v52 = vld [vmem:[#allocation2 + $0x28] sm:$0xff] }
  0x4f   : > { %951 = vmatprep.subr.mxu1 %v3474_v45  ;;  %5765 = vst [vmem:[#allocation52_spill] sm:$0xff] %v3490_v50  ;;  %5766 = vst [vmem:[#allocation53_spill] sm:$0xff] %v3492_v51  ;;  %881 = vmatpush1.msra.mxu0 %v3478_v46  ;;  %v3498_v53 = vld [vmem:[#allocation2 + $0x228] sm:$0xff]  ;;  %v3502_v54 = vld [vmem:[#allocation2 + $0x20] sm:$0xff] }
  0x50   : > { %952 = vmatpush1.msra.mxu1 %v3480_v47  ;;  %5767 = vst [vmem:[#allocation54_spill] sm:$0xff] %v3496_v52  ;;  %5768 = vst [vmem:[#allocation55_spill] sm:$0xff] %v3498_v53  ;;  %882 = vmatprep.subr.mxu0 %v3484_v48  ;;  %v3504_v55 = vld [vmem:[#allocation2 + $0x220] sm:$0xff]  ;;  %v3508_v56 = vld [vmem:[#allocation2 + $0x18] sm:$0xff] }
  0x51   : > { %953 = vmatprep.subr.mxu1 %v3486_v49  ;;  %5769 = vst [vmem:[#allocation56_spill] sm:$0xff] %v3502_v54  ;;  %5770 = vst [vmem:[#allocation57_spill] sm:$0xff] %v3504_v55  ;;  %883 = vmatpush1.msra.mxu0 %v3490_v50  ;;  %v3510_v57 = vld [vmem:[#allocation2 + $0x218] sm:$0xff]  ;;  %v3514_v58 = vld [vmem:[#allocation2 + $0x10] sm:$0xff] }
  0x52   : > { %954 = vmatpush1.msra.mxu1 %v3492_v51  ;;  %5771 = vst [vmem:[#allocation58_spill] sm:$0xff] %v3508_v56  ;;  %5772 = vst [vmem:[#allocation59_spill] sm:$0xff] %v3510_v57  ;;  %884 = vmatprep.subr.mxu0 %v3496_v52  ;;  %v3516_v59 = vld [vmem:[#allocation2 + $0x210] sm:$0xff]  ;;  %v3520_v60 = vld [vmem:[#allocation2 + $0x8] sm:$0xff] }
  0x53   : > { %955 = vmatprep.subr.mxu1 %v3498_v53  ;;  %5773 = vst [vmem:[#allocation60_spill] sm:$0xff] %v3514_v58  ;;  %5774 = vst [vmem:[#allocation61_spill] sm:$0xff] %v3516_v59  ;;  %885 = vmatpush1.msra.mxu0 %v3502_v54  ;;  %v3522_v61 = vld [vmem:[#allocation2 + $0x208] sm:$0xff]  ;;  %v3526_v62 = vld [vmem:[#allocation2] sm:$0xff] }
  0x54   : > { %956 = vmatpush1.msra.mxu1 %v3504_v55  ;;  %5775 = vst [vmem:[#allocation62_spill] sm:$0xff] %v3520_v60  ;;  %5776 = vst [vmem:[#allocation63_spill] sm:$0xff] %v3522_v61  ;;  %886 = vmatprep.subr.mxu0 %v3508_v56  ;;  %v3528_v63 = vld [vmem:[#allocation2 + $0x200] sm:$0xff]  ;;  %v3532_v53 = vld [vmem:[#allocation2 + $0x1f8] sm:$0xff] }
  0x55   : > { %957 = vmatprep.subr.mxu1 %v3510_v57  ;;  %5777 = vst [vmem:[#allocation64_spill] sm:$0xff] %v3526_v62  ;;  %5778 = vst [vmem:[#allocation65_spill] sm:$0xff] %v3528_v63  ;;  %887 = vmatpush1.msra.mxu0 %v3514_v58  ;;  %v3534_v51 = vld [vmem:[#allocation2 + $0x3f8] sm:$0xff]  ;;  %v3538_v55 = vld [vmem:[#allocation2 + $0x1f0] sm:$0xff] }
  0x56   : > { %958 = vmatpush1.msra.mxu1 %v3516_v59  ;;  %5779 = vst [vmem:[#allocation66_spill] sm:$0xff] %v3532_v53  ;;  %5780 = vst [vmem:[#allocation67_spill] sm:$0xff] %v3534_v51  ;;  %888 = vmatprep.subr.mxu0 %v3520_v60  ;;  %v3540_v49 = vld [vmem:[#allocation2 + $0x3f0] sm:$0xff]  ;;  %v3544_v57 = vld [vmem:[#allocation2 + $0x1e8] sm:$0xff] }
  0x57   : > { %959 = vmatprep.subr.mxu1 %v3522_v61  ;;  %5781 = vst [vmem:[#allocation68_spill] sm:$0xff] %v3538_v55  ;;  %5782 = vst [vmem:[#allocation69_spill] sm:$0xff] %v3540_v49  ;;  %889 = vmatpush1.msra.mxu0 %v3526_v62  ;;  %v3546_v47 = vld [vmem:[#allocation2 + $0x3e8] sm:$0xff]  ;;  %v3550_v59 = vld [vmem:[#allocation2 + $0x1e0] sm:$0xff] }
  0x58   : > { %960 = vmatpush1.msra.mxu1 %v3528_v63  ;;  %5783 = vst [vmem:[#allocation70_spill] sm:$0xff] %v3544_v57  ;;  %5784 = vst [vmem:[#allocation71_spill] sm:$0xff] %v3546_v47  ;;  %890 = vmatprep.subr.mxu0 %v3532_v53  ;;  %v3552_v45 = vld [vmem:[#allocation2 + $0x3e0] sm:$0xff]  ;;  %v3556_v61 = vld [vmem:[#allocation2 + $0x1d8] sm:$0xff] }
  0x59   : > { %961 = vmatprep.subr.mxu1 %v3534_v51  ;;  %5785 = vst [vmem:[#allocation72_spill] sm:$0xff] %v3550_v59  ;;  %5786 = vst [vmem:[#allocation73_spill] sm:$0xff] %v3552_v45  ;;  %891 = vmatpush2.msra.mxu0 %v3538_v55  ;;  %v3558_v43 = vld [vmem:[#allocation2 + $0x3d8] sm:$0xff]  ;;  %v3562_v63 = vld [vmem:[#allocation2 + $0x1d0] sm:$0xff] }
  0x5a   : > { %962 = vmatpush2.msra.mxu1 %v3540_v49  ;;  %5787 = vst [vmem:[#allocation74_spill] sm:$0xff] %v3556_v61  ;;  %5788 = vst [vmem:[#allocation75_spill] sm:$0xff] %v3558_v43  ;;  %892 = vmatprep.subr.mxu0 %v3544_v57  ;;  %v3564_v41 = vld [vmem:[#allocation2 + $0x3d0] sm:$0xff]  ;;  %v3568_v51 = vld [vmem:[#allocation2 + $0x1c8] sm:$0xff] }
  0x5b   : > { %963 = vmatprep.subr.mxu1 %v3546_v47  ;;  %5789 = vst [vmem:[#allocation76_spill] sm:$0xff] %v3562_v63  ;;  %5790 = vst [vmem:[#allocation77_spill] sm:$0xff] %v3564_v41  ;;  %893 = vmatpush2.msra.mxu0 %v3550_v59  ;;  %v3570_v39 = vld [vmem:[#allocation2 + $0x3c8] sm:$0xff]  ;;  %v3574_v49 = vld [vmem:[#allocation2 + $0x1c0] sm:$0xff] }
  0x5c   : > { %964 = vmatpush2.msra.mxu1 %v3552_v45  ;;  %5791 = vst [vmem:[#allocation78_spill] sm:$0xff] %v3568_v51  ;;  %5792 = vst [vmem:[#allocation79_spill] sm:$0xff] %v3570_v39  ;;  %894 = vmatprep.subr.mxu0 %v3556_v61  ;;  %v3576_v37 = vld [vmem:[#allocation2 + $0x3c0] sm:$0xff]  ;;  %v3580_v47 = vld [vmem:[#allocation2 + $0x1b8] sm:$0xff] }
  0x5d   : > { %965 = vmatprep.subr.mxu1 %v3558_v43  ;;  %5793 = vst [vmem:[#allocation80_spill] sm:$0xff] %v3574_v49  ;;  %5794 = vst [vmem:[#allocation81_spill] sm:$0xff] %v3576_v37  ;;  %895 = vmatpush2.msra.mxu0 %v3562_v63  ;;  %v3582_v35 = vld [vmem:[#allocation2 + $0x3b8] sm:$0xff]  ;;  %v3586_v45 = vld [vmem:[#allocation2 + $0x1b0] sm:$0xff] }
  0x5e   : > { %966 = vmatpush2.msra.mxu1 %v3564_v41  ;;  %5795 = vst [vmem:[#allocation82_spill] sm:$0xff] %v3580_v47  ;;  %5796 = vst [vmem:[#allocation83_spill] sm:$0xff] %v3582_v35  ;;  %896 = vmatprep.subr.mxu0 %v3568_v51  ;;  %v3588_v33 = vld [vmem:[#allocation2 + $0x3b0] sm:$0xff]  ;;  %v3592_v43 = vld [vmem:[#allocation2 + $0x1a8] sm:$0xff] }
  0x5f   : > { %967 = vmatprep.subr.mxu1 %v3570_v39  ;;  %5797 = vst [vmem:[#allocation84_spill] sm:$0xff] %v3586_v45  ;;  %5798 = vst [vmem:[#allocation85_spill] sm:$0xff] %v3588_v33  ;;  %897 = vmatpush2.msra.mxu0 %v3574_v49  ;;  %v3594_v31 = vld [vmem:[#allocation2 + $0x3a8] sm:$0xff]  ;;  %v3598_v41 = vld [vmem:[#allocation2 + $0x1a0] sm:$0xff] }
  0x60   : > { %968 = vmatpush2.msra.mxu1 %v3576_v37  ;;  %5799 = vst [vmem:[#allocation86_spill] sm:$0xff] %v3592_v43  ;;  %5800 = vst [vmem:[#allocation87_spill] sm:$0xff] %v3594_v31  ;;  %898 = vmatprep.subr.mxu0 %v3580_v47  ;;  %v3600_v29 = vld [vmem:[#allocation2 + $0x3a0] sm:$0xff]  ;;  %v3604_v39 = vld [vmem:[#allocation2 + $0x198] sm:$0xff] }
  0x61   : > { %969 = vmatprep.subr.mxu1 %v3582_v35  ;;  %5801 = vst [vmem:[#allocation88_spill] sm:$0xff] %v3598_v41  ;;  %5802 = vst [vmem:[#allocation89_spill] sm:$0xff] %v3600_v29  ;;  %899 = vmatpush2.msra.mxu0 %v3586_v45  ;;  %v3606_v27 = vld [vmem:[#allocation2 + $0x398] sm:$0xff]  ;;  %v3610_v37 = vld [vmem:[#allocation2 + $0x190] sm:$0xff] }
  0x62   : > { %970 = vmatpush2.msra.mxu1 %v3588_v33  ;;  %5803 = vst [vmem:[#allocation90_spill] sm:$0xff] %v3604_v39  ;;  %5804 = vst [vmem:[#allocation91_spill] sm:$0xff] %v3606_v27  ;;  %900 = vmatprep.subr.mxu0 %v3592_v43  ;;  %v3612_v25 = vld [vmem:[#allocation2 + $0x390] sm:$0xff]  ;;  %v3616_v35 = vld [vmem:[#allocation2 + $0x188] sm:$0xff] }
  0x63   : > { %971 = vmatprep.subr.mxu1 %v3594_v31  ;;  %5805 = vst [vmem:[#allocation92_spill] sm:$0xff] %v3610_v37  ;;  %5806 = vst [vmem:[#allocation93_spill] sm:$0xff] %v3612_v25  ;;  %901 = vmatpush2.msra.mxu0 %v3598_v41  ;;  %v3618_v33 = vld [vmem:[#allocation2 + $0x388] sm:$0xff]  ;;  %v3622_v23 = vld [vmem:[#allocation2 + $0x180] sm:$0xff] }
  0x64   : > { %972 = vmatpush2.msra.mxu1 %v3600_v29  ;;  %5807 = vst [vmem:[#allocation94_spill] sm:$0xff] %v3616_v35  ;;  %5808 = vst [vmem:[#allocation95_spill] sm:$0xff] %v3618_v33  ;;  %902 = vmatprep.subr.mxu0 %v3604_v39  ;;  %v3624_v31 = vld [vmem:[#allocation2 + $0x380] sm:$0xff]  ;;  %v3628_v41 = vld [vmem:[#allocation2 + $0x178] sm:$0xff] }
  0x65   : > { %973 = vmatprep.subr.mxu1 %v3606_v27  ;;  %5809 = vst [vmem:[#allocation96_spill] sm:$0xff] %v3622_v23  ;;  %5810 = vst [vmem:[#allocation97_spill] sm:$0xff] %v3624_v31  ;;  %903 = vmatpush2.msra.mxu0 %v3610_v37  ;;  %v3630_v21 = vld [vmem:[#allocation2 + $0x378] sm:$0xff]  ;;  %v3634_v29 = vld [vmem:[#allocation2 + $0x170] sm:$0xff] }
  0x66   : > { %974 = vmatpush2.msra.mxu1 %v3612_v25  ;;  %5811 = vst [vmem:[#allocation98_spill] sm:$0xff] %v3628_v41  ;;  %5812 = vst [vmem:[#allocation99_spill] sm:$0xff] %v3630_v21  ;;  %904 = vmatprep.subr.mxu0 %v3616_v35  ;;  %v3636_v39 = vld [vmem:[#allocation2 + $0x370] sm:$0xff]  ;;  %v3641_v25 = vld [vmem:[#allocation2 + $0x168] sm:$0xff] }
  0x67   : > { %975 = vmatprep.subr.mxu1 %v3618_v33  ;;  %5813 = vst [vmem:[#allocation100_spill] sm:$0xff] %v3634_v29  ;;  %5814 = vst [vmem:[#allocation101_spill] sm:$0xff] %v3636_v39  ;;  %905 = vmatpush2.msra.mxu0 %v3622_v23  ;;  %v3643_v27 = vld [vmem:[#allocation2 + $0x368] sm:$0xff]  ;;  %v3647_v33 = vld [vmem:[#allocation2 + $0x160] sm:$0xff] }
  0x68   : > { %976 = vmatpush2.msra.mxu1 %v3624_v31  ;;  %5815 = vst [vmem:[#allocation102_spill] sm:$0xff] %v3641_v25  ;;  %5816 = vst [vmem:[#allocation103_spill] sm:$0xff] %v3643_v27  ;;  %906 = vmatprep.subr.mxu0 %v3628_v41  ;;  %v3649_v35 = vld [vmem:[#allocation2 + $0x360] sm:$0xff]  ;;  %v3653_v23 = vld [vmem:[#allocation2 + $0x158] sm:$0xff] }
  0x69   : > { %977 = vmatprep.subr.mxu1 %v3630_v21  ;;  %5817 = vst [vmem:[#allocation104_spill] sm:$0xff] %v3647_v33  ;;  %5818 = vst [vmem:[#allocation105_spill] sm:$0xff] %v3649_v35  ;;  %907 = vmatpush2.msra.mxu0 %v3634_v29  ;;  %v3655_v37 = vld [vmem:[#allocation2 + $0x358] sm:$0xff]  ;;  %v3659_v31 = vld [vmem:[#allocation2 + $0x150] sm:$0xff] }
  0x6a   : > { %978 = vmatpush2.msra.mxu1 %v3636_v39  ;;  %5819 = vst [vmem:[#allocation106_spill] sm:$0xff] %v3653_v23  ;;  %5820 = vst [vmem:[#allocation107_spill] sm:$0xff] %v3655_v37  ;;  %908 = vmatprep.subr.mxu0 %v3641_v25  ;;  %v3661_v41 = vld [vmem:[#allocation2 + $0x350] sm:$0xff]  ;;  %v3670_v39 = vld [vmem:[#allocation2 + $0x148] sm:$0xff] }
  0x6b   : > { %979 = vmatprep.subr.mxu1 %v3643_v27  ;;  %5821 = vst [vmem:[#allocation108_spill] sm:$0xff] %v3659_v31  ;;  %5822 = vst [vmem:[#allocation109_spill] sm:$0xff] %v3661_v41  ;;  %909 = vmatpush2.msra.mxu0 %v3647_v33  ;;  %v3672_v21 = vld [vmem:[#allocation2 + $0x348] sm:$0xff]  ;;  %v3676_v27 = vld [vmem:[#allocation2 + $0x140] sm:$0xff] }
  0x6c   : > { %980 = vmatpush2.msra.mxu1 %v3649_v35  ;;  %5823 = vst [vmem:[#allocation110_spill] sm:$0xff] %v3670_v39  ;;  %5824 = vst [vmem:[#allocation111_spill] sm:$0xff] %v3672_v21  ;;  %910 = vmatprep.subr.mxu0 %v3653_v23  ;;  %v3678_v25 = vld [vmem:[#allocation2 + $0x340] sm:$0xff]  ;;  %v3682_v33 = vld [vmem:[#allocation2 + $0x138] sm:$0xff] }
  0x6d   : > { %981 = vmatprep.subr.mxu1 %v3655_v37  ;;  %5825 = vst [vmem:[#allocation112_spill] sm:$0xff] %v3676_v27  ;;  %5826 = vst [vmem:[#allocation113_spill] sm:$0xff] %v3678_v25  ;;  %911 = vmatpush2.msra.mxu0 %v3659_v31  ;;  %v3684_v29 = vld [vmem:[#allocation2 + $0x338] sm:$0xff]  ;;  %v3688_v35 = vld [vmem:[#allocation2 + $0x130] sm:$0xff] }
  0x6e   : > { %982 = vmatpush2.msra.mxu1 %v3661_v41  ;;  %5827 = vst [vmem:[#allocation114_spill] sm:$0xff] %v3682_v33  ;;  %5828 = vst [vmem:[#allocation115_spill] sm:$0xff] %v3684_v29  ;;  %912 = vmatprep.subr.mxu0 %v3670_v39  ;;  %v3690_v23 = vld [vmem:[#allocation2 + $0x330] sm:$0xff]  ;;  %v3695_v37 = vld [vmem:[#allocation2 + $0x128] sm:$0xff] }
  0x6f   : > { %983 = vmatprep.subr.mxu1 %v3672_v21  ;;  %5829 = vst [vmem:[#allocation116_spill] sm:$0xff] %v3688_v35  ;;  %5830 = vst [vmem:[#allocation117_spill] sm:$0xff] %v3690_v23  ;;  %913 = vmatpush2.msra.mxu0 %v3676_v27  ;;  %v3697_v41 = vld [vmem:[#allocation2 + $0x328] sm:$0xff]  ;;  %v3701_v39 = vld [vmem:[#allocation2 + $0x120] sm:$0xff] }
  0x70   : > { %984 = vmatpush2.msra.mxu1 %v3678_v25  ;;  %5831 = vst [vmem:[#allocation118_spill] sm:$0xff] %v3695_v37  ;;  %5832 = vst [vmem:[#allocation119_spill] sm:$0xff] %v3697_v41  ;;  %914 = vmatprep.subr.mxu0 %v3682_v33  ;;  %v3703_v21 = vld [vmem:[#allocation2 + $0x320] sm:$0xff]  ;;  %v3707_v31 = vld [vmem:[#allocation2 + $0x118] sm:$0xff] }
  0x71   : > { %985 = vmatprep.subr.mxu1 %v3684_v29  ;;  %5833 = vst [vmem:[#allocation120_spill] sm:$0xff] %v3701_v39  ;;  %5834 = vst [vmem:[#allocation121_spill] sm:$0xff] %v3703_v21  ;;  %915 = vmatpush2.msra.mxu0 %v3688_v35  ;;  %v3709_v27 = vld [vmem:[#allocation2 + $0x318] sm:$0xff]  ;;  %v3718_v29 = vld [vmem:[#allocation2 + $0x110] sm:$0xff] }
  0x72   : > { %986 = vmatpush2.msra.mxu1 %v3690_v23  ;;  %5835 = vst [vmem:[#allocation122_spill] sm:$0xff] %v3707_v31  ;;  %5836 = vst [vmem:[#allocation123_spill] sm:$0xff] %v3709_v27  ;;  %916 = vmatprep.subr.mxu0 %v3695_v37  ;;  %v3720_v25 = vld [vmem:[#allocation2 + $0x310] sm:$0xff]  ;;  %v3724_v23 = vld [vmem:[#allocation2 + $0x108] sm:$0xff] }
  0x73   : > { %987 = vmatprep.subr.mxu1 %v3697_v41  ;;  %5837 = vst [vmem:[#allocation124_spill] sm:$0xff] %v3718_v29  ;;  %5838 = vst [vmem:[#allocation125_spill] sm:$0xff] %v3720_v25  ;;  %917 = vmatpush2.msra.mxu0 %v3701_v39  ;;  %v3726_v35 = vld [vmem:[#allocation2 + $0x308] sm:$0xff]  ;;  %v3730_v37 = vld [vmem:[#allocation2 + $0x100] sm:$0xff] }
  0x74   : > { %988 = vmatpush2.msra.mxu1 %v3703_v21  ;;  %5839 = vst [vmem:[#allocation126_spill] sm:$0xff] %v3724_v23  ;;  %5840 = vst [vmem:[#allocation127_spill] sm:$0xff] %v3726_v35  ;;  %918 = vmatprep.subr.mxu0 %v3707_v31  ;;  %v3733_v41 = vld [vmem:[%s3714_s15 + $0x8] sm:$0xff]  ;;  %v3737_v33 = vld [vmem:[#allocation2 + $0x300] sm:$0xff] }
  0x75   : > { %989 = vmatprep.subr.mxu1 %v3709_v27  ;;  %5841 = vst [vmem:[#allocation128_spill] sm:$0xff] %v3730_v37  ;;  %5842 = vst [vmem:[#allocation129_spill] sm:$0xff] %v3733_v41  ;;  %919 = vmatpush2.msra.mxu0 %v3718_v29  ;;  %v3740_v39 = vld [vmem:[%s3714_s15 + $0x18] sm:$0xff]  ;;  %v3745_v21 = vld [vmem:[%s3714_s15] sm:$0xff] }
  0x76   : > { %990 = vmatpush2.msra.mxu1 %v3720_v25  ;;  %5843 = vst [vmem:[#allocation130_spill] sm:$0xff] %v3737_v33  ;;  %5844 = vst [vmem:[#allocation131_spill] sm:$0xff] %v3740_v39  ;;  %920 = vmatprep.subr.mxu0 %v3724_v23  ;;  %v3748_v31 = vld [vmem:[%s3714_s15 + $0x10] sm:$0xff]  ;;  %v3752_v27 = vld [vmem:[#allocation2 + $0x4f8] sm:$0xff] }
  0x77   : > { %991 = vmatprep.subr.mxu1 %v3726_v35  ;;  %5845 = vst [vmem:[#allocation132_spill] sm:$0xff] %v3748_v31  ;;  %921 = vmatpush2.msra.mxu0 %v3730_v37  ;;  %5846 = vst [vmem:[#allocation133_spill] sm:$0xff] %v3752_v27  ;;  %v3756_v25 = vld [vmem:[#allocation2 + $0x4f0] sm:$0xff]  ;;  %v3760_v35 = vld [vmem:[#allocation2 + $0x4e8] sm:$0xff] }
  0x78   : > { %922 = vmatprep.mubr.f32.mxu0 %v3733_v41  ;;  %992 = vmatpush2.msra.mxu1 %v3737_v33  ;;  %5847 = vst [vmem:[#allocation134_spill] sm:$0xff] %v3756_v25  ;;  %5848 = vst [vmem:[#allocation135_spill] sm:$0xff] %v3760_v35  ;;  %v3764_v37 = vld [vmem:[#allocation2 + $0x4e0] sm:$0xff]  ;;  %v3768_v33 = vld [vmem:[#allocation2 + $0x4d8] sm:$0xff] }
  0x79   : > { %993 = vmatprep.mubr.f32.mxu1 %v3740_v39  ;;  %923 = vmatmul.mubr.f32.vlgmr.msra.gmra.mxu0 %v3745_v21  ;;  %5849 = vst [vmem:[#allocation136_spill] sm:$0xff] %v3764_v37  ;;  %5850 = vst [vmem:[#allocation137_spill] sm:$0xff] %v3768_v33  ;;  %v3772_v39 = vld [vmem:[#allocation2 + $0x4d0] sm:$0xff]  ;;  %v3776_v41 = vld [vmem:[#allocation2 + $0x4c8] sm:$0xff] }
  0x7a   : > { %994 = vmatmul.mubr.f32.vlgmr.msra.gmra.mxu1 %v3748_v31  ;;  %1000 = vmatprep.subr.mxu0 %v3752_v27  ;;  %5851 = vst [vmem:[#allocation138_spill] sm:$0xff] %v3772_v39  ;;  %5852 = vst [vmem:[#allocation139_spill] sm:$0xff] %v3776_v41 }
  0x7b   : > { %1074 = vmatprep.subr.mxu1 %v3344_v0  ;;  %1001 = vmatpush1.msra.mxu0 %v3756_v25  ;;  %v3780_v0 = vld [vmem:[#allocation2 + $0x4c0] sm:$0xff] }
  0x7c   : > { %1075 = vmatpush1.msra.mxu1 %v3348_v2  ;;  %1002 = vmatprep.subr.mxu0 %v3760_v35  ;;  %5853 = vst [vmem:[#allocation140_spill] sm:$0xff] %v3780_v0  ;;  %v3784_v2 = vld [vmem:[#allocation2 + $0x4b8] sm:$0xff] }
  0x7d   : > { %1076 = vmatprep.subr.mxu1 %v3354_v4  ;;  %1003 = vmatpush1.msra.mxu0 %v3764_v37  ;;  %5854 = vst [vmem:[#allocation141_spill] sm:$0xff] %v3784_v2  ;;  %v3788_v4 = vld [vmem:[#allocation2 + $0x4b0] sm:$0xff] }
  0x7e   : > { %1077 = vmatpush1.msra.mxu1 %v3360_v6  ;;  %1004 = vmatprep.subr.mxu0 %v3768_v33  ;;  %5855 = vst [vmem:[#allocation142_spill] sm:$0xff] %v3788_v4  ;;  %v3792_v6 = vld [vmem:[#allocation2 + $0x4a8] sm:$0xff] }
  0x7f   : > { %1078 = vmatprep.subr.mxu1 %v3364_v8  ;;  %1005 = vmatpush1.msra.mxu0 %v3772_v39  ;;  %5856 = vst [vmem:[#allocation143_spill] sm:$0xff] %v3792_v6  ;;  %v3796_v8 = vld [vmem:[#allocation2 + $0x4a0] sm:$0xff] }
  0x80   : > { %1079 = vmatpush1.msra.mxu1 %v3370_v10  ;;  %1006 = vmatprep.subr.mxu0 %v3776_v41  ;;  %5857 = vst [vmem:[#allocation144_spill] sm:$0xff] %v3796_v8  ;;  %v3800_v10 = vld [vmem:[#allocation2 + $0x498] sm:$0xff] }
  0x81   : > { %1080 = vmatprep.subr.mxu1 %v3376_v12  ;;  %1007 = vmatpush1.msra.mxu0 %v3780_v0  ;;  %5858 = vst [vmem:[#allocation145_spill] sm:$0xff] %v3800_v10  ;;  %v3804_v12 = vld [vmem:[#allocation2 + $0x490] sm:$0xff] }
  0x82   : > { %1081 = vmatpush1.msra.mxu1 %v3382_v14  ;;  %1008 = vmatprep.subr.mxu0 %v3784_v2  ;;  %5859 = vst [vmem:[#allocation146_spill] sm:$0xff] %v3804_v12  ;;  %v3808_v14 = vld [vmem:[#allocation2 + $0x488] sm:$0xff] }
  0x83   : > { %1082 = vmatprep.subr.mxu1 %v3388_v16  ;;  %1009 = vmatpush1.msra.mxu0 %v3788_v4  ;;  %5860 = vst [vmem:[#allocation147_spill] sm:$0xff] %v3808_v14  ;;  %v3812_v16 = vld [vmem:[#allocation2 + $0x480] sm:$0xff] }
  0x84   : > { %1083 = vmatpush1.msra.mxu1 %v3394_v18  ;;  %1010 = vmatprep.subr.mxu0 %v3792_v6  ;;  %5861 = vst [vmem:[#allocation148_spill] sm:$0xff] %v3812_v16  ;;  %v3816_v18 = vld [vmem:[#allocation2 + $0x478] sm:$0xff] }
  0x85   : > { %1084 = vmatprep.subr.mxu1 %v3400_v20  ;;  %1011 = vmatpush1.msra.mxu0 %v3796_v8  ;;  %5862 = vst [vmem:[#allocation149_spill] sm:$0xff] %v3816_v18  ;;  %v3820_v20 = vld [vmem:[#allocation2 + $0x470] sm:$0xff] }
  0x86   : > { %1085 = vmatpush1.msra.mxu1 %v3406_v22  ;;  %1012 = vmatprep.subr.mxu0 %v3800_v10  ;;  %5863 = vst [vmem:[#allocation150_spill] sm:$0xff] %v3820_v20  ;;  %v3824_v22 = vld [vmem:[#allocation2 + $0x468] sm:$0xff] }
  0x87   : > { %1086 = vmatprep.subr.mxu1 %v3412_v24  ;;  %1013 = vmatpush1.msra.mxu0 %v3804_v12  ;;  %5864 = vst [vmem:[#allocation151_spill] sm:$0xff] %v3824_v22  ;;  %v3828_v24 = vld [vmem:[#allocation2 + $0x460] sm:$0xff] }
  0x88   : > { %1087 = vmatpush1.msra.mxu1 %v3418_v26  ;;  %1014 = vmatprep.subr.mxu0 %v3808_v14  ;;  %5865 = vst [vmem:[#allocation152_spill] sm:$0xff] %v3828_v24  ;;  %v3832_v26 = vld [vmem:[#allocation2 + $0x458] sm:$0xff] }
  0x89   : > { %1088 = vmatprep.subr.mxu1 %v3424_v28  ;;  %1015 = vmatpush1.msra.mxu0 %v3812_v16  ;;  %5866 = vst [vmem:[#allocation153_spill] sm:$0xff] %v3832_v26  ;;  %v3836_v28 = vld [vmem:[#allocation2 + $0x450] sm:$0xff] }
  0x8a   : > { %1089 = vmatpush1.msra.mxu1 %v3430_v30  ;;  %1016 = vmatprep.subr.mxu0 %v3816_v18  ;;  %5867 = vst [vmem:[#allocation154_spill] sm:$0xff] %v3836_v28  ;;  %v3840_v30 = vld [vmem:[#allocation2 + $0x448] sm:$0xff] }
  0x8b   : > { %1090 = vmatprep.subr.mxu1 %v3436_v32  ;;  %1017 = vmatpush1.msra.mxu0 %v3820_v20  ;;  %5868 = vst [vmem:[#allocation155_spill] sm:$0xff] %v3840_v30  ;;  %v3844_v32 = vld [vmem:[#allocation2 + $0x440] sm:$0xff] }
  0x8c   : > { %1091 = vmatpush1.msra.mxu1 %v3442_v34  ;;  %1018 = vmatprep.subr.mxu0 %v3824_v22  ;;  %5869 = vst [vmem:[#allocation156_spill] sm:$0xff] %v3844_v32  ;;  %v3848_v34 = vld [vmem:[#allocation2 + $0x438] sm:$0xff] }
  0x8d   : > { %1092 = vmatprep.subr.mxu1 %v3448_v36  ;;  %1019 = vmatpush1.msra.mxu0 %v3828_v24  ;;  %5870 = vst [vmem:[#allocation157_spill] sm:$0xff] %v3848_v34  ;;  %v3852_v36 = vld [vmem:[#allocation2 + $0x430] sm:$0xff] }
  0x8e   : > { %1093 = vmatpush1.msra.mxu1 %v3454_v38  ;;  %1020 = vmatprep.subr.mxu0 %v3832_v26  ;;  %5871 = vst [vmem:[#allocation158_spill] sm:$0xff] %v3852_v36  ;;  %v3856_v38 = vld [vmem:[#allocation2 + $0x428] sm:$0xff] }
  0x8f   : > { %1094 = vmatprep.subr.mxu1 %v3460_v40  ;;  %1021 = vmatpush1.msra.mxu0 %v3836_v28  ;;  %5872 = vst [vmem:[#allocation159_spill] sm:$0xff] %v3856_v38  ;;  %v3860_v40 = vld [vmem:[#allocation2 + $0x420] sm:$0xff] }
  0x90   : > { %1095 = vmatpush1.msra.mxu1 %v3466_v42  ;;  %1022 = vmatprep.subr.mxu0 %v3840_v30  ;;  %5873 = vst [vmem:[#allocation160_spill] sm:$0xff] %v3860_v40  ;;  %v3864_v42 = vld [vmem:[#allocation2 + $0x418] sm:$0xff] }
  0x91   : > { %1096 = vmatprep.subr.mxu1 %v3472_v44  ;;  %1023 = vmatpush1.msra.mxu0 %v3844_v32  ;;  %5874 = vst [vmem:[#allocation161_spill] sm:$0xff] %v3864_v42  ;;  %v3868_v44 = vld [vmem:[#allocation2 + $0x410] sm:$0xff] }
  0x92   : > { %1097 = vmatpush1.msra.mxu1 %v3478_v46  ;;  %1024 = vmatprep.subr.mxu0 %v3848_v34  ;;  %5875 = vst [vmem:[#allocation162_spill] sm:$0xff] %v3868_v44  ;;  %v3872_v46 = vld [vmem:[#allocation2 + $0x408] sm:$0xff] }
  0x93   : > { %1098 = vmatprep.subr.mxu1 %v3484_v48  ;;  %1025 = vmatpush1.msra.mxu0 %v3852_v36  ;;  %5876 = vst [vmem:[#allocation163_spill] sm:$0xff] %v3872_v46  ;;  %v3875_v48 = vrot.slane %v3745_v21, 1  ;;  %v5878_v21 = vld [vmem:[#allocation23_spill] sm:$0xff] }
  0x94   : > { %1099 = vmatpush1.msra.mxu1 %v3490_v50  ;;  %1026 = vmatprep.subr.mxu0 %v3856_v38  ;;  %v3879_v50 = vld [vmem:[#allocation2 + $0x400] sm:$0xff] }
  0x95   : > { %1100 = vmatprep.subr.mxu1 %v3496_v52  ;;  %1027 = vmatpush1.msra.mxu0 %v3860_v40  ;;  %5877 = vst [vmem:[#allocation164_spill] sm:$0xff] %v3879_v50  ;;  %v5901_v52 = vld [vmem:[#allocation110_spill] sm:$0xff] }
  0x96   : > { %1101 = vmatpush1.msra.mxu1 %v3502_v54  ;;  %1028 = vmatprep.subr.mxu0 %v3864_v42  ;;  %v5528_v54 = vmov 0.0  }
  0x97   : > { %1102 = vmatprep.subr.mxu1 %v3508_v56  ;;  %1029 = vmatpush1.msra.mxu0 %v3868_v44  ;;  %v5899_v56 = vld [vmem:[#allocation108_spill] sm:$0xff] }
  0x98   : > { %1103 = vmatpush1.msra.mxu1 %v3514_v58  ;;  %1030 = vmatprep.subr.mxu0 %v3872_v46  ;;  %v5897_v58 = vld [vmem:[#allocation106_spill] sm:$0xff] }
  0x99   : > { %1104 = vmatprep.subr.mxu1 %v3520_v60  ;;  %1031 = vmatpush1.msra.mxu0 %v3879_v50  ;;  %v5895_v60 = vld [vmem:[#allocation104_spill] sm:$0xff] }
  0x9a   : > { %1064 = vmatprep.mubr.f32.mxu0 %v5528_v54  ;;  %1105 = vmatpush1.msra.mxu1 %v3526_v62  ;;  %v5879_v54 = vld [vmem:[#allocation88_spill] sm:$0xff]  ;;  %v5893_v62 = vld [vmem:[#allocation102_spill] sm:$0xff] }
  0x9b   : > { %1065 = vmatmul.mubr.f32.vlgmr.msra.gmra.mxu0 %v3875_v48  ;;  %1106 = vmatprep.subr.mxu1 %v3532_v53  ;;  %v5891_v53 = vld [vmem:[#allocation100_spill] sm:$0xff] }
  0x9c   : > { %1145 = vmatprep.subr.mxu0 %v3346_v1  ;;  %1107 = vmatpush2.msra.mxu1 %v3538_v55  ;;  %v5889_v55 = vld [vmem:[#allocation98_spill] sm:$0xff] }
  0x9d   : > { %1146 = vmatpush1.msra.mxu0 %v3352_v3  ;;  %1108 = vmatprep.subr.mxu1 %v3544_v57  ;;  %v5887_v57 = vld [vmem:[#allocation96_spill] sm:$0xff] }
  0x9e   : > { %1147 = vmatprep.subr.mxu0 %v3356_v5  ;;  %1109 = vmatpush2.msra.mxu1 %v3550_v59  ;;  %v5885_v59 = vld [vmem:[#allocation94_spill] sm:$0xff] }
  0x9f   : > { %1148 = vmatpush1.msra.mxu0 %v3362_v7  ;;  %1110 = vmatprep.subr.mxu1 %v3556_v61  ;;  %v5883_v61 = vld [vmem:[#allocation92_spill] sm:$0xff] }
  0xa0   : > { %1149 = vmatprep.subr.mxu0 %v3368_v9  ;;  %1111 = vmatpush2.msra.mxu1 %v3562_v63  ;;  %v5881_v63 = vld [vmem:[#allocation90_spill] sm:$0xff] }
  0xa1   : > { %1150 = vmatpush1.msra.mxu0 %v3372_v11  ;;  %1112 = vmatprep.subr.mxu1 %v3568_v51  ;;  %v5880_v51 = vld [vmem:[#allocation25_spill] sm:$0xff] }
  0xa2   : > { %1151 = vmatprep.subr.mxu0 %v3378_v13  ;;  %1113 = vmatpush2.msra.mxu1 %v3574_v49  ;;  %v5882_v49 = vld [vmem:[#allocation27_spill] sm:$0xff] }
  0xa3   : > { %1152 = vmatpush1.msra.mxu0 %v3384_v15  ;;  %1114 = vmatprep.subr.mxu1 %v3580_v47  ;;  %v5884_v47 = vld [vmem:[#allocation29_spill] sm:$0xff] }
  0xa4   : > { %1153 = vmatprep.subr.mxu0 %v3390_v17  ;;  %1115 = vmatpush2.msra.mxu1 %v3586_v45  ;;  %v5886_v45 = vld [vmem:[#allocation31_spill] sm:$0xff] }
  0xa5   : > { %1154 = vmatpush1.msra.mxu0 %v3396_v19  ;;  %1116 = vmatprep.subr.mxu1 %v3592_v43  ;;  %v5888_v43 = vld [vmem:[#allocation33_spill] sm:$0xff] }
  0xa6   : > { %1155 = vmatprep.subr.mxu0 %v5878_v21  ;;  %1117 = vmatpush2.msra.mxu1 %v5879_v54  ;;  %v5890_v54 = vld [vmem:[#allocation35_spill] sm:$0xff] }
  0xa7   : > { %1156 = vmatpush1.msra.mxu0 %v5880_v51  ;;  %1118 = vmatprep.subr.mxu1 %v5881_v63  ;;  %v5892_v63 = vld [vmem:[#allocation37_spill] sm:$0xff] }
  0xa8   : > { %1157 = vmatprep.subr.mxu0 %v5882_v49  ;;  %1119 = vmatpush2.msra.mxu1 %v5883_v61  ;;  %v5894_v61 = vld [vmem:[#allocation39_spill] sm:$0xff] }
  0xa9   : > { %1158 = vmatpush1.msra.mxu0 %v5884_v47  ;;  %1120 = vmatprep.subr.mxu1 %v5885_v59  ;;  %v5896_v59 = vld [vmem:[#allocation41_spill] sm:$0xff] }
  0xaa   : > { %1159 = vmatprep.subr.mxu0 %v5886_v45  ;;  %1121 = vmatpush2.msra.mxu1 %v5887_v57  ;;  %v5898_v57 = vld [vmem:[#allocation43_spill] sm:$0xff] }
  0xab   : > { %1160 = vmatpush1.msra.mxu0 %v5888_v43  ;;  %1122 = vmatprep.subr.mxu1 %v5889_v55  ;;  %v5900_v55 = vld [vmem:[#allocation45_spill] sm:$0xff] }
  0xac   : > { %1161 = vmatprep.subr.mxu0 %v5890_v54  ;;  %1123 = vmatpush2.msra.mxu1 %v5891_v53  ;;  %v5902_v53 = vld [vmem:[#allocation47_spill] sm:$0xff] }
  0xad   : > { %1162 = vmatpush1.msra.mxu0 %v5892_v63  ;;  %1124 = vmatprep.subr.mxu1 %v5893_v62  ;;  %v5903_v63 = vld [vmem:[#allocation112_spill] sm:$0xff]  ;;  %v5904_v62 = vld [vmem:[#allocation49_spill] sm:$0xff] }
  0xae   : > { %1163 = vmatprep.subr.mxu0 %v5894_v61  ;;  %1125 = vmatpush2.msra.mxu1 %v5895_v60  ;;  %v5905_v61 = vld [vmem:[#allocation114_spill] sm:$0xff]  ;;  %v5906_v60 = vld [vmem:[#allocation51_spill] sm:$0xff] }
  0xaf   : > { %1164 = vmatpush1.msra.mxu0 %v5896_v59  ;;  %1126 = vmatprep.subr.mxu1 %v5897_v58  ;;  %v5907_v59 = vld [vmem:[#allocation116_spill] sm:$0xff]  ;;  %v5908_v58 = vld [vmem:[#allocation53_spill] sm:$0xff] }
  0xb0   : > { %1165 = vmatprep.subr.mxu0 %v5898_v57  ;;  %1127 = vmatpush2.msra.mxu1 %v5899_v56  ;;  %v5909_v57 = vld [vmem:[#allocation118_spill] sm:$0xff]  ;;  %v5910_v56 = vld [vmem:[#allocation55_spill] sm:$0xff] }
  0xb1   : > { %1166 = vmatpush1.msra.mxu0 %v5900_v55  ;;  %1128 = vmatprep.subr.mxu1 %v5901_v52  ;;  %v5911_v55 = vld [vmem:[#allocation120_spill] sm:$0xff]  ;;  %v5912_v52 = vld [vmem:[#allocation57_spill] sm:$0xff] }
  0xb2   : > { %1167 = vmatprep.subr.mxu0 %v5902_v53  ;;  %1129 = vmatpush2.msra.mxu1 %v5903_v63  ;;  %v5913_v53 = vld [vmem:[#allocation122_spill] sm:$0xff]  ;;  %v5914_v63 = vld [vmem:[#allocation59_spill] sm:$0xff] }
  0xb3   : > { %1168 = vmatpush1.msra.mxu0 %v5904_v62  ;;  %1130 = vmatprep.subr.mxu1 %v5905_v61  ;;  %v5915_v61 = vld [vmem:[#allocation61_spill] sm:$0xff] }
  0xb4   : > { %1169 = vmatprep.subr.mxu0 %v5906_v60  ;;  %1131 = vmatpush2.msra.mxu1 %v5907_v59  ;;  %v5916_v59 = vld [vmem:[#allocation63_spill] sm:$0xff] }
  0xb5   : > { %1170 = vmatpush1.msra.mxu0 %v5908_v58  ;;  %1132 = vmatprep.subr.mxu1 %v5909_v57  ;;  %v5917_v58 = vld [vmem:[#allocation128_spill] sm:$0xff]  ;;  %v5918_v57 = vld [vmem:[#allocation65_spill] sm:$0xff] }
  0xb6   : > { %1171 = vmatprep.subr.mxu0 %v5910_v56  ;;  %1133 = vmatpush2.msra.mxu1 %v5911_v55  ;;  %v5919_v55 = vld [vmem:[#allocation67_spill] sm:$0xff] }
  0xb7   : > { %1172 = vmatpush1.msra.mxu0 %v5912_v52  ;;  %1134 = vmatprep.subr.mxu1 %v5913_v53  ;;  %v5920_v53 = vld [vmem:[#allocation129_spill] sm:$0xff] }
  0xb8   : > { %1173 = vmatprep.subr.mxu0 %v5914_v63  ;;  %1135 = vmatpush2.msra.mxu1 %v3718_v29  ;;  %v5921_v63 = vld [vmem:[#allocation69_spill] sm:$0xff]  ;;  %v5922_v29 = vld [vmem:[#allocation71_spill] sm:$0xff] }
  0xb9   : > { %1174 = vmatpush1.msra.mxu0 %v5915_v61  ;;  %1136 = vmatprep.subr.mxu1 %v3724_v23  ;;  %v5923_v23 = vld [vmem:[#allocation73_spill] sm:$0xff] }
  0xba   : > { %1175 = vmatprep.subr.mxu0 %v5916_v59  ;;  %1137 = vmatpush2.msra.mxu1 %v5917_v58  ;;  %v5924_v58 = vld [vmem:[#allocation75_spill] sm:$0xff] }
  0xbb   : > { %1176 = vmatpush1.msra.mxu0 %v5918_v57  ;;  %1138 = vmatprep.mubr.f32.mxu1 %v3748_v31  ;;  %v5925_v31 = vld [vmem:[#allocation77_spill] sm:$0xff] }
  0xbc   : > { %1177 = vmatprep.subr.mxu0 %v5919_v55  ;;  %1216 = vmatprep.subr.mxu1 %v3752_v27  ;;  %v5926_v27 = vld [vmem:[#allocation79_spill] sm:$0xff] }
  0xbd   : > { %1139 = vmatmul.mubr.f32.vlgmr.msra.gmra.mxu1 %v5920_v53  ;;  %1178 = vmatpush2.msra.mxu0 %v5921_v63 }
  0xbe   : > { %1217 = vmatpush1.msra.mxu1 %v3756_v25  ;;  %1179 = vmatprep.subr.mxu0 %v5922_v29  ;;  %v5927_v25 = vld [vmem:[#allocation81_spill] sm:$0xff] }
  0xbf   : > { %1218 = vmatprep.subr.mxu1 %v3760_v35  ;;  %1180 = vmatpush2.msra.mxu0 %v5923_v23  ;;  %v5928_v35 = vld [vmem:[#allocation83_spill] sm:$0xff] }
  0xc0   : > { %1219 = vmatpush1.msra.mxu1 %v3764_v37  ;;  %1181 = vmatprep.subr.mxu0 %v5924_v58  ;;  %v5929_v37 = vld [vmem:[#allocation85_spill] sm:$0xff] }
  0xc1   : > { %1220 = vmatprep.subr.mxu1 %v3768_v33  ;;  %1182 = vmatpush2.msra.mxu0 %v5925_v31  ;;  %v5930_v33 = vld [vmem:[#allocation87_spill] sm:$0xff] }
  0xc2   : > { %1221 = vmatpush1.msra.mxu1 %v3772_v39  ;;  %1183 = vmatprep.subr.mxu0 %v5926_v27  ;;  %v5931_v39 = vld [vmem:[#allocation89_spill] sm:$0xff] }
  0xc3   : > { %1222 = vmatprep.subr.mxu1 %v3776_v41  ;;  %1184 = vmatpush2.msra.mxu0 %v5927_v25  ;;  %v5932_v41 = vld [vmem:[#allocation91_spill] sm:$0xff] }
  0xc4   : > { %1223 = vmatpush1.msra.mxu1 %v3780_v0  ;;  %1185 = vmatprep.subr.mxu0 %v5928_v35  ;;  %v5933_v0 = vld [vmem:[#allocation93_spill] sm:$0xff] }
  0xc5   : > { %1224 = vmatprep.subr.mxu1 %v3784_v2  ;;  %1186 = vmatpush2.msra.mxu0 %v5929_v37  ;;  %v5934_v2 = vld [vmem:[#allocation95_spill] sm:$0xff] }
  0xc6   : > { %1225 = vmatpush1.msra.mxu1 %v3788_v4  ;;  %1187 = vmatprep.subr.mxu0 %v5930_v33  ;;  %v5935_v4 = vld [vmem:[#allocation97_spill] sm:$0xff] }
  0xc7   : > { %1226 = vmatprep.subr.mxu1 %v3792_v6  ;;  %1188 = vmatpush2.msra.mxu0 %v5931_v39  ;;  %v5936_v6 = vld [vmem:[#allocation99_spill] sm:$0xff] }
  0xc8   : > { %1227 = vmatpush1.msra.mxu1 %v3796_v8  ;;  %1189 = vmatprep.subr.mxu0 %v5932_v41  ;;  %v5937_v8 = vld [vmem:[#allocation101_spill] sm:$0xff] }
  0xc9   : > { %1228 = vmatprep.subr.mxu1 %v3800_v10  ;;  %1190 = vmatpush2.msra.mxu0 %v5933_v0  ;;  %v5938_v10 = vld [vmem:[#allocation103_spill] sm:$0xff] }
  0xca   : > { %1229 = vmatpush1.msra.mxu1 %v3804_v12  ;;  %1191 = vmatprep.subr.mxu0 %v5934_v2  ;;  %v5939_v12 = vld [vmem:[#allocation105_spill] sm:$0xff] }
  0xcb   : > { %1230 = vmatprep.subr.mxu1 %v3808_v14  ;;  %1192 = vmatpush2.msra.mxu0 %v5935_v4  ;;  %v5940_v14 = vld [vmem:[#allocation107_spill] sm:$0xff] }
  0xcc   : > { %1231 = vmatpush1.msra.mxu1 %v3812_v16  ;;  %1193 = vmatprep.subr.mxu0 %v5936_v6  ;;  %v5941_v16 = vld [vmem:[#allocation109_spill] sm:$0xff] }
  0xcd   : > { %1232 = vmatprep.subr.mxu1 %v3816_v18  ;;  %1194 = vmatpush2.msra.mxu0 %v5937_v8  ;;  %v5942_v18 = vld [vmem:[#allocation111_spill] sm:$0xff] }
  0xce   : > { %1233 = vmatpush1.msra.mxu1 %v3820_v20  ;;  %1195 = vmatprep.subr.mxu0 %v5938_v10  ;;  %v5943_v20 = vld [vmem:[#allocation113_spill] sm:$0xff] }
  0xcf   : > { %1234 = vmatprep.subr.mxu1 %v3824_v22  ;;  %1196 = vmatpush2.msra.mxu0 %v5939_v12  ;;  %v5944_v22 = vld [vmem:[#allocation115_spill] sm:$0xff] }
  0xd0   : > { %1235 = vmatpush1.msra.mxu1 %v3828_v24  ;;  %1197 = vmatprep.subr.mxu0 %v5940_v14  ;;  %v5945_v24 = vld [vmem:[#allocation117_spill] sm:$0xff] }
  0xd1   : > { %1236 = vmatprep.subr.mxu1 %v3832_v26  ;;  %1198 = vmatpush2.msra.mxu0 %v5941_v16  ;;  %v5946_v26 = vld [vmem:[#allocation119_spill] sm:$0xff] }
  0xd2   : > { %1237 = vmatpush1.msra.mxu1 %v3836_v28  ;;  %1199 = vmatprep.subr.mxu0 %v5942_v18  ;;  %v5947_v28 = vld [vmem:[#allocation121_spill] sm:$0xff] }
  0xd3   : > { %1238 = vmatprep.subr.mxu1 %v3840_v30  ;;  %1200 = vmatpush2.msra.mxu0 %v5943_v20  ;;  %v5948_v30 = vld [vmem:[#allocation123_spill] sm:$0xff] }
  0xd4   : > { %1239 = vmatpush1.msra.mxu1 %v3844_v32  ;;  %1201 = vmatprep.subr.mxu0 %v5944_v22  ;;  %v5949_v32 = vld [vmem:[#allocation125_spill] sm:$0xff] }
  0xd5   : > { %1240 = vmatprep.subr.mxu1 %v3848_v34  ;;  %1202 = vmatpush2.msra.mxu0 %v5945_v24  ;;  %v4016_v34 = vrot.slane %v5920_v53, 1  ;;  %v5955_v53 = vld [vmem:[#allocation13_spill] sm:$0xff] }
  0xd6   : > { %1241 = vmatpush1.msra.mxu1 %v3852_v36  ;;  %1203 = vmatprep.subr.mxu0 %v5946_v26  ;;  %v5950_v36 = vld [vmem:[#allocation127_spill] sm:$0xff] }
  0xd7   : > { %1242 = vmatprep.subr.mxu1 %v3856_v38  ;;  %1204 = vmatpush2.msra.mxu0 %v5947_v28  ;;  %v5951_v38 = vld [vmem:[#allocation130_spill] sm:$0xff] }
  0xd8   : > { %1243 = vmatpush1.msra.mxu1 %v3860_v40  ;;  %1205 = vmatprep.subr.mxu0 %v5948_v30  ;;  %v5952_v40 = vld [vmem:[#allocation131_spill] sm:$0xff] }
  0xd9   : > { %1244 = vmatprep.subr.mxu1 %v3864_v42  ;;  %1206 = vmatpush2.msra.mxu0 %v5949_v32  ;;  %v5953_v42 = vmov 0.0   ;;  %v5954_v32 = vld [vmem:[#allocation12_spill] sm:$0xff] }
  0xda   : > { %1245 = vmatpush1.msra.mxu1 %v3868_v44  ;;  %1207 = vmatprep.subr.mxu0 %v5950_v36  ;;  %v5957_v44 = vld [vmem:[#allocation15_spill] sm:$0xff] }
  0xdb   : > { %1246 = vmatprep.subr.mxu1 %v3872_v46  ;;  %1208 = vmatpush2.msra.mxu0 %v5951_v38  ;;  %v5956_v46 = vld [vmem:[#allocation14_spill] sm:$0xff] }
  0xdc   : > { %1209 = vmatprep.mubr.f32.mxu0 %v3875_v48  ;;  %1247 = vmatpush1.msra.mxu1 %v3879_v50  ;;  %v5958_v50 = vld [vmem:[#allocation16_spill] sm:$0xff] }
  0xdd   : > { %1210 = vmatmul.mubr.f32.vlgmr.msra.gmra.mxu0 %v5952_v40  ;;  %1280 = vmatprep.mubr.f32.mxu1 %v5953_v42 }
  0xde   : > { %1290 = vmatprep.subr.mxu0 %v5954_v32  ;;  %1361 = vmatprep.subr.mxu1 %v3346_v1  ;;  %v5959_v32 = vld [vmem:[#allocation17_spill] sm:$0xff]  ;;  %v5960_v1 = vld [vmem:[#allocation18_spill] sm:$0xff] }
  0xdf   : > { %1281 = vmatmul.mubr.f32.vlgmr.msra.gmra.mxu1 %v4016_v34  ;;  %1291 = vmatpush1.msra.mxu0 %v5955_v53  ;;  %v5978_v53 = vld [vmem:[#allocation43_spill] sm:$0xff] }
  0xe0   : > { %1362 = vmatpush1.msra.mxu1 %v3352_v3  ;;  %1292 = vmatprep.subr.mxu0 %v5956_v46  ;;  %v5961_v3 = vld [vmem:[#allocation19_spill] sm:$0xff]  ;;  %v5971_v46 = vld [vmem:[#allocation36_spill] sm:$0xff] }
  0xe1   : > { %1363 = vmatprep.subr.mxu1 %v3356_v5  ;;  %1293 = vmatpush1.msra.mxu0 %v5957_v44  ;;  %v5962_v5 = vld [vmem:[#allocation20_spill] sm:$0xff]  ;;  %v5970_v44 = vld [vmem:[#allocation34_spill] sm:$0xff] }
  0xe2   : > { %1364 = vmatpush1.msra.mxu1 %v3362_v7  ;;  %1294 = vmatprep.subr.mxu0 %v5958_v50  ;;  %v5963_v7 = vld [vmem:[#allocation21_spill] sm:$0xff] }
  0xe3   : > { %1365 = vmatprep.subr.mxu1 %v3368_v9  ;;  %1295 = vmatpush1.msra.mxu0 %v5959_v32  ;;  %v5964_v9 = vld [vmem:[#allocation22_spill] sm:$0xff]  ;;  %v5972_v50 = vld [vmem:[#allocation37_spill] sm:$0xff] }
  0xe4   : > { %1366 = vmatpush1.msra.mxu1 %v3372_v11  ;;  %1296 = vmatprep.subr.mxu0 %v5960_v1  ;;  %v5965_v11 = vld [vmem:[#allocation24_spill] sm:$0xff]  ;;  %v5980_v32 = vld [vmem:[#allocation45_spill] sm:$0xff]  ;;  %v5982_v1 = vld [vmem:[#allocation47_spill] sm:$0xff] }
  0xe5   : > { %1367 = vmatprep.subr.mxu1 %v3378_v13  ;;  %1297 = vmatpush1.msra.mxu0 %v5961_v3  ;;  %v5966_v13 = vld [vmem:[#allocation26_spill] sm:$0xff]  ;;  %v5983_v3 = vld [vmem:[#allocation48_spill] sm:$0xff] }
  0xe6   : > { %1368 = vmatpush1.msra.mxu1 %v3384_v15  ;;  %1298 = vmatprep.subr.mxu0 %v5962_v5  ;;  %v5967_v15 = vld [vmem:[#allocation28_spill] sm:$0xff]  ;;  %v5984_v5 = vld [vmem:[#allocation50_spill] sm:$0xff] }
  0xe7   : > { %1369 = vmatprep.subr.mxu1 %v3390_v17  ;;  %1299 = vmatpush1.msra.mxu0 %v5963_v7  ;;  %v5968_v17 = vld [vmem:[#allocation30_spill] sm:$0xff]  ;;  %v5985_v7 = vld [vmem:[#allocation52_spill] sm:$0xff] }
  0xe8   : > { %1370 = vmatpush1.msra.mxu1 %v3396_v19  ;;  %1300 = vmatprep.subr.mxu0 %v5964_v9  ;;  %v5969_v19 = vld [vmem:[#allocation32_spill] sm:$0xff]  ;;  %v5986_v9 = vld [vmem:[#allocation53_spill] sm:$0xff] }
  0xe9   : > { %1371 = vmatprep.subr.mxu1 %v5878_v21  ;;  %1301 = vmatpush1.msra.mxu0 %v5965_v11  ;;  %v5976_v21 = vld [vmem:[#allocation41_spill] sm:$0xff]  ;;  %v5987_v11 = vld [vmem:[#allocation54_spill] sm:$0xff] }
  0xea   : > { %1372 = vmatpush1.msra.mxu1 %v5880_v51  ;;  %1302 = vmatprep.subr.mxu0 %v5966_v13  ;;  %v5974_v51 = vld [vmem:[#allocation39_spill] sm:$0xff]  ;;  %v5988_v13 = vld [vmem:[#allocation56_spill] sm:$0xff] }
  0xeb   : > { %1373 = vmatprep.subr.mxu1 %v5882_v49  ;;  %1303 = vmatpush1.msra.mxu0 %v5967_v15  ;;  %v5973_v49 = vld [vmem:[#allocation38_spill] sm:$0xff] }
  0xec   : > { %1374 = vmatpush1.msra.mxu1 %v5884_v47  ;;  %1304 = vmatprep.subr.mxu0 %v5968_v17  ;;  %v5975_v47 = vld [vmem:[#allocation40_spill] sm:$0xff]  ;;  %v5989_v15 = vld [vmem:[#allocation58_spill] sm:$0xff]  ;;  %v5990_v17 = vld [vmem:[#allocation59_spill] sm:$0xff] }
  0xed   : > { %1375 = vmatprep.subr.mxu1 %v5886_v45  ;;  %1305 = vmatpush1.msra.mxu0 %v5969_v19  ;;  %v5977_v45 = vld [vmem:[#allocation42_spill] sm:$0xff]  ;;  %v5993_v19 = vld [vmem:[#allocation64_spill] sm:$0xff] }
  0xee   : > { %1376 = vmatpush1.msra.mxu1 %v5888_v43  ;;  %1306 = vmatprep.subr.mxu0 %v5970_v44  ;;  %v5979_v43 = vld [vmem:[#allocation44_spill] sm:$0xff]  ;;  %v5996_v44 = vld [vmem:[#allocation70_spill] sm:$0xff] }
  0xef   : > { %1377 = vmatprep.subr.mxu1 %v5890_v54  ;;  %1307 = vmatpush1.msra.mxu0 %v5971_v46  ;;  %v5981_v54 = vld [vmem:[#allocation46_spill] sm:$0xff]  ;;  %v6024_v46 = vld [vmem:[#allocation125_spill] sm:$0xff] }
  0xf0   : > { %1378 = vmatpush1.msra.mxu1 %v5972_v50  ;;  %1308 = vmatprep.subr.mxu0 %v5973_v49  ;;  %v6029_v50 = vld [vmem:[#allocation134_spill] sm:$0xff] }
  0xf1   : > { %1379 = vmatprep.subr.mxu1 %v5974_v51  ;;  %1309 = vmatpush1.msra.mxu0 %v5975_v47  ;;  %v2938_v49 = vld [vmem:[#allocation2 + $0xf0] sm:$0xff]  ;;  %v2939_v51 = vld [vmem:[#allocation2 + $0xe8] sm:$0xff] }
  0xf2   : > { %1380 = vmatpush1.msra.mxu1 %v5976_v21  ;;  %1310 = vmatprep.subr.mxu0 %v5977_v45  ;;  %v6032_v47 = vld [vmem:[#allocation137_spill] sm:$0xff]  ;;  %v2941_v21 = vld [vmem:[#allocation2 + $0xd8] sm:$0xff] }
  0xf3   : > { %1381 = vmatprep.subr.mxu1 %v5978_v53  ;;  %1311 = vmatpush1.msra.mxu0 %v5979_v43  ;;  %v6033_v45 = vld [vmem:[#allocation138_spill] sm:$0xff]  ;;  %v6034_v43 = vld [vmem:[#allocation139_spill] sm:$0xff] }
  0xf4   : > { %1382 = vmatpush1.msra.mxu1 %v5980_v32  ;;  %1312 = vmatprep.subr.mxu0 %v5981_v54  ;;  %v2942_v53 = vld [vmem:[#allocation2 + $0xd0] sm:$0xff]  ;;  %v2943_v32 = vld [vmem:[#allocation2 + $0xc8] sm:$0xff] }
  0xf5   : > { %1383 = vmatprep.subr.mxu1 %v5982_v1  ;;  %1313 = vmatpush1.msra.mxu0 %v5983_v3  ;;  %v6035_v54 = vld [vmem:[#allocation140_spill] sm:$0xff]  ;;  %v6036_v3 = vld [vmem:[#allocation141_spill] sm:$0xff] }
  0xf6   : > { %1384 = vmatpush1.msra.mxu1 %v5904_v62  ;;  %1314 = vmatprep.subr.mxu0 %v5984_v5  ;;  %v5991_v62 = vld [vmem:[#allocation60_spill] sm:$0xff]  ;;  %v2945_v5 = vld [vmem:[#allocation2 + $0xb8] sm:$0xff] }
  0xf7   : > { %1385 = vmatprep.subr.mxu1 %v5906_v60  ;;  %1315 = vmatpush1.msra.mxu0 %v5985_v7  ;;  %v5992_v60 = vld [vmem:[#allocation62_spill] sm:$0xff]  ;;  %v2944_v1 = vld [vmem:[#allocation2 + $0xc0] sm:$0xff] }
  0xf8   : > { %1386 = vmatpush1.msra.mxu1 %v5986_v9  ;;  %1316 = vmatprep.subr.mxu0 %v5987_v11  ;;  %v6037_v7 = vld [vmem:[#allocation142_spill] sm:$0xff]  ;;  %v6038_v11 = vld [vmem:[#allocation143_spill] sm:$0xff] }
  0xf9   : > { %1387 = vmatprep.subr.mxu1 %v5910_v56  ;;  %1317 = vmatpush1.msra.mxu0 %v5988_v13  ;;  %v5994_v56 = vld [vmem:[#allocation66_spill] sm:$0xff]  ;;  %v2947_v13 = vld [vmem:[#allocation2 + $0xa8] sm:$0xff] }
  0xfa   : > { %1388 = vmatpush1.msra.mxu1 %v5912_v52  ;;  %1318 = vmatprep.subr.mxu0 %v5989_v15  ;;  %v5995_v52 = vld [vmem:[#allocation68_spill] sm:$0xff]  ;;  %v2946_v9 = vld [vmem:[#allocation2 + $0xb0] sm:$0xff] }
  0xfb   : > { %1389 = vmatprep.subr.mxu1 %v5990_v17  ;;  %1319 = vmatpush1.msra.mxu0 %v5991_v62  ;;  %v6039_v15 = vld [vmem:[#allocation144_spill] sm:$0xff]  ;;  %v6040_v62 = vld [vmem:[#allocation145_spill] sm:$0xff] }
  0xfc   : > { %1390 = vmatpush1.msra.mxu1 %v5915_v61  ;;  %1320 = vmatprep.subr.mxu0 %v5992_v60  ;;  %v5997_v61 = vld [vmem:[#allocation72_spill] sm:$0xff]  ;;  %v2949_v60 = vld [vmem:[#allocation2 + $0x98] sm:$0xff] }
  0xfd   : > { %1391 = vmatprep.subr.mxu1 %v5916_v59  ;;  %1321 = vmatpush1.msra.mxu0 %v5993_v19  ;;  %v5998_v59 = vld [vmem:[#allocation74_spill] sm:$0xff]  ;;  %v2948_v17 = vld [vmem:[#allocation2 + $0xa0] sm:$0xff] }
  0xfe   : > { %1392 = vmatpush1.msra.mxu1 %v5918_v57  ;;  %1322 = vmatprep.subr.mxu0 %v5994_v56  ;;  %v5999_v57 = vld [vmem:[#allocation76_spill] sm:$0xff]  ;;  %v6041_v19 = vld [vmem:[#allocation146_spill] sm:$0xff] }
  0xff   : > { %1393 = vmatprep.subr.mxu1 %v5919_v55  ;;  %1323 = vmatpush2.msra.mxu0 %v5995_v52  ;;  %v6000_v55 = vld [vmem:[#allocation78_spill] sm:$0xff]  ;;  %v6042_v52 = vld [vmem:[#allocation147_spill] sm:$0xff] }
 0x100   : > { %1394 = vmatpush2.msra.mxu1 %v5921_v63  ;;  %1324 = vmatprep.subr.mxu0 %v5996_v44  ;;  %v6001_v63 = vld [vmem:[#allocation80_spill] sm:$0xff]  ;;  %v2950_v56 = vld [vmem:[#allocation2 + $0x90] sm:$0xff] }
 0x101   : > { %1395 = vmatprep.subr.mxu1 %v5922_v29  ;;  %1325 = vmatpush2.msra.mxu0 %v5997_v61  ;;  %v6002_v29 = vld [vmem:[#allocation82_spill] sm:$0xff]  ;;  %v2951_v44 = vld [vmem:[#allocation2 + $0x88] sm:$0xff] }
 0x102   : > { %1396 = vmatpush2.msra.mxu1 %v5923_v23  ;;  %1326 = vmatprep.subr.mxu0 %v5998_v59  ;;  %v6003_v23 = vld [vmem:[#allocation84_spill] sm:$0xff] }
 0x103   : > { %1397 = vmatprep.subr.mxu1 %v5924_v58  ;;  %1327 = vmatpush2.msra.mxu0 %v5999_v57  ;;  %v6004_v58 = vld [vmem:[#allocation86_spill] sm:$0xff]  ;;  %v6043_v61 = vld [vmem:[#allocation148_spill] sm:$0xff]  ;;  %v6044_v57 = vld [vmem:[#allocation149_spill] sm:$0xff] }
 0x104   : > { %1398 = vmatpush2.msra.mxu1 %v5925_v31  ;;  %1328 = vmatprep.subr.mxu0 %v6000_v55  ;;  %v6005_v31 = vld [vmem:[#allocation88_spill] sm:$0xff]  ;;  %v2953_v55 = vld [vmem:[#allocation2 + $0x78] sm:$0xff] }
 0x105   : > { %1399 = vmatprep.subr.mxu1 %v5926_v27  ;;  %1329 = vmatpush2.msra.mxu0 %v6001_v63  ;;  %v6006_v27 = vld [vmem:[#allocation90_spill] sm:$0xff]  ;;  %v2952_v59 = vld [vmem:[#allocation2 + $0x80] sm:$0xff] }
 0x106   : > { %1400 = vmatpush2.msra.mxu1 %v5927_v25  ;;  %1330 = vmatprep.subr.mxu0 %v6002_v29  ;;  %v6007_v25 = vld [vmem:[#allocation92_spill] sm:$0xff]  ;;  %v6045_v63 = vld [vmem:[#allocation150_spill] sm:$0xff] }
 0x107   : > { %1401 = vmatprep.subr.mxu1 %v5928_v35  ;;  %1331 = vmatpush2.msra.mxu0 %v6003_v23  ;;  %v6008_v35 = vld [vmem:[#allocation94_spill] sm:$0xff]  ;;  %v6046_v23 = vld [vmem:[#allocation151_spill] sm:$0xff] }
 0x108   : > { %1402 = vmatpush2.msra.mxu1 %v5929_v37  ;;  %1332 = vmatprep.subr.mxu0 %v6004_v58  ;;  %v6009_v37 = vld [vmem:[#allocation96_spill] sm:$0xff]  ;;  %v2954_v29 = vld [vmem:[#allocation2 + $0x70] sm:$0xff] }
 0x109   : > { %1403 = vmatprep.subr.mxu1 %v5930_v33  ;;  %1333 = vmatpush2.msra.mxu0 %v6005_v31  ;;  %v6010_v33 = vld [vmem:[#allocation98_spill] sm:$0xff]  ;;  %v2955_v58 = vld [vmem:[#allocation2 + $0x68] sm:$0xff] }
 0x10a   : > { %1404 = vmatpush2.msra.mxu1 %v5931_v39  ;;  %1334 = vmatprep.subr.mxu0 %v6006_v27  ;;  %v6011_v39 = vld [vmem:[#allocation100_spill] sm:$0xff] }
 0x10b   : > { %1405 = vmatprep.subr.mxu1 %v5932_v41  ;;  %1335 = vmatpush2.msra.mxu0 %v6007_v25  ;;  %v6012_v41 = vld [vmem:[#allocation102_spill] sm:$0xff]  ;;  %v6047_v31 = vld [vmem:[#allocation152_spill] sm:$0xff]  ;;  %v6048_v25 = vld [vmem:[#allocation153_spill] sm:$0xff] }
 0x10c   : > { %1406 = vmatpush2.msra.mxu1 %v5933_v0  ;;  %1336 = vmatprep.subr.mxu0 %v6008_v35  ;;  %v6013_v0 = vld [vmem:[#allocation104_spill] sm:$0xff]  ;;  %v2957_v35 = vld [vmem:[#allocation2 + $0x58] sm:$0xff] }
 0x10d   : > { %1407 = vmatprep.subr.mxu1 %v5934_v2  ;;  %1337 = vmatpush2.msra.mxu0 %v6009_v37  ;;  %v6014_v2 = vld [vmem:[#allocation106_spill] sm:$0xff]  ;;  %v2956_v27 = vld [vmem:[#allocation2 + $0x60] sm:$0xff] }
 0x10e   : > { %1408 = vmatpush2.msra.mxu1 %v5935_v4  ;;  %1338 = vmatprep.subr.mxu0 %v6010_v33  ;;  %v6015_v4 = vld [vmem:[#allocation108_spill] sm:$0xff]  ;;  %v6049_v37 = vld [vmem:[#allocation154_spill] sm:$0xff] }
 0x10f   : > { %1409 = vmatprep.subr.mxu1 %v5936_v6  ;;  %1339 = vmatpush2.msra.mxu0 %v6011_v39  ;;  %v6016_v6 = vld [vmem:[#allocation110_spill] sm:$0xff]  ;;  %v6050_v39 = vld [vmem:[#allocation155_spill] sm:$0xff] }
 0x110   : > { %1410 = vmatpush2.msra.mxu1 %v5937_v8  ;;  %1340 = vmatprep.subr.mxu0 %v6012_v41  ;;  %v6017_v8 = vld [vmem:[#allocation112_spill] sm:$0xff]  ;;  %v2958_v33 = vld [vmem:[#allocation2 + $0x50] sm:$0xff] }
 0x111   : > { %1411 = vmatprep.subr.mxu1 %v5938_v10  ;;  %1341 = vmatpush2.msra.mxu0 %v6013_v0  ;;  %v6018_v10 = vld [vmem:[#allocation114_spill] sm:$0xff]  ;;  %v2959_v41 = vld [vmem:[#allocation2 + $0x48] sm:$0xff] }
 0x112   : > { %1412 = vmatpush2.msra.mxu1 %v5939_v12  ;;  %1342 = vmatprep.subr.mxu0 %v6014_v2  ;;  %v6019_v12 = vld [vmem:[#allocation116_spill] sm:$0xff] }
 0x113   : > { %1413 = vmatprep.subr.mxu1 %v5940_v14  ;;  %1343 = vmatpush2.msra.mxu0 %v6015_v4  ;;  %v6020_v14 = vld [vmem:[#allocation118_spill] sm:$0xff]  ;;  %v6051_v0 = vld [vmem:[#allocation156_spill] sm:$0xff]  ;;  %v6052_v4 = vld [vmem:[#allocation157_spill] sm:$0xff] }
 0x114   : > { %1414 = vmatpush2.msra.mxu1 %v5941_v16  ;;  %1344 = vmatprep.subr.mxu0 %v6016_v6  ;;  %v6021_v16 = vld [vmem:[#allocation120_spill] sm:$0xff]  ;;  %v2961_v6 = vld [vmem:[#allocation2 + $0x38] sm:$0xff] }
 0x115   : > { %1415 = vmatprep.subr.mxu1 %v5942_v18  ;;  %1345 = vmatpush2.msra.mxu0 %v6017_v8  ;;  %v6022_v18 = vld [vmem:[#allocation122_spill] sm:$0xff]  ;;  %v2960_v2 = vld [vmem:[#allocation2 + $0x40] sm:$0xff] }
 0x116   : > { %1416 = vmatpush2.msra.mxu1 %v5943_v20  ;;  %1346 = vmatprep.subr.mxu0 %v6018_v10  ;;  %v6023_v20 = vld [vmem:[#allocation124_spill] sm:$0xff]  ;;  %v6053_v8 = vld [vmem:[#allocation158_spill] sm:$0xff] }
 0x117   : > { %1417 = vmatprep.subr.mxu1 %v5944_v22  ;;  %1347 = vmatpush2.msra.mxu0 %v6019_v12  ;;  %v6025_v22 = vld [vmem:[#allocation126_spill] sm:$0xff]  ;;  %v6054_v12 = vld [vmem:[#allocation159_spill] sm:$0xff] }
 0x118   : > { %1418 = vmatpush2.msra.mxu1 %v5945_v24  ;;  %1348 = vmatprep.subr.mxu0 %v6020_v14  ;;  %v6026_v24 = vld [vmem:[#allocation128_spill] sm:$0xff]  ;;  %v2962_v10 = vld [vmem:[#allocation2 + $0x30] sm:$0xff] }
 0x119   : > { %1419 = vmatprep.subr.mxu1 %v5946_v26  ;;  %1349 = vmatpush2.msra.mxu0 %v6021_v16  ;;  %v6027_v26 = vld [vmem:[#allocation132_spill] sm:$0xff] }
 0x11a   : > { %1420 = vmatpush2.msra.mxu1 %v5947_v28  ;;  %1350 = vmatprep.subr.mxu0 %v6022_v18  ;;  %v6028_v28 = vld [vmem:[#allocation133_spill] sm:$0xff]  ;;  %v6055_v16 = vld [vmem:[#allocation160_spill] sm:$0xff] }
 0x11b   : > { %1421 = vmatprep.subr.mxu1 %v5948_v30  ;;  %1351 = vmatpush2.msra.mxu0 %v6023_v20  ;;  %v2937_v30 = vld [vmem:[#allocation2 + $0xf8] sm:$0xff]  ;;  %v2963_v14 = vld [vmem:[#allocation2 + $0x28] sm:$0xff]  ;;  %v2964_v18 = vld [vmem:[#allocation2 + $0x20] sm:$0xff] }
 0x11c   : > { %1422 = vmatpush2.msra.mxu1 %v6024_v46  ;;  %1352 = vmatprep.subr.mxu0 %v6025_v22  ;;  %v6056_v20 = vld [vmem:[#allocation161_spill] sm:$0xff]  ;;  %v2965_v46 = vld [vmem:[#allocation2 + $0x18] sm:$0xff]  ;;  %v1288_v22 = vrot.slane %v6027_v26, 1 }
 0x11d   : > { %1423 = vmatprep.subr.mxu1 %v5950_v36  ;;  %1353 = vmatpush2.msra.mxu0 %v6026_v24  ;;  %v6030_v36 = vld [vmem:[#allocation135_spill] sm:$0xff]  ;;  %v6057_v24 = vld [vmem:[#allocation162_spill] sm:$0xff] }
 0x11e   : > { %1354 = vmatprep.mubr.f32.mxu0 %v5952_v40  ;;  %1424 = vmatpush2.msra.mxu1 %v5951_v38  ;;  %v6031_v40 = vld [vmem:[#allocation136_spill] sm:$0xff] }
 0x11f   : > { %1425 = vmatprep.mubr.f32.mxu1 %v4016_v34  ;;  %1355 = vmatmul.mubr.f32.vlgmr.msra.gmra.mxu0 %v6027_v26  ;;  %v2940_v38 = vld [vmem:[#allocation2 + $0xe0] sm:$0xff]  ;;  %v4247_v26 = vld [vmem:[#allocation5 + $0x2f0] sm:$0xff] }
 0x120   : > { %1426 = vmatmul.mubr.f32.vlgmr.msra.gmra.mxu1 %v3875_v48  ;;  %1432 = vmatprep.subr.mxu0 %v6028_v28  ;;  %6061 = vst [vmem:[#allocation25_spill] sm:$0xff] %v4247_v26 }
 0x121   : > { %1506 = vmatprep.subr.mxu1 %v2937_v30  ;;  %1433 = vmatpush1.msra.mxu0 %v6029_v50  ;;  %v2966_v30 = vld [vmem:[#allocation2 + $0x10] sm:$0xff] }
 0x122   : > { %1507 = vmatpush1.msra.mxu1 %v2938_v49  ;;  %1434 = vmatprep.subr.mxu0 %v6030_v36  ;;  %v6058_v49 = vld [vmem:[#allocation163_spill] sm:$0xff] }
 0x123   : > { %1508 = vmatprep.subr.mxu1 %v2939_v51  ;;  %1435 = vmatpush1.msra.mxu0 %v6031_v40  ;;  %v2967_v51 = vld [vmem:[#allocation2 + $0x8] sm:$0xff] }
 0x124   : > { %1509 = vmatpush1.msra.mxu1 %v2940_v38  ;;  %1436 = vmatprep.subr.mxu0 %v6032_v47  ;;  %v6059_v38 = vld [vmem:[#allocation164_spill] sm:$0xff] }
 0x125   : > { %1510 = vmatprep.subr.mxu1 %v2941_v21  ;;  %1437 = vmatpush1.msra.mxu0 %v6033_v45  ;;  %v2968_v21 = vld [vmem:[#allocation2] sm:$0xff] }
 0x126   : > { %1511 = vmatpush1.msra.mxu1 %v2942_v53  ;;  %1438 = vmatprep.subr.mxu0 %v6034_v43  ;;  %v2969_v53 = vld [vmem:[#allocation2 + $0x1f8] sm:$0xff] }
 0x127   : > { %1512 = vmatprep.subr.mxu1 %v2943_v32  ;;  %1439 = vmatpush1.msra.mxu0 %v6035_v54  ;;  %v2970_v32 = vld [vmem:[#allocation2 + $0x2f8] sm:$0xff] }
 0x128   : > { %1513 = vmatpush1.msra.mxu1 %v2944_v1  ;;  %1440 = vmatprep.subr.mxu0 %v6036_v3  ;;  %v2971_v1 = vld [vmem:[#allocation2 + $0x1f0] sm:$0xff] }
 0x129   : > { %1514 = vmatprep.subr.mxu1 %v2945_v5  ;;  %1441 = vmatpush1.msra.mxu0 %v6037_v7  ;;  %v2972_v5 = vld [vmem:[#allocation2 + $0x2f0] sm:$0xff] }
 0x12a   : > { %1515 = vmatpush1.msra.mxu1 %v2946_v9  ;;  %1442 = vmatprep.subr.mxu0 %v6038_v11  ;;  %v2973_v9 = vld [vmem:[#allocation2 + $0x1e8] sm:$0xff] }
 0x12b   : > { %1516 = vmatprep.subr.mxu1 %v2947_v13  ;;  %1443 = vmatpush1.msra.mxu0 %v6039_v15  ;;  %v2974_v13 = vld [vmem:[#allocation2 + $0x2e8] sm:$0xff] }
 0x12c   : > { %1517 = vmatpush1.msra.mxu1 %v2948_v17  ;;  %1444 = vmatprep.subr.mxu0 %v6040_v62  ;;  %v2975_v17 = vld [vmem:[#allocation2 + $0x1e0] sm:$0xff] }
 0x12d   : > { %1518 = vmatprep.subr.mxu1 %v2949_v60  ;;  %1445 = vmatpush1.msra.mxu0 %v6041_v19  ;;  %v2976_v60 = vld [vmem:[#allocation2 + $0x2e0] sm:$0xff] }
 0x12e   : > { %1519 = vmatpush1.msra.mxu1 %v2950_v56  ;;  %1446 = vmatprep.subr.mxu0 %v6042_v52  ;;  %v2977_v56 = vld [vmem:[#allocation2 + $0x1d8] sm:$0xff] }
 0x12f   : > { %1520 = vmatprep.subr.mxu1 %v2951_v44  ;;  %1447 = vmatpush1.msra.mxu0 %v6043_v61  ;;  %v2978_v44 = vld [vmem:[#allocation2 + $0x2d8] sm:$0xff] }
 0x130   : > { %1521 = vmatpush1.msra.mxu1 %v2952_v59  ;;  %1448 = vmatprep.subr.mxu0 %v6044_v57  ;;  %v2979_v59 = vld [vmem:[#allocation2 + $0x1d0] sm:$0xff] }
 0x131   : > { %1522 = vmatprep.subr.mxu1 %v2953_v55  ;;  %1449 = vmatpush1.msra.mxu0 %v6045_v63  ;;  %v2980_v55 = vld [vmem:[#allocation2 + $0x2d0] sm:$0xff] }
 0x132   : > { %1523 = vmatpush1.msra.mxu1 %v2954_v29  ;;  %1450 = vmatprep.subr.mxu0 %v6046_v23  ;;  %v2981_v29 = vld [vmem:[#allocation2 + $0x1c8] sm:$0xff] }
 0x133   : > { %1524 = vmatprep.subr.mxu1 %v2955_v58  ;;  %1451 = vmatpush1.msra.mxu0 %v6047_v31  ;;  %v2982_v58 = vld [vmem:[#allocation2 + $0x2c8] sm:$0xff] }
 0x134   : > { %1525 = vmatpush1.msra.mxu1 %v2956_v27  ;;  %1452 = vmatprep.subr.mxu0 %v6048_v25  ;;  %v2983_v27 = vld [vmem:[#allocation2 + $0x1c0] sm:$0xff] }
 0x135   : > { %1526 = vmatprep.subr.mxu1 %v2957_v35  ;;  %1453 = vmatpush1.msra.mxu0 %v6049_v37  ;;  %v2984_v35 = vld [vmem:[#allocation2 + $0x2c0] sm:$0xff] }
 0x136   : > { %1527 = vmatpush1.msra.mxu1 %v2958_v33  ;;  %1454 = vmatprep.subr.mxu0 %v6050_v39  ;;  %v2985_v33 = vld [vmem:[#allocation2 + $0x1b8] sm:$0xff] }
 0x137   : > { %1528 = vmatprep.subr.mxu1 %v2959_v41  ;;  %1455 = vmatpush1.msra.mxu0 %v6051_v0  ;;  %v2986_v41 = vld [vmem:[#allocation2 + $0x2b8] sm:$0xff] }
 0x138   : > { %1529 = vmatpush1.msra.mxu1 %v2960_v2  ;;  %1456 = vmatprep.subr.mxu0 %v6052_v4  ;;  %v2987_v2 = vld [vmem:[#allocation2 + $0x1b0] sm:$0xff] }
 0x139   : > { %1530 = vmatprep.subr.mxu1 %v2961_v6  ;;  %1457 = vmatpush1.msra.mxu0 %v6053_v8  ;;  %v2988_v6 = vld [vmem:[#allocation2 + $0x2b0] sm:$0xff] }
 0x13a   : > { %1531 = vmatpush1.msra.mxu1 %v2962_v10  ;;  %1458 = vmatprep.subr.mxu0 %v6054_v12  ;;  %v2989_v10 = vld [vmem:[#allocation2 + $0x1a8] sm:$0xff] }
 0x13b   : > { %1532 = vmatprep.subr.mxu1 %v2963_v14  ;;  %1459 = vmatpush1.msra.mxu0 %v6055_v16  ;;  %v2990_v14 = vld [vmem:[#allocation2 + $0x2a8] sm:$0xff] }
 0x13c   : > { %1533 = vmatpush1.msra.mxu1 %v2964_v18  ;;  %1460 = vmatprep.subr.mxu0 %v6056_v20  ;;  %v2991_v18 = vld [vmem:[#allocation2 + $0x1a0] sm:$0xff] }
 0x13d   : > { %1534 = vmatprep.subr.mxu1 %v2965_v46  ;;  %1461 = vmatpush1.msra.mxu0 %v6057_v24  ;;  %v2992_v46 = vld [vmem:[#allocation2 + $0x2a0] sm:$0xff] }
 0x13e   : > { %1535 = vmatpush1.msra.mxu1 %v2966_v30  ;;  %1462 = vmatprep.subr.mxu0 %v6058_v49  ;;  %v2993_v30 = vld [vmem:[#allocation2 + $0x198] sm:$0xff] }
 0x13f   : > { %1536 = vmatprep.subr.mxu1 %v2967_v51  ;;  %1463 = vmatpush1.msra.mxu0 %v6059_v38  ;;  %v2994_v51 = vld [vmem:[#allocation2 + $0x298] sm:$0xff] }
 0x140   : > { %1496 = vmatprep.mubr.f32.mxu0 %v5953_v42  ;;  %1537 = vmatpush1.msra.mxu1 %v2968_v21  ;;  %v2995_v21 = vld [vmem:[#allocation2 + $0x190] sm:$0xff] }
 0x141   : > { %1497 = vmatmul.mubr.f32.vlgmr.msra.gmra.mxu0 %v1288_v22  ;;  %1538 = vmatprep.subr.mxu1 %v2969_v53  ;;  %v2996_v53 = vld [vmem:[#allocation2 + $0x290] sm:$0xff] }
 0x142   : > { %1577 = vmatprep.subr.mxu0 %v2970_v32  ;;  %1539 = vmatpush2.msra.mxu1 %v2971_v1  ;;  %v2997_v32 = vld [vmem:[#allocation2 + $0x188] sm:$0xff] }
 0x143   : > { %1578 = vmatpush1.msra.mxu0 %v2972_v5  ;;  %1540 = vmatprep.subr.mxu1 %v2973_v9  ;;  %v2998_v1 = vld [vmem:[#allocation2 + $0x288] sm:$0xff]  ;;  %v2999_v5 = vld [vmem:[#allocation2 + $0x180] sm:$0xff] }
 0x144   : > { %1579 = vmatprep.subr.mxu0 %v2974_v13  ;;  %1541 = vmatpush2.msra.mxu1 %v2975_v17  ;;  %v3000_v9 = vld [vmem:[#allocation2 + $0x280] sm:$0xff]  ;;  %v3001_v13 = vld [vmem:[#allocation2 + $0x178] sm:$0xff] }
 0x145   : > { %1580 = vmatpush1.msra.mxu0 %v2976_v60  ;;  %1542 = vmatprep.subr.mxu1 %v2977_v56  ;;  %v3002_v17 = vld [vmem:[#allocation2 + $0x278] sm:$0xff]  ;;  %v3003_v60 = vld [vmem:[#allocation2 + $0x170] sm:$0xff] }
 0x146   : > { %1581 = vmatprep.subr.mxu0 %v2978_v44  ;;  %1543 = vmatpush2.msra.mxu1 %v2979_v59  ;;  %v3004_v56 = vld [vmem:[#allocation2 + $0x270] sm:$0xff]  ;;  %v3005_v44 = vld [vmem:[#allocation2 + $0x168] sm:$0xff] }
 0x147   : > { %1582 = vmatpush1.msra.mxu0 %v2980_v55  ;;  %1544 = vmatprep.subr.mxu1 %v2981_v29  ;;  %v3006_v59 = vld [vmem:[#allocation2 + $0x268] sm:$0xff]  ;;  %v3007_v55 = vld [vmem:[#allocation2 + $0x160] sm:$0xff] }
 0x148   : > { %1583 = vmatprep.subr.mxu0 %v2982_v58  ;;  %1545 = vmatpush2.msra.mxu1 %v2983_v27  ;;  %v3008_v29 = vld [vmem:[#allocation2 + $0x260] sm:$0xff]  ;;  %v3009_v58 = vld [vmem:[#allocation2 + $0x158] sm:$0xff] }
 0x149   : > { %1584 = vmatpush1.msra.mxu0 %v2984_v35  ;;  %1546 = vmatprep.subr.mxu1 %v2985_v33  ;;  %v3010_v27 = vld [vmem:[#allocation2 + $0x258] sm:$0xff]  ;;  %v3011_v35 = vld [vmem:[#allocation2 + $0x150] sm:$0xff] }
 0x14a   : > { %1585 = vmatprep.subr.mxu0 %v2986_v41  ;;  %1547 = vmatpush2.msra.mxu1 %v2987_v2  ;;  %v3012_v33 = vld [vmem:[#allocation2 + $0x250] sm:$0xff]  ;;  %v3013_v41 = vld [vmem:[#allocation2 + $0x148] sm:$0xff] }
 0x14b   : > { %1586 = vmatpush1.msra.mxu0 %v2988_v6  ;;  %1548 = vmatprep.subr.mxu1 %v2989_v10  ;;  %v3014_v2 = vld [vmem:[#allocation2 + $0x248] sm:$0xff]  ;;  %v3015_v6 = vld [vmem:[#allocation2 + $0x140] sm:$0xff] }
 0x14c   : > { %1587 = vmatprep.subr.mxu0 %v2990_v14  ;;  %1549 = vmatpush2.msra.mxu1 %v2991_v18  ;;  %v3016_v10 = vld [vmem:[#allocation2 + $0x240] sm:$0xff]  ;;  %v3017_v14 = vld [vmem:[#allocation2 + $0x138] sm:$0xff] }
 0x14d   : > { %1588 = vmatpush1.msra.mxu0 %v2992_v46  ;;  %1550 = vmatprep.subr.mxu1 %v2993_v30  ;;  %v3018_v18 = vld [vmem:[#allocation2 + $0x238] sm:$0xff]  ;;  %v3019_v46 = vld [vmem:[#allocation2 + $0x130] sm:$0xff] }
 0x14e   : > { %1589 = vmatprep.subr.mxu0 %v2994_v51  ;;  %1551 = vmatpush2.msra.mxu1 %v2995_v21  ;;  %v3020_v30 = vld [vmem:[#allocation2 + $0x230] sm:$0xff]  ;;  %v3021_v51 = vld [vmem:[#allocation2 + $0x128] sm:$0xff] }
 0x14f   : > { %1590 = vmatpush1.msra.mxu0 %v2996_v53  ;;  %1552 = vmatprep.subr.mxu1 %v2997_v32  ;;  %v3022_v21 = vld [vmem:[#allocation2 + $0x228] sm:$0xff]  ;;  %v3023_v53 = vld [vmem:[#allocation2 + $0x120] sm:$0xff] }
 0x150   : > { %1591 = vmatprep.subr.mxu0 %v2998_v1  ;;  %1553 = vmatpush2.msra.mxu1 %v2999_v5  ;;  %v3024_v32 = vld [vmem:[#allocation2 + $0x220] sm:$0xff]  ;;  %v3025_v1 = vld [vmem:[#allocation2 + $0x118] sm:$0xff] }
 0x151   : > { %1592 = vmatpush1.msra.mxu0 %v3000_v9  ;;  %1554 = vmatprep.subr.mxu1 %v3001_v13  ;;  %v3026_v5 = vld [vmem:[#allocation2 + $0x218] sm:$0xff]  ;;  %v3027_v9 = vld [vmem:[#allocation2 + $0x110] sm:$0xff] }
 0x152   : > { %1593 = vmatprep.subr.mxu0 %v3002_v17  ;;  %1555 = vmatpush2.msra.mxu1 %v3003_v60  ;;  %v3028_v13 = vld [vmem:[#allocation2 + $0x210] sm:$0xff]  ;;  %v3029_v17 = vld [vmem:[#allocation2 + $0x108] sm:$0xff] }
 0x153   : > { %1594 = vmatpush1.msra.mxu0 %v3004_v56  ;;  %1556 = vmatprep.subr.mxu1 %v3005_v44  ;;  %v3030_v60 = vld [vmem:[#allocation2 + $0x208] sm:$0xff]  ;;  %v3031_v56 = vld [vmem:[#allocation2 + $0x100] sm:$0xff] }
 0x154   : > { %1595 = vmatprep.subr.mxu0 %v3006_v59  ;;  %1557 = vmatpush2.msra.mxu1 %v3007_v55  ;;  %v3032_v44 = vld [vmem:[#allocation2 + $0x200] sm:$0xff]  ;;  %v3033_v59 = vld [vmem:[#allocation2 + $0x3f8] sm:$0xff] }
 0x155   : > { %1596 = vmatpush1.msra.mxu0 %v3008_v29  ;;  %1558 = vmatprep.subr.mxu1 %v3009_v58  ;;  %v4197_v55 = vld [vmem:[%s3714_s15 + $0x18] sm:$0xff]  ;;  %v3035_v29 = vld [vmem:[#allocation2 + $0x3f0] sm:$0xff]  ;;  %v3036_v58 = vld [vmem:[#allocation2 + $0x3e8] sm:$0xff]  ;;  %s2542_s15 = scalar_lea.sflag [#allocation4], %s407_s24 }
 0x156   : > { %1597 = vmatprep.subr.mxu0 %v3010_v27  ;;  %1559 = vmatpush2.msra.mxu1 %v3011_v35  ;;  %v3037_v27 = vld [vmem:[#allocation2 + $0x3e0] sm:$0xff]  ;;  %v3040_v35 = vld [vmem:[#allocation2 + $0x3c8] sm:$0xff] }
 0x157   : > { %1598 = vmatpush1.msra.mxu0 %v3012_v33  ;;  %1560 = vmatprep.subr.mxu1 %v3013_v41  ;;  %v3064_v33 = vld [vmem:[#allocation2 + $0x308] sm:$0xff]  ;;  %v4259_v41 = vld [vmem:[#allocation5 + $0x2e0] sm:$0xff] }
 0x158   : > { %1599 = vmatprep.subr.mxu0 %v3014_v2  ;;  %1561 = vmatpush2.msra.mxu1 %v3015_v6  ;;  %6063 = vst [vmem:[#allocation29_spill] sm:$0xff] %v4259_v41  ;;  %v4261_v2 = vld [vmem:[#allocation5 + $0x2d8] sm:$0xff]  ;;  %v4265_v6 = vld [vmem:[#allocation5 + $0xc8] sm:$0xff] }
 0x159   : > { %1600 = vmatpush1.msra.mxu0 %v3016_v10  ;;  %1562 = vmatprep.subr.mxu1 %v3017_v14  ;;  %6064 = vst [vmem:[#allocation31_spill] sm:$0xff] %v4261_v2  ;;  %v4267_v10 = vld [vmem:[#allocation5 + $0x2d0] sm:$0xff]  ;;  %v4271_v14 = vld [vmem:[#allocation5 + $0xc0] sm:$0xff] }
 0x15a   : > { %1601 = vmatprep.subr.mxu0 %v3018_v18  ;;  %1563 = vmatpush2.msra.mxu1 %v3019_v46  ;;  %6065 = vst [vmem:[#allocation33_spill] sm:$0xff] %v4267_v10  ;;  %v4273_v18 = vld [vmem:[#allocation5 + $0x2c8] sm:$0xff]  ;;  %v4277_v46 = vld [vmem:[#allocation5 + $0xb8] sm:$0xff] }
 0x15b   : > { %1602 = vmatpush1.msra.mxu0 %v3020_v30  ;;  %1564 = vmatprep.subr.mxu1 %v3021_v51  ;;  %6066 = vst [vmem:[#allocation35_spill] sm:$0xff] %v4273_v18  ;;  %v4279_v30 = vld [vmem:[#allocation5 + $0x2c0] sm:$0xff]  ;;  %v4283_v51 = vld [vmem:[#allocation5 + $0xb0] sm:$0xff] }
 0x15c   : > { %1603 = vmatprep.subr.mxu0 %v3022_v21  ;;  %1565 = vmatpush2.msra.mxu1 %v3023_v53  ;;  %6067 = vst [vmem:[#allocation49_spill] sm:$0xff] %v4279_v30  ;;  %v4285_v21 = vld [vmem:[#allocation5 + $0x2b8] sm:$0xff]  ;;  %v4289_v53 = vld [vmem:[#allocation5 + $0xa8] sm:$0xff] }
 0x15d   : > { %1604 = vmatpush1.msra.mxu0 %v3024_v32  ;;  %1566 = vmatprep.subr.mxu1 %v3025_v1  ;;  %6068 = vst [vmem:[#allocation51_spill] sm:$0xff] %v4285_v21  ;;  %v4291_v32 = vld [vmem:[#allocation5 + $0x2b0] sm:$0xff]  ;;  %v4295_v1 = vld [vmem:[#allocation5 + $0xa0] sm:$0xff] }
 0x15e   : > { %1605 = vmatprep.subr.mxu0 %v3026_v5  ;;  %1567 = vmatpush2.msra.mxu1 %v3027_v9  ;;  %6069 = vst [vmem:[#allocation55_spill] sm:$0xff] %v4291_v32  ;;  %v4297_v5 = vld [vmem:[#allocation5 + $0x2a8] sm:$0xff]  ;;  %v4301_v9 = vld [vmem:[#allocation5 + $0x98] sm:$0xff] }
 0x15f   : > { %1606 = vmatpush1.msra.mxu0 %v3028_v13  ;;  %1568 = vmatprep.subr.mxu1 %v3029_v17  ;;  %6070 = vst [vmem:[#allocation57_spill] sm:$0xff] %v4297_v5  ;;  %v4303_v13 = vld [vmem:[#allocation5 + $0x2a0] sm:$0xff]  ;;  %v4307_v17 = vld [vmem:[#allocation5 + $0x90] sm:$0xff] }
 0x160   : > { %1607 = vmatprep.subr.mxu0 %v3030_v60  ;;  %1569 = vmatpush2.msra.mxu1 %v3031_v56  ;;  %6071 = vst [vmem:[#allocation61_spill] sm:$0xff] %v4303_v13  ;;  %v4309_v60 = vld [vmem:[#allocation5 + $0x298] sm:$0xff]  ;;  %v4313_v56 = vld [vmem:[#allocation5 + $0x88] sm:$0xff] }
 0x161   : > { %1608 = vmatpush1.msra.mxu0 %v3032_v44  ;;  %1570 = vmatprep.mubr.f32.mxu1 %v3875_v48  ;;  %v3038_v48 = vld [vmem:[#allocation2 + $0x3d8] sm:$0xff]  ;;  %6072 = vst [vmem:[#allocation63_spill] sm:$0xff] %v4309_v60  ;;  %v4315_v44 = vld [vmem:[#allocation5 + $0x290] sm:$0xff] }
 0x162   : > { %1609 = vmatprep.subr.mxu0 %v3033_v59  ;;  %1648 = vmatprep.subr.mxu1 %v6028_v28  ;;  %v3039_v28 = vld [vmem:[#allocation2 + $0x3d0] sm:$0xff]  ;;  %6073 = vst [vmem:[#allocation65_spill] sm:$0xff] %v4315_v44  ;;  %v4319_v59 = vld [vmem:[#allocation5 + $0x80] sm:$0xff] }
 0x163   : > { %1571 = vmatmul.mubr.f32.vlgmr.msra.gmra.mxu1 %v4197_v55  ;;  %1610 = vmatpush2.msra.mxu0 %v3035_v29  ;;  %v4325_v29 = vld [vmem:[#allocation5 + $0x78] sm:$0xff] }
 0x164   : > { %1649 = vmatpush1.msra.mxu1 %v6029_v50  ;;  %1611 = vmatprep.subr.mxu0 %v3036_v58  ;;  %v3041_v50 = vld [vmem:[#allocation2 + $0x3c0] sm:$0xff] }
 0x165   : > { %1650 = vmatprep.subr.mxu1 %v6030_v36  ;;  %1612 = vmatpush2.msra.mxu0 %v3037_v27  ;;  %v3042_v36 = vld [vmem:[#allocation2 + $0x3b8] sm:$0xff]  ;;  %v4327_v58 = vld [vmem:[#allocation5 + $0x280] sm:$0xff]  ;;  %v4331_v27 = vld [vmem:[#allocation5 + $0x70] sm:$0xff] }
 0x166   : > { %1651 = vmatpush1.msra.mxu1 %v6031_v40  ;;  %1613 = vmatprep.subr.mxu0 %v3038_v48  ;;  %v3043_v40 = vld [vmem:[#allocation2 + $0x3b0] sm:$0xff]  ;;  %6075 = vst [vmem:[#allocation129_spill] sm:$0xff] %v4327_v58  ;;  %v4333_v48 = vld [vmem:[#allocation5 + $0x278] sm:$0xff] }
 0x167   : > { %1652 = vmatprep.subr.mxu1 %v6032_v47  ;;  %1614 = vmatpush2.msra.mxu0 %v3039_v28  ;;  %v3044_v47 = vld [vmem:[#allocation2 + $0x3a8] sm:$0xff]  ;;  %6076 = vst [vmem:[#allocation69_spill] sm:$0xff] %v4333_v48 }
 0x168   : > { %1653 = vmatpush1.msra.mxu1 %v6033_v45  ;;  %1615 = vmatprep.subr.mxu0 %v3040_v35  ;;  %v3045_v45 = vld [vmem:[#allocation2 + $0x3a0] sm:$0xff]  ;;  %v4337_v28 = vld [vmem:[#allocation5 + $0x68] sm:$0xff]  ;;  %v4339_v35 = vld [vmem:[#allocation5 + $0x270] sm:$0xff] }
 0x169   : > { %1654 = vmatprep.subr.mxu1 %v6034_v43  ;;  %1616 = vmatpush2.msra.mxu0 %v3041_v50  ;;  %v3046_v43 = vld [vmem:[#allocation2 + $0x398] sm:$0xff]  ;;  %6077 = vst [vmem:[#allocation71_spill] sm:$0xff] %v4339_v35  ;;  %v4343_v50 = vld [vmem:[#allocation5 + $0x60] sm:$0xff] }
 0x16a   : > { %1655 = vmatpush1.msra.mxu1 %v6035_v54  ;;  %1617 = vmatprep.subr.mxu0 %v3042_v36  ;;  %v3047_v54 = vld [vmem:[#allocation2 + $0x390] sm:$0xff]  ;;  %v4350_v36 = vld [vmem:[#allocation5 + $0x58] sm:$0xff] }
 0x16b   : > { %1656 = vmatprep.subr.mxu1 %v6036_v3  ;;  %1618 = vmatpush2.msra.mxu0 %v3043_v40  ;;  %v3048_v3 = vld [vmem:[#allocation2 + $0x388] sm:$0xff] }
 0x16c   : > { %1657 = vmatpush1.msra.mxu1 %v6037_v7  ;;  %1619 = vmatprep.subr.mxu0 %v3044_v47  ;;  %v3049_v7 = vld [vmem:[#allocation2 + $0x380] sm:$0xff]  ;;  %v4352_v40 = vld [vmem:[#allocation5 + $0x268] sm:$0xff]  ;;  %v4354_v47 = vld [vmem:[#allocation5 + $0x50] sm:$0xff] }
 0x16d   : > { %1658 = vmatprep.subr.mxu1 %v6038_v11  ;;  %1620 = vmatpush2.msra.mxu0 %v3045_v45  ;;  %v3050_v11 = vld [vmem:[#allocation2 + $0x378] sm:$0xff]  ;;  %6078 = vst [vmem:[#allocation73_spill] sm:$0xff] %v4352_v40  ;;  %v4358_v45 = vld [vmem:[#allocation5 + $0x260] sm:$0xff] }
 0x16e   : > { %1659 = vmatpush1.msra.mxu1 %v6039_v15  ;;  %1621 = vmatprep.subr.mxu0 %v3046_v43  ;;  %v3051_v15 = vld [vmem:[#allocation2 + $0x370] sm:$0xff]  ;;  %6079 = vst [vmem:[#allocation75_spill] sm:$0xff] %v4358_v45  ;;  %v4362_v43 = vld [vmem:[#allocation5 + $0x48] sm:$0xff] }
 0x16f   : > { %1660 = vmatprep.subr.mxu1 %v6040_v62  ;;  %1622 = vmatpush2.msra.mxu0 %v3047_v54  ;;  %v3052_v62 = vld [vmem:[#allocation2 + $0x368] sm:$0xff]  ;;  %v4364_v54 = vld [vmem:[#allocation5 + $0x258] sm:$0xff] }
 0x170   : > { %1661 = vmatpush1.msra.mxu1 %v6041_v19  ;;  %1623 = vmatprep.subr.mxu0 %v3048_v3  ;;  %v3053_v19 = vld [vmem:[#allocation2 + $0x360] sm:$0xff]  ;;  %6080 = vst [vmem:[#allocation77_spill] sm:$0xff] %v4364_v54 }
 0x171   : > { %1662 = vmatprep.subr.mxu1 %v6042_v52  ;;  %1624 = vmatpush2.msra.mxu0 %v3049_v7  ;;  %v3054_v52 = vld [vmem:[#allocation2 + $0x358] sm:$0xff]  ;;  %v4366_v3 = vld [vmem:[#allocation5 + $0x40] sm:$0xff]  ;;  %v4370_v7 = vld [vmem:[#allocation5 + $0x250] sm:$0xff] }
 0x172   : > { %1663 = vmatpush1.msra.mxu1 %v6043_v61  ;;  %1625 = vmatprep.subr.mxu0 %v3050_v11  ;;  %v3055_v61 = vld [vmem:[#allocation2 + $0x350] sm:$0xff]  ;;  %6081 = vst [vmem:[#allocation79_spill] sm:$0xff] %v4370_v7  ;;  %v4372_v11 = vld [vmem:[#allocation5 + $0x38] sm:$0xff] }
 0x173   : > { %1664 = vmatprep.subr.mxu1 %v6044_v57  ;;  %1626 = vmatpush2.msra.mxu0 %v3051_v15  ;;  %v3056_v57 = vld [vmem:[#allocation2 + $0x348] sm:$0xff] }
 0x174   : > { %1665 = vmatpush1.msra.mxu1 %v6045_v63  ;;  %1627 = vmatprep.subr.mxu0 %v3052_v62  ;;  %v3057_v63 = vld [vmem:[#allocation2 + $0x340] sm:$0xff]  ;;  %v4374_v15 = vld [vmem:[#allocation5 + $0x248] sm:$0xff]  ;;  %v4378_v62 = vld [vmem:[#allocation5 + $0x30] sm:$0xff] }
 0x175   : > { %1666 = vmatprep.subr.mxu1 %v6046_v23  ;;  %1628 = vmatpush2.msra.mxu0 %v3053_v19  ;;  %v3058_v23 = vld [vmem:[#allocation2 + $0x338] sm:$0xff]  ;;  %6082 = vst [vmem:[#allocation81_spill] sm:$0xff] %v4374_v15  ;;  %v4380_v19 = vld [vmem:[#allocation5 + $0x240] sm:$0xff] }
 0x176   : > { %1667 = vmatpush1.msra.mxu1 %v6047_v31  ;;  %1629 = vmatprep.subr.mxu0 %v3054_v52  ;;  %v3059_v31 = vld [vmem:[#allocation2 + $0x330] sm:$0xff]  ;;  %6083 = vst [vmem:[#allocation83_spill] sm:$0xff] %v4380_v19  ;;  %v4382_v52 = vld [vmem:[#allocation5 + $0x28] sm:$0xff] }
 0x177   : > { %1668 = vmatprep.subr.mxu1 %v6048_v25  ;;  %1630 = vmatpush2.msra.mxu0 %v3055_v61  ;;  %v3060_v25 = vld [vmem:[#allocation2 + $0x328] sm:$0xff]  ;;  %v4386_v61 = vld [vmem:[#allocation5 + $0x238] sm:$0xff] }
 0x178   : > { %1669 = vmatpush1.msra.mxu1 %v6049_v37  ;;  %1631 = vmatprep.subr.mxu0 %v3056_v57  ;;  %v3061_v37 = vld [vmem:[#allocation2 + $0x320] sm:$0xff]  ;;  %6084 = vst [vmem:[#allocation85_spill] sm:$0xff] %v4386_v61 }
 0x179   : > { %1670 = vmatprep.subr.mxu1 %v6050_v39  ;;  %1632 = vmatpush2.msra.mxu0 %v3057_v63  ;;  %v3062_v39 = vld [vmem:[#allocation2 + $0x318] sm:$0xff]  ;;  %v4388_v57 = vld [vmem:[#allocation5 + $0x20] sm:$0xff]  ;;  %v4390_v63 = vld [vmem:[#allocation5 + $0x230] sm:$0xff] }
 0x17a   : > { %1671 = vmatpush1.msra.mxu1 %v6051_v0  ;;  %1633 = vmatprep.subr.mxu0 %v3058_v23  ;;  %v3063_v0 = vld [vmem:[#allocation2 + $0x310] sm:$0xff]  ;;  %6085 = vst [vmem:[#allocation87_spill] sm:$0xff] %v4390_v63  ;;  %v4394_v23 = vld [vmem:[#allocation5 + $0x18] sm:$0xff] }
 0x17b   : > { %1672 = vmatprep.subr.mxu1 %v6052_v4  ;;  %1634 = vmatpush2.msra.mxu0 %v3059_v31  ;;  %v1504_v4 = vrot.slane %v4197_v55, 1  ;;  %v4321_v55 = vld [vmem:[#allocation5 + $0x288] sm:$0xff]  ;;  %6086 = vst [vmem:[#allocation89_spill] sm:$0xff] %v4394_v23 }
 0x17c   : > { %1673 = vmatpush1.msra.mxu1 %v6053_v8  ;;  %1635 = vmatprep.subr.mxu0 %v3060_v25  ;;  %v3065_v8 = vld [vmem:[#allocation2 + $0x300] sm:$0xff]  ;;  %6074 = vst [vmem:[#allocation67_spill] sm:$0xff] %v4321_v55  ;;  %v4396_v31 = vld [vmem:[#allocation5 + $0x228] sm:$0xff]  ;;  %v4400_v25 = vld [vmem:[#allocation5 + $0x10] sm:$0xff] }
 0x17d   : > { %1674 = vmatprep.subr.mxu1 %v6054_v12  ;;  %1636 = vmatpush2.msra.mxu0 %v3061_v37  ;;  %v4236_v12 = vld [vmem:[#allocation5 + $0xf8] sm:$0xff]  ;;  %6087 = vst [vmem:[#allocation91_spill] sm:$0xff] %v4396_v31  ;;  %6088 = vst [vmem:[#allocation93_spill] sm:$0xff] %v4400_v25  ;;  %v4402_v37 = vld [vmem:[#allocation5 + $0x220] sm:$0xff] }
 0x17e   : > { %1675 = vmatpush1.msra.mxu1 %v6055_v16  ;;  %1637 = vmatprep.subr.mxu0 %v3062_v39  ;;  %v4238_v16 = vld [vmem:[#allocation5 + $0xf0] sm:$0xff]  ;;  %6089 = vst [vmem:[#allocation95_spill] sm:$0xff] %v4402_v37  ;;  %v4406_v39 = vld [vmem:[#allocation5 + $0x8] sm:$0xff] }
 0x17f   : > { %1676 = vmatprep.subr.mxu1 %v6056_v20  ;;  %1638 = vmatpush2.msra.mxu0 %v3063_v0  ;;  %v4240_v20 = vld [vmem:[#allocation5 + $0xe8] sm:$0xff]  ;;  %6090 = vst [vmem:[#allocation97_spill] sm:$0xff] %v4406_v39  ;;  %v4408_v0 = vld [vmem:[#allocation5 + $0x218] sm:$0xff] }
 0x180   : > { %1677 = vmatpush1.msra.mxu1 %v6057_v24  ;;  %1639 = vmatprep.subr.mxu0 %v3064_v33  ;;  %v4243_v24 = vld [vmem:[#allocation5 + $0x2f8] sm:$0xff]  ;;  %6091 = vst [vmem:[#allocation99_spill] sm:$0xff] %v4408_v0  ;;  %v4414_v33 = vld [vmem:[#allocation5 + $0x210] sm:$0xff] }
 0x181   : > { %1678 = vmatprep.subr.mxu1 %v6058_v49  ;;  %1640 = vmatpush2.msra.mxu0 %v3065_v8  ;;  %6060 = vst [vmem:[#allocation23_spill] sm:$0xff] %v4243_v24  ;;  %v4245_v49 = vld [vmem:[#allocation5 + $0xe0] sm:$0xff]  ;;  %6093 = vst [vmem:[#allocation103_spill] sm:$0xff] %v4414_v33  ;;  %v4418_v8 = vld [vmem:[#allocation5 + $0x1f8] sm:$0xff] }
 0x182   : > { %1641 = vmatprep.mubr.f32.mxu0 %v1288_v22  ;;  %1679 = vmatpush1.msra.mxu1 %v6059_v38  ;;  %v4253_v22 = vld [vmem:[#allocation5 + $0x2e8] sm:$0xff]  ;;  %v4257_v38 = vld [vmem:[#allocation5 + $0xd0] sm:$0xff]  ;;  %6094 = vst [vmem:[#allocation105_spill] sm:$0xff] %v4418_v8 }
 0x183   : > { %1712 = vmatprep.mubr.f32.mxu1 %v5953_v42  ;;  %1642 = vmatmul.mubr.f32.vlgmr.msra.gmra.mxu0 %v4016_v34  ;;  %v4251_v34 = vld [vmem:[#allocation5 + $0xd8] sm:$0xff]  ;;  %6062 = vst [vmem:[#allocation27_spill] sm:$0xff] %v4253_v22 }
 0x184   : > { %1713 = vmatmul.mubr.f32.vlgmr.msra.gmra.mxu1 %v1504_v4  ;;  %1741 = vmatprep.subr.mxu0 %v4236_v12  ;;  %v4412_v4 = vld [vmem:[#allocation5] sm:$0xff] }
 0x185   : > { %1742 = vmatpush1.msra.mxu0 %v4238_v16  ;;  %1812 = vmatprep.subr.mxu1 %v4243_v24  ;;  %6092 = vst [vmem:[#allocation101_spill] sm:$0xff] %v4412_v4 }
 0x186   : > { %1743 = vmatprep.subr.mxu0 %v4240_v20  ;;  %1813 = vmatpush1.msra.mxu1 %v4247_v26 }
 0x187   : > { %1744 = vmatpush1.msra.mxu0 %v4245_v49  ;;  %1814 = vmatprep.subr.mxu1 %v4253_v22 }
 0x188   : > { %1745 = vmatprep.subr.mxu0 %v4251_v34  ;;  %1815 = vmatpush1.msra.mxu1 %v4259_v41 }
 0x189   : > { %1746 = vmatpush1.msra.mxu0 %v4257_v38  ;;  %1816 = vmatprep.subr.mxu1 %v4261_v2 }
 0x18a   : > { %1747 = vmatprep.subr.mxu0 %v4265_v6  ;;  %1817 = vmatpush1.msra.mxu1 %v4267_v10 }
 0x18b   : > { %1748 = vmatpush1.msra.mxu0 %v4271_v14  ;;  %1818 = vmatprep.subr.mxu1 %v4273_v18 }
 0x18c   : > { %1749 = vmatprep.subr.mxu0 %v4277_v46  ;;  %1819 = vmatpush1.msra.mxu1 %v4279_v30 }
 0x18d   : > { %1750 = vmatpush1.msra.mxu0 %v4283_v51  ;;  %1820 = vmatprep.subr.mxu1 %v4285_v21 }
 0x18e   : > { %1751 = vmatprep.subr.mxu0 %v4289_v53  ;;  %1821 = vmatpush1.msra.mxu1 %v4291_v32 }
 0x18f   : > { %1752 = vmatpush1.msra.mxu0 %v4295_v1  ;;  %1822 = vmatprep.subr.mxu1 %v4297_v5 }
 0x190   : > { %1753 = vmatprep.subr.mxu0 %v4301_v9  ;;  %1823 = vmatpush1.msra.mxu1 %v4303_v13  ;;  %v4498_v13 = vld [vmem:[#allocation5 + $0x3a0] sm:$0xff] }
 0x191   : > { %1754 = vmatpush1.msra.mxu0 %v4307_v17  ;;  %1824 = vmatprep.subr.mxu1 %v4309_v60  ;;  %v4492_v60 = vld [vmem:[#allocation5 + $0x3a8] sm:$0xff]  ;;  %6121 = vst [vmem:[#allocation30_spill] sm:$0xff] %v4498_v13 }
 0x192   : > { %1755 = vmatprep.subr.mxu0 %v4313_v56  ;;  %1825 = vmatpush1.msra.mxu1 %v4315_v44  ;;  %v4486_v44 = vld [vmem:[#allocation5 + $0x3b0] sm:$0xff]  ;;  %6119 = vst [vmem:[#allocation26_spill] sm:$0xff] %v4492_v60 }
 0x193   : > { %1756 = vmatpush1.msra.mxu0 %v4319_v59  ;;  %1826 = vmatprep.subr.mxu1 %v4321_v55  ;;  %v4480_v55 = vld [vmem:[#allocation5 + $0x3b8] sm:$0xff]  ;;  %6117 = vst [vmem:[#allocation22_spill] sm:$0xff] %v4486_v44 }
 0x194   : > { %1757 = vmatprep.subr.mxu0 %v4325_v29  ;;  %1827 = vmatpush1.msra.mxu1 %v4327_v58  ;;  %v4474_v58 = vld [vmem:[#allocation5 + $0x3c0] sm:$0xff]  ;;  %6115 = vst [vmem:[#allocation20_spill] sm:$0xff] %v4480_v55 }
 0x195   : > { %1758 = vmatpush1.msra.mxu0 %v4331_v27  ;;  %1828 = vmatprep.subr.mxu1 %v4333_v48  ;;  %v4468_v48 = vld [vmem:[#allocation5 + $0x3c8] sm:$0xff]  ;;  %6113 = vst [vmem:[#allocation18_spill] sm:$0xff] %v4474_v58 }
 0x196   : > { %1759 = vmatprep.subr.mxu0 %v4337_v28  ;;  %1829 = vmatpush1.msra.mxu1 %v4339_v35  ;;  %v4462_v35 = vld [vmem:[#allocation5 + $0x3d0] sm:$0xff]  ;;  %6111 = vst [vmem:[#allocation16_spill] sm:$0xff] %v4468_v48 }
 0x197   : > { %1760 = vmatpush1.msra.mxu0 %v4343_v50  ;;  %1830 = vmatprep.subr.mxu1 %v4352_v40  ;;  %v4456_v40 = vld [vmem:[#allocation5 + $0x3d8] sm:$0xff]  ;;  %6109 = vst [vmem:[#allocation14_spill] sm:$0xff] %v4462_v35 }
 0x198   : > { %1761 = vmatprep.subr.mxu0 %v4350_v36  ;;  %1831 = vmatpush1.msra.mxu1 %v4358_v45  ;;  %v4450_v45 = vld [vmem:[#allocation5 + $0x3e0] sm:$0xff]  ;;  %6107 = vst [vmem:[#allocation12_spill] sm:$0xff] %v4456_v40 }
 0x199   : > { %1762 = vmatpush1.msra.mxu0 %v4354_v47  ;;  %1832 = vmatprep.subr.mxu1 %v4364_v54  ;;  %v4444_v54 = vld [vmem:[#allocation5 + $0x3e8] sm:$0xff]  ;;  %6105 = vst [vmem:[#allocation130_spill] sm:$0xff] %v4450_v45 }
 0x19a   : > { %1763 = vmatprep.subr.mxu0 %v4362_v43  ;;  %1833 = vmatpush1.msra.mxu1 %v4370_v7  ;;  %v4438_v7 = vld [vmem:[#allocation5 + $0x3f0] sm:$0xff]  ;;  %6103 = vst [vmem:[#allocation123_spill] sm:$0xff] %v4444_v54 }
 0x19b   : > { %1764 = vmatpush1.msra.mxu0 %v4366_v3  ;;  %1834 = vmatprep.subr.mxu1 %v4374_v15  ;;  %v4432_v15 = vld [vmem:[#allocation5 + $0x3f8] sm:$0xff]  ;;  %6101 = vst [vmem:[#allocation119_spill] sm:$0xff] %v4438_v7 }
 0x19c   : > { %1765 = vmatprep.subr.mxu0 %v4372_v11  ;;  %1835 = vmatpush1.msra.mxu1 %v4380_v19  ;;  %v4426_v19 = vld [vmem:[#allocation5 + $0x200] sm:$0xff]  ;;  %6099 = vst [vmem:[#allocation115_spill] sm:$0xff] %v4432_v15 }
 0x19d   : > { %1766 = vmatpush1.msra.mxu0 %v4378_v62  ;;  %1836 = vmatprep.subr.mxu1 %v4386_v61  ;;  %v4420_v61 = vld [vmem:[#allocation5 + $0x208] sm:$0xff]  ;;  %6097 = vst [vmem:[#allocation111_spill] sm:$0xff] %v4426_v19 }
 0x19e   : > { %1767 = vmatprep.subr.mxu0 %v4382_v52  ;;  %1837 = vmatpush1.msra.mxu1 %v4390_v63  ;;  %6095 = vst [vmem:[#allocation107_spill] sm:$0xff] %v4420_v61  ;;  %v4424_v63 = vld [vmem:[#allocation5 + $0x1f0] sm:$0xff] }
 0x19f   : > { %1768 = vmatpush1.msra.mxu0 %v4388_v57  ;;  %1838 = vmatprep.subr.mxu1 %v4396_v31  ;;  %6096 = vst [vmem:[#allocation109_spill] sm:$0xff] %v4424_v63  ;;  %v4430_v31 = vld [vmem:[#allocation5 + $0x1e8] sm:$0xff] }
 0x1a0   : > { %1769 = vmatprep.subr.mxu0 %v4394_v23  ;;  %1839 = vmatpush1.msra.mxu1 %v4402_v37  ;;  %6098 = vst [vmem:[#allocation113_spill] sm:$0xff] %v4430_v31  ;;  %v4436_v37 = vld [vmem:[#allocation5 + $0x1e0] sm:$0xff] }
 0x1a1   : > { %1770 = vmatpush1.msra.mxu0 %v4400_v25  ;;  %1840 = vmatprep.subr.mxu1 %v4408_v0  ;;  %6100 = vst [vmem:[#allocation117_spill] sm:$0xff] %v4436_v37  ;;  %v4442_v0 = vld [vmem:[#allocation5 + $0x1d8] sm:$0xff] }
 0x1a2   : > { %1771 = vmatprep.subr.mxu0 %v4406_v39  ;;  %1841 = vmatpush1.msra.mxu1 %v4414_v33  ;;  %6102 = vst [vmem:[#allocation121_spill] sm:$0xff] %v4442_v0  ;;  %v4448_v33 = vld [vmem:[#allocation5 + $0x1d0] sm:$0xff] }
 0x1a3   : > { %1772 = vmatpush1.msra.mxu0 %v4412_v4  ;;  %1842 = vmatprep.subr.mxu1 %v4420_v61  ;;  %6104 = vst [vmem:[#allocation127_spill] sm:$0xff] %v4448_v33  ;;  %v4454_v61 = vld [vmem:[#allocation5 + $0x1c8] sm:$0xff] }
 0x1a4   : > { %1773 = vmatprep.subr.mxu0 %v4418_v8  ;;  %1843 = vmatpush1.msra.mxu1 %v4426_v19  ;;  %6106 = vst [vmem:[#allocation131_spill] sm:$0xff] %v4454_v61  ;;  %v4460_v19 = vld [vmem:[#allocation5 + $0x1c0] sm:$0xff] }
 0x1a5   : > { %1774 = vmatpush2.msra.mxu0 %v4424_v63  ;;  %1844 = vmatprep.subr.mxu1 %v4432_v15  ;;  %6108 = vst [vmem:[#allocation13_spill] sm:$0xff] %v4460_v19  ;;  %v4466_v15 = vld [vmem:[#allocation5 + $0x1b8] sm:$0xff] }
 0x1a6   : > { %1775 = vmatprep.subr.mxu0 %v4430_v31  ;;  %1845 = vmatpush2.msra.mxu1 %v4438_v7  ;;  %6110 = vst [vmem:[#allocation15_spill] sm:$0xff] %v4466_v15  ;;  %v4472_v7 = vld [vmem:[#allocation5 + $0x1b0] sm:$0xff] }
 0x1a7   : > { %1776 = vmatpush2.msra.mxu0 %v4436_v37  ;;  %1846 = vmatprep.subr.mxu1 %v4444_v54  ;;  %6112 = vst [vmem:[#allocation17_spill] sm:$0xff] %v4472_v7  ;;  %v4478_v54 = vld [vmem:[#allocation5 + $0x1a8] sm:$0xff] }
 0x1a8   : > { %1777 = vmatprep.subr.mxu0 %v4442_v0  ;;  %1847 = vmatpush2.msra.mxu1 %v4450_v45  ;;  %6114 = vst [vmem:[#allocation19_spill] sm:$0xff] %v4478_v54  ;;  %v4484_v45 = vld [vmem:[#allocation5 + $0x1a0] sm:$0xff] }
 0x1a9   : > { %1778 = vmatpush2.msra.mxu0 %v4448_v33  ;;  %1848 = vmatprep.subr.mxu1 %v4456_v40  ;;  %6116 = vst [vmem:[#allocation21_spill] sm:$0xff] %v4484_v45  ;;  %v4490_v40 = vld [vmem:[#allocation5 + $0x198] sm:$0xff] }
 0x1aa   : > { %1779 = vmatprep.subr.mxu0 %v4454_v61  ;;  %1849 = vmatpush2.msra.mxu1 %v4462_v35  ;;  %6118 = vst [vmem:[#allocation24_spill] sm:$0xff] %v4490_v40  ;;  %v4496_v35 = vld [vmem:[#allocation5 + $0x190] sm:$0xff] }
 0x1ab   : > { %1780 = vmatpush2.msra.mxu0 %v4460_v19  ;;  %1850 = vmatprep.subr.mxu1 %v4468_v48  ;;  %6120 = vst [vmem:[#allocation28_spill] sm:$0xff] %v4496_v35  ;;  %v4502_v48 = vld [vmem:[#allocation5 + $0x188] sm:$0xff] }
 0x1ac   : > { %1781 = vmatprep.subr.mxu0 %v4466_v15  ;;  %1851 = vmatpush2.msra.mxu1 %v4474_v58  ;;  %6122 = vst [vmem:[#allocation32_spill] sm:$0xff] %v4502_v48  ;;  %v4508_v58 = vld [vmem:[#allocation5 + $0x180] sm:$0xff] }
 0x1ad   : > { %1782 = vmatpush2.msra.mxu0 %v4472_v7  ;;  %1852 = vmatprep.subr.mxu1 %v4480_v55  ;;  %v4504_v7 = vld [vmem:[#allocation5 + $0x398] sm:$0xff]  ;;  %6124 = vst [vmem:[#allocation36_spill] sm:$0xff] %v4508_v58 }
 0x1ae   : > { %1783 = vmatprep.subr.mxu0 %v4478_v54  ;;  %1853 = vmatpush2.msra.mxu1 %v4486_v44  ;;  %6123 = vst [vmem:[#allocation34_spill] sm:$0xff] %v4504_v7  ;;  %v4510_v54 = vld [vmem:[#allocation5 + $0x390] sm:$0xff]  ;;  %v4514_v55 = vld [vmem:[#allocation5 + $0x178] sm:$0xff] }
 0x1af   : > { %1784 = vmatpush2.msra.mxu0 %v4484_v45  ;;  %1854 = vmatprep.subr.mxu1 %v4492_v60  ;;  %6125 = vst [vmem:[#allocation37_spill] sm:$0xff] %v4510_v54  ;;  %6126 = vst [vmem:[#allocation38_spill] sm:$0xff] %v4514_v55  ;;  %v4516_v45 = vld [vmem:[#allocation5 + $0x388] sm:$0xff]  ;;  %v4520_v44 = vld [vmem:[#allocation5 + $0x170] sm:$0xff] }
 0x1b0   : > { %1785 = vmatprep.subr.mxu0 %v4490_v40  ;;  %1855 = vmatpush2.msra.mxu1 %v4498_v13  ;;  %6127 = vst [vmem:[#allocation39_spill] sm:$0xff] %v4516_v45  ;;  %6128 = vst [vmem:[#allocation40_spill] sm:$0xff] %v4520_v44  ;;  %v4522_v40 = vld [vmem:[#allocation5 + $0x380] sm:$0xff]  ;;  %v4526_v60 = vld [vmem:[#allocation5 + $0x168] sm:$0xff] }
 0x1b1   : > { %1786 = vmatpush2.msra.mxu0 %v4496_v35  ;;  %1856 = vmatprep.subr.mxu1 %v4504_v7  ;;  %6129 = vst [vmem:[#allocation41_spill] sm:$0xff] %v4522_v40  ;;  %6130 = vst [vmem:[#allocation42_spill] sm:$0xff] %v4526_v60  ;;  %v4528_v35 = vld [vmem:[#allocation5 + $0x378] sm:$0xff]  ;;  %v4536_v7 = vld [vmem:[#allocation5 + $0x160] sm:$0xff] }
 0x1b2   : > { %1787 = vmatprep.subr.mxu0 %v4502_v48  ;;  %1857 = vmatpush2.msra.mxu1 %v4510_v54  ;;  %6131 = vst [vmem:[#allocation43_spill] sm:$0xff] %v4528_v35  ;;  %6132 = vst [vmem:[#allocation44_spill] sm:$0xff] %v4536_v7  ;;  %v4538_v13 = vld [vmem:[#allocation5 + $0x370] sm:$0xff]  ;;  %v4542_v54 = vld [vmem:[#allocation5 + $0x158] sm:$0xff] }
 0x1b3   : > { %1788 = vmatpush2.msra.mxu0 %v4508_v58  ;;  %1858 = vmatprep.subr.mxu1 %v4516_v45  ;;  %6133 = vst [vmem:[#allocation45_spill] sm:$0xff] %v4538_v13  ;;  %6134 = vst [vmem:[#allocation46_spill] sm:$0xff] %v4542_v54  ;;  %v4550_v45 = vld [vmem:[#allocation5 + $0x360] sm:$0xff] }
 0x1b4   : > { %1789 = vmatprep.subr.mxu0 %v4514_v55  ;;  %1859 = vmatpush2.msra.mxu1 %v4522_v40  ;;  %v4544_v55 = vld [vmem:[#allocation5 + $0x368] sm:$0xff]  ;;  %v4548_v40 = vld [vmem:[#allocation5 + $0x150] sm:$0xff]  ;;  %6137 = vst [vmem:[#allocation50_spill] sm:$0xff] %v4550_v45 }
 0x1b5   : > { %1790 = vmatpush2.msra.mxu0 %v4520_v44  ;;  %1860 = vmatprep.subr.mxu1 %v4528_v35  ;;  %6135 = vst [vmem:[#allocation47_spill] sm:$0xff] %v4544_v55  ;;  %6136 = vst [vmem:[#allocation48_spill] sm:$0xff] %v4548_v40  ;;  %v4554_v35 = vld [vmem:[#allocation5 + $0x148] sm:$0xff] }
 0x1b6   : > { %1791 = vmatprep.subr.mxu0 %v4526_v60  ;;  %1861 = vmatpush2.msra.mxu1 %v4538_v13  ;;  %6138 = vst [vmem:[#allocation52_spill] sm:$0xff] %v4554_v35  ;;  %v4560_v13 = vld [vmem:[#allocation5 + $0x140] sm:$0xff] }
 0x1b7   : > { %1792 = vmatpush2.msra.mxu0 %v4536_v7  ;;  %1862 = vmatprep.subr.mxu1 %v4544_v55  ;;  %v4556_v7 = vld [vmem:[#allocation5 + $0x358] sm:$0xff]  ;;  %6140 = vst [vmem:[#allocation54_spill] sm:$0xff] %v4560_v13 }
 0x1b8   : > { %1793 = vmatprep.subr.mxu0 %v4542_v54  ;;  %1863 = vmatpush2.msra.mxu1 %v4550_v45  ;;  %6139 = vst [vmem:[#allocation53_spill] sm:$0xff] %v4556_v7  ;;  %v4562_v54 = vld [vmem:[#allocation5 + $0x350] sm:$0xff]  ;;  %v4566_v55 = vld [vmem:[#allocation5 + $0x138] sm:$0xff] }
 0x1b9   : > { %1794 = vmatpush2.msra.mxu0 %v4548_v40  ;;  %1864 = vmatprep.subr.mxu1 %v4556_v7  ;;  %6141 = vst [vmem:[#allocation56_spill] sm:$0xff] %v4562_v54  ;;  %6142 = vst [vmem:[#allocation58_spill] sm:$0xff] %v4566_v55  ;;  %v4568_v40 = vld [vmem:[#allocation5 + $0x348] sm:$0xff]  ;;  %v4572_v45 = vld [vmem:[#allocation5 + $0x130] sm:$0xff] }
 0x1ba   : > { %1795 = vmatprep.subr.mxu0 %v4554_v35  ;;  %1865 = vmatpush2.msra.mxu1 %v4562_v54  ;;  %6143 = vst [vmem:[#allocation59_spill] sm:$0xff] %v4568_v40  ;;  %6144 = vst [vmem:[#allocation60_spill] sm:$0xff] %v4572_v45  ;;  %v4574_v35 = vld [vmem:[#allocation5 + $0x340] sm:$0xff]  ;;  %v4578_v7 = vld [vmem:[#allocation5 + $0x128] sm:$0xff] }
 0x1bb   : > { %1796 = vmatpush2.msra.mxu0 %v4560_v13  ;;  %1866 = vmatprep.subr.mxu1 %v4568_v40  ;;  %6145 = vst [vmem:[#allocation62_spill] sm:$0xff] %v4574_v35  ;;  %6146 = vst [vmem:[#allocation64_spill] sm:$0xff] %v4578_v7  ;;  %v4580_v13 = vld [vmem:[#allocation5 + $0x338] sm:$0xff]  ;;  %v4584_v54 = vld [vmem:[#allocation5 + $0x120] sm:$0xff] }
 0x1bc   : > { %1797 = vmatprep.subr.mxu0 %v4566_v55  ;;  %1867 = vmatpush2.msra.mxu1 %v4574_v35  ;;  %6147 = vst [vmem:[#allocation66_spill] sm:$0xff] %v4580_v13  ;;  %6148 = vst [vmem:[#allocation68_spill] sm:$0xff] %v4584_v54  ;;  %v4586_v55 = vld [vmem:[#allocation5 + $0x330] sm:$0xff]  ;;  %v4590_v40 = vld [vmem:[#allocation5 + $0x118] sm:$0xff] }
 0x1bd   : > { %1798 = vmatpush2.msra.mxu0 %v4572_v45  ;;  %1868 = vmatprep.subr.mxu1 %v4580_v13  ;;  %6149 = vst [vmem:[#allocation70_spill] sm:$0xff] %v4586_v55  ;;  %6150 = vst [vmem:[#allocation72_spill] sm:$0xff] %v4590_v40  ;;  %v4592_v45 = vld [vmem:[#allocation5 + $0x328] sm:$0xff]  ;;  %v4596_v35 = vld [vmem:[#allocation5 + $0x110] sm:$0xff] }
 0x1be   : > { %1799 = vmatprep.subr.mxu0 %v4578_v7  ;;  %1869 = vmatpush2.msra.mxu1 %v4586_v55  ;;  %6151 = vst [vmem:[#allocation74_spill] sm:$0xff] %v4592_v45  ;;  %6152 = vst [vmem:[#allocation76_spill] sm:$0xff] %v4596_v35  ;;  %v4598_v7 = vld [vmem:[#allocation5 + $0x320] sm:$0xff]  ;;  %v4602_v13 = vld [vmem:[#allocation5 + $0x108] sm:$0xff] }
 0x1bf   : > { %1800 = vmatpush2.msra.mxu0 %v4584_v54  ;;  %1870 = vmatprep.subr.mxu1 %v4592_v45  ;;  %6153 = vst [vmem:[#allocation78_spill] sm:$0xff] %v4598_v7  ;;  %6154 = vst [vmem:[#allocation80_spill] sm:$0xff] %v4602_v13  ;;  %v4604_v54 = vld [vmem:[#allocation5 + $0x318] sm:$0xff]  ;;  %v4608_v55 = vld [vmem:[#allocation5 + $0x100] sm:$0xff] }
 0x1c0   : > { %1801 = vmatprep.subr.mxu0 %v4590_v40  ;;  %1871 = vmatpush2.msra.mxu1 %v4598_v7  ;;  %6155 = vst [vmem:[#allocation82_spill] sm:$0xff] %v4604_v54  ;;  %6156 = vst [vmem:[#allocation84_spill] sm:$0xff] %v4608_v55  ;;  %v4610_v40 = vld [vmem:[#allocation5 + $0x310] sm:$0xff]  ;;  %v4614_v45 = vld [vmem:[#allocation5 + $0x308] sm:$0xff] }
 0x1c1   : > { %1802 = vmatpush2.msra.mxu0 %v4596_v35  ;;  %1872 = vmatprep.subr.mxu1 %v4604_v54  ;;  %6157 = vst [vmem:[#allocation86_spill] sm:$0xff] %v4610_v40  ;;  %6158 = vst [vmem:[#allocation88_spill] sm:$0xff] %v4614_v45  ;;  %v4616_v35 = vld [vmem:[#allocation5 + $0x4f8] sm:$0xff]  ;;  %v4620_v7 = vld [vmem:[#allocation5 + $0x300] sm:$0xff]  ;;  %v924_v54 = vpop.f32.mrf.mxu0 }
 0x1c2   : > { %1803 = vmatprep.subr.mxu0 %v4602_v13  ;;  %1873 = vmatpush2.msra.mxu1 %v4610_v40  ;;  %6159 = vst [vmem:[#allocation90_spill] sm:$0xff] %v4616_v35  ;;  %6160 = vst [vmem:[#allocation92_spill] sm:$0xff] %v4620_v7  ;;  %v995_v13 = vpop.f32.mrf.mxu1 }
 0x1c3   : > { %1804 = vmatpush2.msra.mxu0 %v4608_v55  ;;  %1874 = vmatprep.subr.mxu1 %v4614_v45  ;;  %v926_v60 = vpop.f32.mrf.mxu0  ;;  %v996_v2 = vadd.f32 %v995_v13, %v924_v54  ;;  %v4658_v54 = vld [vmem:[#allocation5 + $0x4b8] sm:$0xff] }
 0x1c4   : > { %1883 = vmatprep.subr.mxu0 %v4616_v35  ;;  %1875 = vmatpush2.msra.mxu1 %v4620_v7  ;;  %v997_v55 = vpop.f32.mrf.mxu1 }
 0x1c5   : > { %1956 = vmatprep.subr.mxu1 %v4236_v12  ;;  %v1066_v44 = vpop.f32.mrf.mxu0  ;;  %v998_v18 = vadd.f32 %v997_v55, %v926_v60 }
 0x1c6   : > { %v1140_v40 = vpop.f32.mrf.mxu1  ;;  %v1067_v4 = vadd.f32 %v1066_v44, %v996_v2  ;;  %v4631_v2 = vld [vmem:[#allocation5 + $0x4f0] sm:$0xff] }
 0x1c7   : > { %v1068_v58 = vpop.f32.mrf.mxu0  ;;  %v4647_v44 = vld [vmem:[#allocation5 + $0x4d0] sm:$0xff] }
 0x1c8   : > { %v1142_v48 = vpop.f32.mrf.mxu1  ;;  %v1069_v31 = vadd.f32 %v1068_v58, %v998_v18  ;;  %v2641_v18 = vld [vmem:[%s5340_s2] ss:$0 sm:$0xff] }
 0x1c9   : > { %v1211_v5 = vpop.f32.mrf.mxu0 }
 0x1ca   : > { %v1282_v15 = vpop.f32.mrf.mxu1  ;;  %v1212_v12 = vadd.f32 %v1211_v5, %v1140_v40 }
 0x1cb   : > { %v1213_v32 = vpop.f32.mrf.mxu0 }
 0x1cc   : > { %v1284_v45 = vpop.f32.mrf.mxu1  ;;  %v1214_v30 = vadd.f32 %v1213_v32, %v1142_v48  ;;  %v1283_v41 = vadd.f32 %v1282_v15, %v1212_v12  ;;  %v1719_v48 = vmax.f32 %v1067_v4, %v1069_v31  ;;  %v6162_v15 = vmov 0.0   ;;  %v6170_v31 = vld [vmem:[#allocation109_spill] sm:$0xff]  ;;  %v6178_v12 = vld [vmem:[#allocation127_spill] sm:$0xff] }
 0x1cd   : > { %v6175_v4 = vld [vmem:[#allocation33_spill] sm:$0xff] }
 0x1ce   : > { %v1285_v0 = vadd.f32 %v1284_v45, %v1214_v30  ;;  %v4655_v45 = vld [vmem:[#allocation5 + $0x4c0] sm:$0xff] }
 0x1d0   : > { %v1720_v24 = vmax.f32 %v1283_v41, %v1285_v0  ;;  %v6174_v0 = vld [vmem:[#allocation117_spill] sm:$0xff] }
 0x1d2   : > { %v1721_v55 = vmax.f32 %v1719_v48, %v1720_v24  ;;  %v6180_v48 = vld [vmem:[#allocation131_spill] sm:$0xff] }
 0x1d4   : > { %v4627_v40 = vadd.f32 %v2641_v18, %v1721_v55  ;;  %v6184_v55 = vld [vmem:[#allocation15_spill] sm:$0xff] }
 0x1d6   : > { %v1734_v24 = vrot.slane %v4627_v40, 1 }
 0x1df   : > { %v1356_v19 = vpop.f32.mrf.mxu0 }
 0x1e0   : > { %v1427_v35 = vpop.f32.mrf.mxu1 }
 0x1e1   : > { %v1358_v21 = vpop.f32.mrf.mxu0  ;;  %v1428_v25 = vadd.f32 %v1427_v35, %v1356_v19  ;;  %v4651_v35 = vld [vmem:[#allocation5 + $0x4c8] sm:$0xff] }
 0x1e2   : > { %v1429_v61 = vpop.f32.mrf.mxu1  ;;  %v6164_v19 = vld [vmem:[#allocation97_spill] sm:$0xff] }
 0x1e3   : > { %v1430_v8 = vadd.f32 %v1429_v61, %v1358_v21  ;;  %v6166_v61 = vld [vmem:[#allocation101_spill] sm:$0xff] }
 0x201   : > { %v1498_v7 = vpop.f32.mrf.mxu0 }
 0x202   : > { %v1499_v5 = vadd.f32 %v1498_v7, %v1428_v25  ;;  %v4662_v7 = vld [vmem:[#allocation5 + $0x4b0] sm:$0xff] }
 0x203   : > { %v1500_v10 = vpop.f32.mrf.mxu0  ;;  %v6171_v25 = vld [vmem:[#allocation29_spill] sm:$0xff] }
 0x204   : > { %v1501_v42 = vadd.f32 %v1500_v10, %v1430_v8  ;;  %v6177_v8 = vld [vmem:[#allocation35_spill] sm:$0xff] }
 0x206   : > { %v1729_v13 = vmax.f32 %v1499_v5, %v1501_v42  ;;  %v4644_v42 = vld [vmem:[#allocation5 + $0x4d8] sm:$0xff] }
 0x207   : > { %v6181_v5 = vld [vmem:[#allocation51_spill] sm:$0xff] }
 0x223   : > { %v1572_v33 = vpop.f32.mrf.mxu1 }
 0x225   : > { %v1574_v37 = vpop.f32.mrf.mxu1 }
 0x243   : > { %v1643_v63 = vpop.f32.mrf.mxu0 }
 0x244   : > { %v1714_v22 = vpop.f32.mrf.mxu1  ;;  %v1644_v26 = vadd.f32 %v1643_v63, %v1572_v33  ;;  %v6168_v63 = vld [vmem:[#allocation105_spill] sm:$0xff] }
 0x245   : > { %v1645_v39 = vpop.f32.mrf.mxu0  ;;  %v6176_v33 = vld [vmem:[#allocation121_spill] sm:$0xff] }
 0x246   : > { %v1646_v32 = vadd.f32 %v1645_v39, %v1574_v37  ;;  %v1716_v23 = vpop.f32.mrf.mxu1  ;;  %v1715_v60 = vadd.f32 %v1714_v22, %v1644_v26  ;;  %v4635_v26 = vld [vmem:[#allocation5 + $0x4e8] sm:$0xff]  ;;  %v4639_v22 = vld [vmem:[#allocation5 + $0x4e0] sm:$0xff] }
 0x247   : > { %v6172_v37 = vld [vmem:[#allocation113_spill] sm:$0xff]  ;;  %v6173_v39 = vld [vmem:[#allocation31_spill] sm:$0xff] }
 0x248   : > { %v1717_v30 = vadd.f32 %v1716_v23, %v1646_v32  ;;  %v6169_v23 = vld [vmem:[#allocation27_spill] sm:$0xff]  ;;  %v6179_v32 = vld [vmem:[#allocation49_spill] sm:$0xff] }
 0x24a   : > { %v1730_v58 = vmax.f32 %v1715_v60, %v1717_v30  ;;  %v6182_v60 = vld [vmem:[#allocation13_spill] sm:$0xff]  ;;  %v6183_v30 = vld [vmem:[#allocation55_spill] sm:$0xff] }
 0x24c   : > { %v1731_v21 = vmax.f32 %v1729_v13, %v1730_v58  ;;  %v6186_v13 = vld [vmem:[#allocation17_spill] sm:$0xff] }
 0x24d   : > { %v6187_v58 = vld [vmem:[#allocation61_spill] sm:$0xff] }
 0x24e   : > { %v4629_v41 = vadd.f32 %v2641_v18, %v1731_v21  ;;  %v6185_v18 = vld [vmem:[#allocation57_spill] sm:$0xff]  ;;  %v6188_v21 = vld [vmem:[#allocation19_spill] sm:$0xff] }
 0x250   : > { %1805 = vmatprep.mubr.f32.mxu0 %v4629_v41  ;;  %v1737_v10 = vrot.slane %v4629_v41, 1 }
 0x251   : > { %1806 = vmatmul.mubr.f32.vlgmr.msra.gmra.mxu0 %v4627_v40 }
 0x252   : > { %1884 = vmatpush1.msra.mxu0 %v4631_v2  ;;  %1876 = vmatprep.mubr.f32.mxu1 %v1737_v10 }
 0x253   : > { %1885 = vmatprep.subr.mxu0 %v4635_v26  ;;  %1877 = vmatmul.mubr.f32.vlgmr.msra.gmra.mxu1 %v1734_v24 }
 0x254   : > { %1886 = vmatpush1.msra.mxu0 %v4639_v22  ;;  %1957 = vmatpush1.msra.mxu1 %v4238_v16  ;;  %v4666_v16 = vld [vmem:[#allocation5 + $0x4a8] sm:$0xff] }
 0x255   : > { %1887 = vmatprep.subr.mxu0 %v4644_v42  ;;  %1958 = vmatprep.subr.mxu1 %v4240_v20  ;;  %v4670_v20 = vld [vmem:[#allocation5 + $0x4a0] sm:$0xff] }
 0x256   : > { %2020 = vmatprep.mubr.f32.mxu1 %v1734_v24  ;;  %1888 = vmatpush1.msra.mxu0 %v4647_v44  ;;  %v6190_v24 = vld [vmem:[#allocation21_spill] sm:$0xff] }
 0x257   : > { %1959 = vmatpush1.msra.mxu1 %v4245_v49  ;;  %1889 = vmatprep.subr.mxu0 %v4651_v35  ;;  %v4674_v49 = vld [vmem:[#allocation5 + $0x498] sm:$0xff] }
 0x258   : > { %1960 = vmatprep.subr.mxu1 %v4251_v34  ;;  %1890 = vmatpush1.msra.mxu0 %v4655_v45  ;;  %v4678_v34 = vld [vmem:[#allocation5 + $0x490] sm:$0xff] }
 0x259   : > { %1961 = vmatpush1.msra.mxu1 %v4257_v38  ;;  %1891 = vmatprep.subr.mxu0 %v4658_v54  ;;  %v4682_v38 = vld [vmem:[#allocation5 + $0x488] sm:$0xff] }
 0x25a   : > { %1962 = vmatprep.subr.mxu1 %v4265_v6  ;;  %1892 = vmatpush1.msra.mxu0 %v4662_v7  ;;  %v4686_v6 = vld [vmem:[#allocation5 + $0x480] sm:$0xff] }
 0x25b   : > { %1963 = vmatpush1.msra.mxu1 %v4271_v14  ;;  %1893 = vmatprep.subr.mxu0 %v4666_v16  ;;  %v4690_v14 = vld [vmem:[#allocation5 + $0x478] sm:$0xff] }
 0x25c   : > { %1964 = vmatprep.subr.mxu1 %v4277_v46  ;;  %1894 = vmatpush1.msra.mxu0 %v4670_v20  ;;  %v4694_v46 = vld [vmem:[#allocation5 + $0x470] sm:$0xff] }
 0x25d   : > { %1965 = vmatpush1.msra.mxu1 %v4283_v51  ;;  %1895 = vmatprep.subr.mxu0 %v4674_v49  ;;  %v4698_v51 = vld [vmem:[#allocation5 + $0x468] sm:$0xff] }
 0x25e   : > { %1966 = vmatprep.subr.mxu1 %v4289_v53  ;;  %1896 = vmatpush1.msra.mxu0 %v4678_v34  ;;  %v4702_v53 = vld [vmem:[#allocation5 + $0x460] sm:$0xff] }
 0x25f   : > { %1967 = vmatpush1.msra.mxu1 %v4295_v1  ;;  %1897 = vmatprep.subr.mxu0 %v4682_v38  ;;  %v4706_v1 = vld [vmem:[#allocation5 + $0x458] sm:$0xff] }
 0x260   : > { %1968 = vmatprep.subr.mxu1 %v4301_v9  ;;  %1898 = vmatpush1.msra.mxu0 %v4686_v6  ;;  %v4710_v9 = vld [vmem:[#allocation5 + $0x450] sm:$0xff] }
 0x261   : > { %1969 = vmatpush1.msra.mxu1 %v4307_v17  ;;  %1899 = vmatprep.subr.mxu0 %v4690_v14  ;;  %v4714_v17 = vld [vmem:[#allocation5 + $0x448] sm:$0xff] }
 0x262   : > { %1970 = vmatprep.subr.mxu1 %v4313_v56  ;;  %1900 = vmatpush1.msra.mxu0 %v4694_v46  ;;  %v4718_v56 = vld [vmem:[#allocation5 + $0x440] sm:$0xff] }
 0x263   : > { %1971 = vmatpush1.msra.mxu1 %v4319_v59  ;;  %1901 = vmatprep.subr.mxu0 %v4698_v51  ;;  %v4722_v59 = vld [vmem:[#allocation5 + $0x438] sm:$0xff] }
 0x264   : > { %1972 = vmatprep.subr.mxu1 %v4325_v29  ;;  %1902 = vmatpush1.msra.mxu0 %v4702_v53  ;;  %v4726_v29 = vld [vmem:[#allocation5 + $0x430] sm:$0xff] }
 0x265   : > { %1973 = vmatpush1.msra.mxu1 %v4331_v27  ;;  %1903 = vmatprep.subr.mxu0 %v4706_v1  ;;  %v4730_v27 = vld [vmem:[#allocation5 + $0x428] sm:$0xff] }
 0x266   : > { %1974 = vmatprep.subr.mxu1 %v4337_v28  ;;  %1904 = vmatpush1.msra.mxu0 %v4710_v9  ;;  %v4734_v28 = vld [vmem:[#allocation5 + $0x420] sm:$0xff] }
 0x267   : > { %1975 = vmatpush1.msra.mxu1 %v4343_v50  ;;  %1905 = vmatprep.subr.mxu0 %v4714_v17  ;;  %v4738_v50 = vld [vmem:[#allocation5 + $0x418] sm:$0xff] }
 0x268   : > { %1976 = vmatprep.subr.mxu1 %v4350_v36  ;;  %1906 = vmatpush1.msra.mxu0 %v4718_v56  ;;  %v4742_v36 = vld [vmem:[#allocation5 + $0x410] sm:$0xff] }
 0x269   : > { %1977 = vmatpush1.msra.mxu1 %v4354_v47  ;;  %1907 = vmatprep.subr.mxu0 %v4722_v59  ;;  %v4746_v47 = vld [vmem:[#allocation5 + $0x408] sm:$0xff] }
 0x26a   : > { %1978 = vmatprep.subr.mxu1 %v4362_v43  ;;  %1908 = vmatpush1.msra.mxu0 %v4726_v29  ;;  %v4750_v43 = vld [vmem:[#allocation5 + $0x400] sm:$0xff] }
 0x26b   : > { %1979 = vmatpush1.msra.mxu1 %v4366_v3  ;;  %1909 = vmatprep.subr.mxu0 %v4730_v27  ;;  %v6161_v3 = vld [vmem:[#allocation89_spill] sm:$0xff] }
 0x26c   : > { %1980 = vmatprep.subr.mxu1 %v4372_v11  ;;  %1910 = vmatpush1.msra.mxu0 %v4734_v28  ;;  %v1739_v11 = vrot.slane %v4627_v40, 2  ;;  %v6189_v40 = vld [vmem:[#allocation63_spill] sm:$0xff] }
 0x26d   : > { %1981 = vmatpush1.msra.mxu1 %v4378_v62  ;;  %1911 = vmatprep.subr.mxu0 %v4738_v50  ;;  %v6163_v62 = vld [vmem:[#allocation93_spill] sm:$0xff] }
 0x26e   : > { %1982 = vmatprep.subr.mxu1 %v4382_v52  ;;  %1912 = vmatpush1.msra.mxu0 %v4742_v36  ;;  %v6165_v52 = vld [vmem:[#allocation23_spill] sm:$0xff] }
 0x26f   : > { %1983 = vmatpush1.msra.mxu1 %v4388_v57  ;;  %1913 = vmatprep.subr.mxu0 %v4746_v47  ;;  %v6167_v57 = vld [vmem:[#allocation25_spill] sm:$0xff] }
 0x270   : > { %1984 = vmatprep.subr.mxu1 %v6161_v3  ;;  %1914 = vmatpush1.msra.mxu0 %v4750_v43  ;;  %v6191_v3 = vld [vmem:[#allocation65_spill] sm:$0xff] }
 0x271   : > { %1947 = vmatprep.mubr.f32.mxu0 %v6162_v15  ;;  %1985 = vmatpush1.msra.mxu1 %v6163_v62  ;;  %v6193_v62 = vld [vmem:[#allocation67_spill] sm:$0xff] }
 0x272   : > { %1948 = vmatmul.mubr.f32.vlgmr.msra.gmra.mxu0 %v1739_v11  ;;  %1986 = vmatprep.subr.mxu1 %v6164_v19  ;;  %v6194_v19 = vld [vmem:[#allocation28_spill] sm:$0xff] }
 0x273   : > { %2027 = vmatprep.subr.mxu0 %v6165_v52  ;;  %1987 = vmatpush1.msra.mxu1 %v6166_v61  ;;  %v6195_v52 = vld [vmem:[#allocation129_spill] sm:$0xff]  ;;  %v6196_v61 = vld [vmem:[#allocation32_spill] sm:$0xff] }
 0x274   : > { %2028 = vmatpush1.msra.mxu0 %v6167_v57  ;;  %2091 = vmatprep.mubr.f32.mxu0 %v1739_v11  ;;  %v6192_v11 = vld [vmem:[#allocation24_spill] sm:$0xff]  ;;  %v6197_v57 = vld [vmem:[#allocation69_spill] sm:$0xff] }
 0x275   : > { %1988 = vmatprep.subr.mxu1 %v6168_v63  ;;  %2029 = vmatprep.subr.mxu0 %v6169_v23  ;;  %v6198_v63 = vld [vmem:[#allocation36_spill] sm:$0xff]  ;;  %v6199_v23 = vld [vmem:[#allocation71_spill] sm:$0xff] }
 0x276   : > { %1989 = vmatpush2.msra.mxu1 %v6170_v31  ;;  %2030 = vmatpush1.msra.mxu0 %v6171_v25  ;;  %v6200_v31 = vld [vmem:[#allocation38_spill] sm:$0xff]  ;;  %v6201_v25 = vld [vmem:[#allocation73_spill] sm:$0xff] }
 0x277   : > { %1990 = vmatprep.subr.mxu1 %v6172_v37  ;;  %2031 = vmatprep.subr.mxu0 %v6173_v39  ;;  %v6202_v37 = vld [vmem:[#allocation40_spill] sm:$0xff]  ;;  %v6203_v39 = vld [vmem:[#allocation75_spill] sm:$0xff] }
 0x278   : > { %1991 = vmatpush2.msra.mxu1 %v6174_v0  ;;  %2032 = vmatpush1.msra.mxu0 %v6175_v4  ;;  %v6204_v0 = vld [vmem:[#allocation42_spill] sm:$0xff]  ;;  %v6205_v4 = vld [vmem:[#allocation77_spill] sm:$0xff] }
 0x279   : > { %1992 = vmatprep.subr.mxu1 %v6176_v33  ;;  %2033 = vmatprep.subr.mxu0 %v6177_v8  ;;  %v6206_v33 = vld [vmem:[#allocation44_spill] sm:$0xff]  ;;  %v6207_v8 = vld [vmem:[#allocation79_spill] sm:$0xff] }
 0x27a   : > { %1993 = vmatpush2.msra.mxu1 %v6178_v12  ;;  %2034 = vmatpush1.msra.mxu0 %v6179_v32  ;;  %v6208_v12 = vld [vmem:[#allocation46_spill] sm:$0xff]  ;;  %v6209_v32 = vld [vmem:[#allocation81_spill] sm:$0xff] }
 0x27b   : > { %1994 = vmatprep.subr.mxu1 %v6180_v48  ;;  %2035 = vmatprep.subr.mxu0 %v6181_v5  ;;  %v6210_v48 = vld [vmem:[#allocation48_spill] sm:$0xff]  ;;  %v6211_v5 = vld [vmem:[#allocation83_spill] sm:$0xff] }
 0x27c   : > { %1995 = vmatpush2.msra.mxu1 %v6182_v60  ;;  %2036 = vmatpush1.msra.mxu0 %v6183_v30  ;;  %v6212_v60 = vld [vmem:[#allocation52_spill] sm:$0xff]  ;;  %v6213_v30 = vld [vmem:[#allocation85_spill] sm:$0xff] }
 0x27d   : > { %1996 = vmatprep.subr.mxu1 %v6184_v55  ;;  %2037 = vmatprep.subr.mxu0 %v6185_v18  ;;  %v6214_v55 = vld [vmem:[#allocation54_spill] sm:$0xff]  ;;  %v6215_v18 = vld [vmem:[#allocation87_spill] sm:$0xff] }
 0x27e   : > { %1997 = vmatpush2.msra.mxu1 %v6186_v13  ;;  %2038 = vmatpush1.msra.mxu0 %v6187_v58  ;;  %v6216_v13 = vld [vmem:[#allocation58_spill] sm:$0xff]  ;;  %v6217_v58 = vld [vmem:[#allocation91_spill] sm:$0xff] }
 0x27f   : > { %1998 = vmatprep.subr.mxu1 %v6188_v21  ;;  %2039 = vmatprep.subr.mxu0 %v6189_v40  ;;  %v6218_v21 = vld [vmem:[#allocation60_spill] sm:$0xff]  ;;  %v6219_v40 = vld [vmem:[#allocation95_spill] sm:$0xff] }
 0x280   : > { %1999 = vmatpush2.msra.mxu1 %v6190_v24  ;;  %2040 = vmatpush1.msra.mxu0 %v6191_v3  ;;  %v6220_v24 = vld [vmem:[#allocation64_spill] sm:$0xff]  ;;  %v6221_v3 = vld [vmem:[#allocation99_spill] sm:$0xff] }
 0x281   : > { %2000 = vmatprep.subr.mxu1 %v6192_v11  ;;  %2041 = vmatprep.subr.mxu0 %v6193_v62  ;;  %v6222_v11 = vld [vmem:[#allocation68_spill] sm:$0xff]  ;;  %v6223_v62 = vld [vmem:[#allocation103_spill] sm:$0xff] }
 0x282   : > { %2001 = vmatpush2.msra.mxu1 %v6194_v19  ;;  %2042 = vmatpush1.msra.mxu0 %v6195_v52  ;;  %v6224_v19 = vld [vmem:[#allocation72_spill] sm:$0xff]  ;;  %v6225_v52 = vld [vmem:[#allocation107_spill] sm:$0xff] }
 0x283   : > { %2002 = vmatprep.subr.mxu1 %v6196_v61  ;;  %2043 = vmatprep.subr.mxu0 %v6197_v57  ;;  %v6226_v61 = vld [vmem:[#allocation76_spill] sm:$0xff]  ;;  %v6227_v57 = vld [vmem:[#allocation111_spill] sm:$0xff] }
 0x284   : > { %2003 = vmatpush2.msra.mxu1 %v6198_v63  ;;  %2044 = vmatpush1.msra.mxu0 %v6199_v23  ;;  %v6228_v63 = vld [vmem:[#allocation80_spill] sm:$0xff]  ;;  %v6229_v23 = vld [vmem:[#allocation115_spill] sm:$0xff] }
 0x285   : > { %2004 = vmatprep.subr.mxu1 %v6200_v31  ;;  %2045 = vmatprep.subr.mxu0 %v6201_v25  ;;  %v6230_v31 = vld [vmem:[#allocation84_spill] sm:$0xff]  ;;  %v6231_v25 = vld [vmem:[#allocation119_spill] sm:$0xff] }
 0x286   : > { %2005 = vmatpush2.msra.mxu1 %v6202_v37  ;;  %2046 = vmatpush1.msra.mxu0 %v6203_v39  ;;  %v6232_v37 = vld [vmem:[#allocation123_spill] sm:$0xff]  ;;  %v6233_v39 = vld [vmem:[#allocation90_spill] sm:$0xff] }
 0x287   : > { %2006 = vmatprep.subr.mxu1 %v6204_v0  ;;  %2047 = vmatprep.subr.mxu0 %v6205_v4  ;;  %v6234_v0 = vld [vmem:[#allocation130_spill] sm:$0xff]  ;;  %v6235_v4 = vld [vmem:[#allocation12_spill] sm:$0xff] }
 0x288   : > { %2007 = vmatpush2.msra.mxu1 %v6206_v33  ;;  %2048 = vmatpush1.msra.mxu0 %v6207_v8  ;;  %v6236_v33 = vld [vmem:[#allocation14_spill] sm:$0xff]  ;;  %v6237_v8 = vld [vmem:[#allocation16_spill] sm:$0xff] }
 0x289   : > { %2008 = vmatprep.subr.mxu1 %v6208_v12  ;;  %2049 = vmatprep.subr.mxu0 %v6209_v32  ;;  %v6238_v12 = vld [vmem:[#allocation18_spill] sm:$0xff]  ;;  %v6239_v32 = vld [vmem:[#allocation20_spill] sm:$0xff] }
 0x28a   : > { %2009 = vmatpush2.msra.mxu1 %v6210_v48  ;;  %2050 = vmatpush1.msra.mxu0 %v6211_v5  ;;  %v749_v48 = vld [vmem:[%s5343_s5 + $0x68] sm:$0xff] }
 0x28b   : > { %2010 = vmatprep.subr.mxu1 %v6212_v60  ;;  %2051 = vmatprep.subr.mxu0 %v6213_v30  ;;  %v797_v5 = vld [vmem:[%s5343_s5 + $0x1e8] sm:$0xff]  ;;  %v764_v60 = vld [vmem:[%s5343_s5 + $0xe0] sm:$0xff] }
 0x28c   : > { %2011 = vmatpush2.msra.mxu1 %v6214_v55  ;;  %2052 = vmatpush1.msra.mxu0 %v6215_v18  ;;  %v781_v30 = vld [vmem:[%s5343_s5 + $0x168] sm:$0xff]  ;;  %v796_v55 = vld [vmem:[%s5343_s5 + $0x1e0] sm:$0xff] }
 0x28d   : > { %2012 = vmatprep.subr.mxu1 %v6216_v13  ;;  %2053 = vmatprep.subr.mxu0 %v6217_v58  ;;  %v748_v18 = vld [vmem:[%s5343_s5 + $0x60] sm:$0xff]  ;;  %v763_v58 = vld [vmem:[%s5343_s5 + $0xd8] sm:$0xff] }
 0x28e   : > { %2013 = vmatpush2.msra.mxu1 %v6218_v21  ;;  %2054 = vmatpush1.msra.mxu0 %v6219_v40  ;;  %v780_v13 = vld [vmem:[%s5343_s5 + $0x160] sm:$0xff]  ;;  %v795_v21 = vld [vmem:[%s5343_s5 + $0x1d8] sm:$0xff] }
 0x28f   : > { %2014 = vmatprep.subr.mxu1 %v6220_v24  ;;  %2055 = vmatprep.subr.mxu0 %v6221_v3  ;;  %v747_v40 = vld [vmem:[%s5343_s5 + $0x58] sm:$0xff]  ;;  %v762_v3 = vld [vmem:[%s5343_s5 + $0xd0] sm:$0xff] }
 0x290   : > { %2015 = vmatpush2.msra.mxu1 %v6222_v11  ;;  %2056 = vmatpush1.msra.mxu0 %v6223_v62  ;;  %v779_v24 = vld [vmem:[%s5343_s5 + $0x158] sm:$0xff]  ;;  %v794_v11 = vld [vmem:[%s5343_s5 + $0x1d0] sm:$0xff] }
 0x291   : > { %2016 = vmatprep.subr.mxu1 %v6224_v19  ;;  %2057 = vmatprep.subr.mxu0 %v6225_v52  ;;  %v746_v62 = vld [vmem:[%s5343_s5 + $0x50] sm:$0xff]  ;;  %v761_v52 = vld [vmem:[%s5343_s5 + $0xc8] sm:$0xff] }
 0x292   : > { %2017 = vmatpush2.msra.mxu1 %v6226_v61  ;;  %2058 = vmatpush1.msra.mxu0 %v6227_v57  ;;  %v778_v19 = vld [vmem:[%s5343_s5 + $0x150] sm:$0xff]  ;;  %v793_v61 = vld [vmem:[%s5343_s5 + $0x1c8] sm:$0xff] }
 0x293   : > { %2018 = vmatprep.subr.mxu1 %v6228_v63  ;;  %2059 = vmatprep.subr.mxu0 %v6229_v23  ;;  %v745_v57 = vld [vmem:[%s5343_s5 + $0x48] sm:$0xff]  ;;  %v760_v23 = vld [vmem:[%s5343_s5 + $0xc0] sm:$0xff] }
 0x294   : > { %2019 = vmatpush2.msra.mxu1 %v6230_v31  ;;  %2060 = vmatpush2.msra.mxu0 %v6231_v25  ;;  %v777_v63 = vld [vmem:[%s5343_s5 + $0x148] sm:$0xff]  ;;  %v792_v31 = vld [vmem:[%s5343_s5 + $0x1c0] sm:$0xff] }
 0x295   : > { %2021 = vmatmul.mubr.f32.vlgmr.msra.gmra.mxu1 %v4629_v41  ;;  %2061 = vmatprep.subr.mxu0 %v6232_v37  ;;  %v744_v25 = vld [vmem:[%s5343_s5 + $0x40] sm:$0xff] }
 0x296   : > { %2098 = vmatprep.subr.mxu1 %v6233_v39  ;;  %2062 = vmatpush2.msra.mxu0 %v6234_v0  ;;  %v776_v37 = vld [vmem:[%s5343_s5 + $0x140] sm:$0xff]  ;;  %v759_v39 = vld [vmem:[%s5343_s5 + $0xb8] sm:$0xff] }
 0x297   : > { %2099 = vmatpush1.msra.mxu1 %v4631_v2  ;;  %2063 = vmatprep.subr.mxu0 %v6235_v4  ;;  %v6240_v2 = vld [vmem:[#allocation22_spill] sm:$0xff] }
 0x298   : > { %2100 = vmatprep.subr.mxu1 %v4635_v26  ;;  %2064 = vmatpush2.msra.mxu0 %v6236_v33  ;;  %v6241_v26 = vld [vmem:[#allocation26_spill] sm:$0xff] }
 0x299   : > { %2101 = vmatpush1.msra.mxu1 %v4639_v22  ;;  %2065 = vmatprep.subr.mxu0 %v6237_v8  ;;  %v6242_v22 = vld [vmem:[#allocation30_spill] sm:$0xff] }
 0x29a   : > { %2102 = vmatprep.subr.mxu1 %v4644_v42  ;;  %2066 = vmatpush2.msra.mxu0 %v6238_v12  ;;  %v6243_v42 = vld [vmem:[#allocation34_spill] sm:$0xff] }
 0x29b   : > { %2103 = vmatpush1.msra.mxu1 %v4647_v44  ;;  %2067 = vmatprep.subr.mxu0 %v6239_v32  ;;  %v6244_v44 = vld [vmem:[#allocation37_spill] sm:$0xff]  ;;  %v743_v0 = vld [vmem:[%s5343_s5 + $0x38] sm:$0xff] }
 0x29c   : > { %2104 = vmatprep.subr.mxu1 %v4651_v35  ;;  %2068 = vmatpush2.msra.mxu0 %v6240_v2  ;;  %v6245_v35 = vld [vmem:[#allocation39_spill] sm:$0xff]  ;;  %v758_v33 = vld [vmem:[%s5343_s5 + $0xb0] sm:$0xff]  ;;  %v757_v2 = vld [vmem:[%s5343_s5 + $0xa8] sm:$0xff] }
 0x29d   : > { %2105 = vmatpush1.msra.mxu1 %v4655_v45  ;;  %2069 = vmatprep.subr.mxu0 %v6241_v26  ;;  %v6246_v45 = vld [vmem:[#allocation41_spill] sm:$0xff]  ;;  %v791_v4 = vld [vmem:[%s5343_s5 + $0x1b8] sm:$0xff] }
 0x29e   : > { %2106 = vmatprep.subr.mxu1 %v4658_v54  ;;  %2070 = vmatpush2.msra.mxu0 %v6242_v22  ;;  %v6247_v54 = vld [vmem:[#allocation43_spill] sm:$0xff]  ;;  %v742_v12 = vld [vmem:[%s5343_s5 + $0x30] sm:$0xff]  ;;  %v741_v22 = vld [vmem:[%s5343_s5 + $0x28] sm:$0xff] }
 0x29f   : > { %2107 = vmatpush1.msra.mxu1 %v4662_v7  ;;  %2071 = vmatprep.subr.mxu0 %v6243_v42  ;;  %v6248_v7 = vld [vmem:[#allocation45_spill] sm:$0xff]  ;;  %v775_v8 = vld [vmem:[%s5343_s5 + $0x138] sm:$0xff] }
 0x2a0   : > { %2108 = vmatprep.subr.mxu1 %v4666_v16  ;;  %2072 = vmatpush2.msra.mxu0 %v6244_v44  ;;  %v6249_v16 = vld [vmem:[#allocation47_spill] sm:$0xff]  ;;  %v790_v32 = vld [vmem:[%s5343_s5 + $0x1b0] sm:$0xff]  ;;  %v789_v42 = vld [vmem:[%s5343_s5 + $0x1a8] sm:$0xff] }
 0x2a1   : > { %2109 = vmatpush1.msra.mxu1 %v4670_v20  ;;  %2073 = vmatprep.subr.mxu0 %v6245_v35  ;;  %v6250_v20 = vld [vmem:[#allocation50_spill] sm:$0xff]  ;;  %v756_v44 = vld [vmem:[%s5343_s5 + $0xa0] sm:$0xff]  ;;  %v773_v35 = vld [vmem:[%s5343_s5 + $0x128] sm:$0xff] }
 0x2a2   : > { %2110 = vmatprep.subr.mxu1 %v4674_v49  ;;  %2074 = vmatpush2.msra.mxu0 %v6246_v45  ;;  %v6251_v49 = vld [vmem:[#allocation53_spill] sm:$0xff]  ;;  %v740_v45 = vld [vmem:[%s5343_s5 + $0x20] sm:$0xff] }
 0x2a3   : > { %2111 = vmatpush1.msra.mxu1 %v4678_v34  ;;  %2075 = vmatprep.subr.mxu0 %v6247_v54  ;;  %v6252_v34 = vld [vmem:[#allocation56_spill] sm:$0xff]  ;;  %v774_v26 = vld [vmem:[%s5343_s5 + $0x130] sm:$0xff] }
 0x2a4   : > { %2112 = vmatprep.subr.mxu1 %v4682_v38  ;;  %2076 = vmatpush2.msra.mxu0 %v6248_v7  ;;  %v6253_v38 = vld [vmem:[#allocation59_spill] sm:$0xff] }
 0x2a5   : > { %2113 = vmatpush1.msra.mxu1 %v4686_v6  ;;  %2077 = vmatprep.subr.mxu0 %v6249_v16  ;;  %v6254_v6 = vld [vmem:[#allocation62_spill] sm:$0xff]  ;;  %v788_v54 = vld [vmem:[%s5343_s5 + $0x1a0] sm:$0xff] }
 0x2a6   : > { %2114 = vmatprep.subr.mxu1 %v4690_v14  ;;  %2078 = vmatpush2.msra.mxu0 %v6250_v20  ;;  %v6255_v14 = vld [vmem:[#allocation66_spill] sm:$0xff]  ;;  %v772_v16 = vld [vmem:[%s5343_s5 + $0x120] sm:$0xff] }
 0x2a7   : > { %2115 = vmatpush1.msra.mxu1 %v4694_v46  ;;  %2079 = vmatprep.subr.mxu0 %v6251_v49  ;;  %v6256_v46 = vld [vmem:[#allocation70_spill] sm:$0xff] }
 0x2a8   : > { %2116 = vmatprep.subr.mxu1 %v4698_v51  ;;  %2080 = vmatpush2.msra.mxu0 %v6252_v34  ;;  %v6257_v51 = vld [vmem:[#allocation74_spill] sm:$0xff] }
 0x2a9   : > { %2117 = vmatpush1.msra.mxu1 %v4702_v53  ;;  %2081 = vmatprep.subr.mxu0 %v6253_v38  ;;  %v6258_v53 = vld [vmem:[#allocation78_spill] sm:$0xff] }
 0x2aa   : > { %2118 = vmatprep.subr.mxu1 %v4706_v1  ;;  %2082 = vmatpush2.msra.mxu0 %v6254_v6  ;;  %v6259_v1 = vld [vmem:[#allocation82_spill] sm:$0xff] }
 0x2ab   : > { %2119 = vmatpush1.msra.mxu1 %v4710_v9  ;;  %2083 = vmatprep.subr.mxu0 %v6255_v14  ;;  %v6260_v9 = vld [vmem:[#allocation86_spill] sm:$0xff] }
 0x2ac   : > { %2120 = vmatprep.subr.mxu1 %v4714_v17  ;;  %2084 = vmatpush2.msra.mxu0 %v6256_v46  ;;  %v6261_v17 = vld [vmem:[#allocation88_spill] sm:$0xff]  ;;  %v755_v7 = vld [vmem:[%s5343_s5 + $0x98] sm:$0xff]  ;;  %v754_v34 = vld [vmem:[%s5343_s5 + $0x90] sm:$0xff] }
 0x2ad   : > { %2121 = vmatpush1.msra.mxu1 %v4718_v56  ;;  %2085 = vmatprep.subr.mxu0 %v6257_v51  ;;  %v6262_v56 = vld [vmem:[#allocation92_spill] sm:$0xff]  ;;  %v739_v20 = vld [vmem:[%s5343_s5 + $0x18] sm:$0xff]  ;;  %v738_v6 = vld [vmem:[%s5343_s5 + $0x10] sm:$0xff] }
 0x2ae   : > { %2122 = vmatprep.subr.mxu1 %v4722_v59  ;;  %2086 = vmatpush2.msra.mxu0 %v6258_v53  ;;  %v1954_v59 = vrot.slane %v4629_v41, 2  ;;  %v766_v41 = vld [vmem:[%s5343_s5 + $0xf0] sm:$0xff]  ;;  %v787_v49 = vld [vmem:[%s5343_s5 + $0x198] sm:$0xff]  ;;  %v753_v46 = vld [vmem:[%s5343_s5 + $0x88] sm:$0xff] }
 0x2af   : > { %2123 = vmatpush1.msra.mxu1 %v4726_v29  ;;  %2087 = vmatprep.subr.mxu0 %v6259_v1  ;;  %v767_v29 = vld [vmem:[%s5343_s5 + $0xf8] sm:$0xff]  ;;  %v786_v14 = vld [vmem:[%s5343_s5 + $0x190] sm:$0xff]  ;;  %v737_v53 = vld [vmem:[%s5343_s5 + $0x8] sm:$0xff] }
 0x2b0   : > { %2124 = vmatprep.subr.mxu1 %v4730_v27  ;;  %2088 = vmatpush2.msra.mxu0 %v6260_v9  ;;  %v751_v27 = vld [vmem:[%s5343_s5 + $0x78] sm:$0xff]  ;;  %v770_v51 = vld [vmem:[%s5343_s5 + $0x110] sm:$0xff]  ;;  %v785_v1 = vld [vmem:[%s5343_s5 + $0x188] sm:$0xff] }
 0x2b1   : > { %2125 = vmatpush1.msra.mxu1 %v4734_v28  ;;  %2089 = vmatprep.subr.mxu0 %v6261_v17  ;;  %v783_v28 = vld [vmem:[%s5343_s5 + $0x178] sm:$0xff]  ;;  %v752_v9 = vld [vmem:[%s5343_s5 + $0x80] sm:$0xff]  ;;  %v769_v17 = vld [vmem:[%s5343_s5 + $0x108] sm:$0xff] }
 0x2b2   : > { %2126 = vmatprep.subr.mxu1 %v4738_v50  ;;  %2090 = vmatpush2.msra.mxu0 %v6262_v56  ;;  %v750_v50 = vld [vmem:[%s5343_s5 + $0x70] sm:$0xff]  ;;  %v771_v38 = vld [vmem:[%s5343_s5 + $0x118] sm:$0xff]  ;;  %v736_v56 = vld [vmem:[%s5343_s5] sm:$0xff] }
 0x2b3   : > { %2127 = vmatpush1.msra.mxu1 %v4742_v36  ;;  %2092 = vmatmul.mubr.f32.vlgmr.msra.gmra.mxu0 %v1737_v10  ;;  %v799_v10 = vld [vmem:[%s5343_s5 + $0x1f8] sm:$0xff]  ;;  %v798_v36 = vld [vmem:[%s5343_s5 + $0x1f0] sm:$0xff] }
 0x2b4   : > { %2128 = vmatprep.subr.mxu1 %v4746_v47  ;;  %2162 = vmatprep.mubr.f32.mxu1 %v6162_v15  ;;  %v765_v47 = vld [vmem:[%s5343_s5 + $0xe8] sm:$0xff] }
 0x2b5   : > { %2129 = vmatpush1.msra.mxu1 %v4750_v43  ;;  %2647 = vmatprep.subr.mxu0 %v767_v29  ;;  %v782_v43 = vld [vmem:[%s5343_s5 + $0x170] sm:$0xff]  ;;  %v768_v29 = vld [vmem:[%s5343_s5 + $0x100] sm:$0xff] }
 0x2b6   : > { %2163 = vmatmul.mubr.f32.vlgmr.msra.gmra.mxu1 %v1954_v59  ;;  %2682 = vmatprep.subr.mxu1 %v799_v10  ;;  %v784_v59 = vld [vmem:[%s5343_s5 + $0x180] sm:$0xff] }
 0x2b7   : > { %2648 = vmatpush3.msra.mxu0 %v751_v27  ;;  %2683 = vmatpush3.msra.mxu1 %v783_v28 }
 0x2b8   : > { %2649 = vmatprep.subr.mxu0 %v766_v41  ;;  %2684 = vmatprep.subr.mxu1 %v798_v36 }
 0x2b9   : > { %2650 = vmatpush3.msra.mxu0 %v750_v50  ;;  %2685 = vmatpush3.msra.mxu1 %v782_v43 }
 0x2ba   : > { %2651 = vmatprep.subr.mxu0 %v765_v47  ;;  %2686 = vmatprep.subr.mxu1 %v797_v5 }
 0x2bb   : > { %2652 = vmatpush3.msra.mxu0 %v749_v48  ;;  %2687 = vmatpush3.msra.mxu1 %v781_v30 }
 0x2bc   : > { %2653 = vmatprep.subr.mxu0 %v764_v60  ;;  %2688 = vmatprep.subr.mxu1 %v796_v55 }
 0x2bd   : > { %2654 = vmatpush3.msra.mxu0 %v748_v18  ;;  %2689 = vmatpush3.msra.mxu1 %v780_v13 }
 0x2be   : > { %2655 = vmatprep.subr.mxu0 %v763_v58  ;;  %2690 = vmatprep.subr.mxu1 %v795_v21 }
 0x2bf   : > { %2656 = vmatpush3.msra.mxu0 %v747_v40  ;;  %2691 = vmatpush3.msra.mxu1 %v779_v24 }
 0x2c0   : > { %2657 = vmatprep.subr.mxu0 %v762_v3  ;;  %2692 = vmatprep.subr.mxu1 %v794_v11 }
 0x2c1   : > { %2658 = vmatpush3.msra.mxu0 %v746_v62  ;;  %2693 = vmatpush3.msra.mxu1 %v778_v19  ;;  %v2642_v19 = vld [vmem:[%s5342_s4] ss:$0 sm:$0xff] }
 0x2c2   : > { %2659 = vmatprep.subr.mxu0 %v761_v52  ;;  %2694 = vmatprep.subr.mxu1 %v793_v61 }
 0x2c3   : > { %2660 = vmatpush3.msra.mxu0 %v745_v57  ;;  %2695 = vmatpush3.msra.mxu1 %v777_v63 }
 0x2c4   : > { %2661 = vmatprep.subr.mxu0 %v760_v23  ;;  %2696 = vmatprep.subr.mxu1 %v792_v31  ;;  %v815_v31 = vld [vmem:[%s5343_s5 + $0x278] sm:$0xff] }
 0x2c5   : > { %2662 = vmatpush3.msra.mxu0 %v744_v25  ;;  %2697 = vmatpush3.msra.mxu1 %v776_v37  ;;  %v814_v25 = vld [vmem:[%s5343_s5 + $0x270] sm:$0xff]  ;;  %v813_v37 = vld [vmem:[%s5343_s5 + $0x268] sm:$0xff] }
 0x2c6   : > { %2663 = vmatprep.subr.mxu0 %v759_v39  ;;  %2698 = vmatprep.subr.mxu1 %v791_v4  ;;  %v812_v39 = vld [vmem:[%s5343_s5 + $0x260] sm:$0xff]  ;;  %v810_v4 = vld [vmem:[%s5343_s5 + $0x250] sm:$0xff] }
 0x2c7   : > { %2664 = vmatpush3.msra.mxu0 %v743_v0  ;;  %2699 = vmatpush3.msra.mxu1 %v775_v8  ;;  %v811_v0 = vld [vmem:[%s5343_s5 + $0x258] sm:$0xff]  ;;  %v808_v8 = vld [vmem:[%s5343_s5 + $0x240] sm:$0xff] }
 0x2c8   : > { %2665 = vmatprep.subr.mxu0 %v758_v33  ;;  %2700 = vmatprep.subr.mxu1 %v790_v32  ;;  %v809_v33 = vld [vmem:[%s5343_s5 + $0x248] sm:$0xff]  ;;  %v806_v32 = vld [vmem:[%s5343_s5 + $0x230] sm:$0xff] }
 0x2c9   : > { %2666 = vmatpush3.msra.mxu0 %v742_v12  ;;  %2701 = vmatpush3.msra.mxu1 %v774_v26  ;;  %v807_v12 = vld [vmem:[%s5343_s5 + $0x238] sm:$0xff]  ;;  %v804_v26 = vld [vmem:[%s5343_s5 + $0x220] sm:$0xff] }
 0x2ca   : > { %2667 = vmatprep.subr.mxu0 %v757_v2  ;;  %2702 = vmatprep.subr.mxu1 %v789_v42  ;;  %v805_v2 = vld [vmem:[%s5343_s5 + $0x228] sm:$0xff]  ;;  %v802_v42 = vld [vmem:[%s5343_s5 + $0x210] sm:$0xff] }
 0x2cb   : > { %2668 = vmatpush3.msra.mxu0 %v741_v22  ;;  %2703 = vmatpush3.msra.mxu1 %v773_v35  ;;  %v803_v22 = vld [vmem:[%s5343_s5 + $0x218] sm:$0xff]  ;;  %v800_v35 = vld [vmem:[%s5343_s5 + $0x200] sm:$0xff] }
 0x2cc   : > { %2669 = vmatprep.subr.mxu0 %v756_v44  ;;  %2704 = vmatprep.subr.mxu1 %v788_v54  ;;  %v801_v44 = vld [vmem:[%s5343_s5 + $0x208] sm:$0xff]  ;;  %v831_v54 = vld [vmem:[%s5345_s7 + $0x78] sm:$0xff] }
 0x2cd   : > { %2670 = vmatpush3.msra.mxu0 %v740_v45  ;;  %2705 = vmatpush3.msra.mxu1 %v772_v16  ;;  %v829_v16 = vld [vmem:[%s5345_s7 + $0x68] sm:$0xff] }
 0x2ce   : > { %2671 = vmatprep.subr.mxu0 %v755_v7  ;;  %2706 = vmatprep.subr.mxu1 %v787_v49  ;;  %v830_v7 = vld [vmem:[%s5345_s7 + $0x70] sm:$0xff]  ;;  %v827_v49 = vld [vmem:[%s5345_s7 + $0x58] sm:$0xff] }
 0x2cf   : > { %2672 = vmatpush3.msra.mxu0 %v739_v20  ;;  %2707 = vmatpush3.msra.mxu1 %v771_v38  ;;  %v828_v20 = vld [vmem:[%s5345_s7 + $0x60] sm:$0xff]  ;;  %v825_v38 = vld [vmem:[%s5345_s7 + $0x48] sm:$0xff] }
 0x2d0   : > { %2673 = vmatprep.subr.mxu0 %v754_v34  ;;  %2708 = vmatprep.subr.mxu1 %v786_v14  ;;  %v826_v34 = vld [vmem:[%s5345_s7 + $0x50] sm:$0xff]  ;;  %v823_v14 = vld [vmem:[%s5345_s7 + $0x38] sm:$0xff] }
 0x2d1   : > { %2674 = vmatpush3.msra.mxu0 %v738_v6  ;;  %2709 = vmatpush3.msra.mxu1 %v770_v51  ;;  %v824_v6 = vld [vmem:[%s5345_s7 + $0x40] sm:$0xff]  ;;  %v821_v51 = vld [vmem:[%s5345_s7 + $0x28] sm:$0xff] }
 0x2d2   : > { %2675 = vmatprep.subr.mxu0 %v753_v46  ;;  %2710 = vmatprep.subr.mxu1 %v785_v1  ;;  %v822_v46 = vld [vmem:[%s5345_s7 + $0x30] sm:$0xff]  ;;  %v819_v1 = vld [vmem:[%s5345_s7 + $0x18] sm:$0xff] }
 0x2d3   : > { %2676 = vmatpush3.msra.mxu0 %v737_v53  ;;  %2711 = vmatpush3.msra.mxu1 %v769_v17  ;;  %v820_v53 = vld [vmem:[%s5345_s7 + $0x20] sm:$0xff]  ;;  %v817_v17 = vld [vmem:[%s5345_s7 + $0x8] sm:$0xff] }
 0x2d4   : > { %2677 = vmatprep.subr.mxu0 %v752_v9  ;;  %2712 = vmatprep.subr.mxu1 %v784_v59  ;;  %v818_v9 = vld [vmem:[%s5345_s7 + $0x10] sm:$0xff]  ;;  %v847_v59 = vld [vmem:[%s5347_s9 + $0x78] sm:$0xff] }
 0x2d5   : > { %2678 = vmatpush3.msra.mxu0 %v736_v56  ;;  %2713 = vmatpush3.msra.mxu1 %v768_v29  ;;  %v816_v56 = vld [vmem:[%s5345_s7] sm:$0xff]  ;;  %v846_v29 = vld [vmem:[%s5347_s9 + $0x70] sm:$0xff] }
 0x2d6   : > { %2768 = vmatprep.subr.mxu0 %v6162_v15  ;;  %2803 = vmatprep.subr.mxu1 %v6162_v15 }
 0x311   : > { %v1807_v27 = vpop.f32.mrf.mxu0 }
 0x313   : > { %v1878_v10 = vpop.f32.mrf.mxu1  ;;  %v1809_v41 = vpop.f32.mrf.mxu0 }
 0x314   : > { %v1879_v13 = vadd.f32 %v1878_v10, %v1807_v27  ;;  %v845_v27 = vld [vmem:[%s5347_s9 + $0x68] sm:$0xff]  ;;  %v844_v10 = vld [vmem:[%s5347_s9 + $0x60] sm:$0xff] }
 0x315   : > { %v1880_v50 = vpop.f32.mrf.mxu1 }
 0x316   : > { %v1881_v5 = vadd.f32 %v1880_v50, %v1809_v41  ;;  %v843_v41 = vld [vmem:[%s5347_s9 + $0x58] sm:$0xff]  ;;  %v841_v50 = vld [vmem:[%s5347_s9 + $0x48] sm:$0xff] }
 0x332   : > { %v1949_v28 = vpop.f32.mrf.mxu0 }
 0x333   : > { %v1950_v40 = vadd.f32 %v1949_v28, %v1879_v13  ;;  %v842_v28 = vld [vmem:[%s5347_s9 + $0x50] sm:$0xff] }
 0x334   : > { %v1951_v47 = vpop.f32.mrf.mxu0 }
 0x335   : > { %v1952_v58 = vadd.f32 %v1951_v47, %v1881_v5  ;;  %v839_v47 = vld [vmem:[%s5347_s9 + $0x38] sm:$0xff]  ;;  %v836_v5 = vld [vmem:[%s5347_s9 + $0x20] sm:$0xff] }
 0x337   : > { %v2169_v11 = vmax.f32 %v1950_v40, %v1952_v58  ;;  %v848_v58 = vld [vmem:[%s5344_s6] sm:$0x1] }
 0x355   : > { %v2022_v36 = vpop.f32.mrf.mxu1 }
 0x357   : > { %v2024_v48 = vpop.f32.mrf.mxu1 }
 0x373   : > { %v2093_v43 = vpop.f32.mrf.mxu0 }
 0x374   : > { %v2094_v60 = vadd.f32 %v2093_v43, %v2022_v36  ;;  %v840_v36 = vld [vmem:[%s5347_s9 + $0x40] sm:$0xff]  ;;  %v838_v43 = vld [vmem:[%s5347_s9 + $0x30] sm:$0xff] }
 0x375   : > { %v2095_v30 = vpop.f32.mrf.mxu0 }
 0x376   : > { %v2096_v55 = vadd.f32 %v2095_v30, %v2024_v48  ;;  %v2164_v18 = vpop.f32.mrf.mxu1  ;;  %v837_v48 = vld [vmem:[%s5347_s9 + $0x28] sm:$0xff] }
 0x377   : > { %v2165_v24 = vadd.f32 %v2164_v18, %v2094_v60  ;;  %v835_v60 = vld [vmem:[%s5347_s9 + $0x18] sm:$0xff] }
 0x378   : > { %v2166_v21 = vpop.f32.mrf.mxu1 }
 0x379   : > { %v2167_v3 = vadd.f32 %v2166_v21, %v2096_v55 }
 0x37b   : > { %v2170_v62 = vmax.f32 %v2165_v24, %v2167_v3 }
 0x37d   : > { %v2171_v52 = vmax.f32 %v2169_v11, %v2170_v62 }
 0x37f   : > { %v2178_v61 = vadd.f32 %v2642_v19, %v2171_v52 }
 0x381   : > { %v2180_v57 = vrot.slane %v2178_v61, 1  ;;  %v2184_v63 = vrot.slane %v2178_v61, 3  ;;  %v2182_v23 = vrot.slane %v2178_v61, 2  ;;  %v2186_v45 = vrot.slane %v2178_v61, 4 }
 0x383   : > { %2252 = vmatprep.mubr.f32.mxu0 %v2180_v57  ;;  %2322 = vmatprep.mubr.f32.mxu1 %v2184_v63  ;;  %v833_v57 = vld [vmem:[%s5347_s9 + $0x8] sm:$0xff]  ;;  %v832_v63 = vld [vmem:[%s5347_s9] sm:$0xff] }
 0x384   : > { %2253 = vmatmul.mubr.f32.vlgmr.msra.gmra.mxu0 %v2178_v61  ;;  %2323 = vmatmul.mubr.f32.vlgmr.msra.gmra.mxu1 %v2182_v23  ;;  %v834_v61 = vld [vmem:[%s5347_s9 + $0x10] sm:$0xff]  ;;  %v849_v23 = vld [vmem:[%s5346_s8] sm:$0x1] }
 0x385   : > { %2769 = vmatpush3.msra.mxu0 %v815_v31  ;;  %2800 = vmatprep.mubr.msk.f32.mxu0 %vm3193_vm0, %v6162_v15 }
 0x386   : > { %2770 = vmatprep.subr.mxu0 %v6162_v15  ;;  %2835 = vmatprep.mubr.msk.f32.mxu1 %vm3193_vm0, %v6162_v15 }
 0x387   : > { %2771 = vmatpush3.msra.mxu0 %v814_v25  ;;  %2804 = vmatpush3.msra.mxu1 %v831_v54 }
 0x388   : > { %2772 = vmatprep.subr.mxu0 %v6162_v15  ;;  %2805 = vmatprep.subr.mxu1 %v6162_v15 }
 0x389   : > { %2773 = vmatpush3.msra.mxu0 %v813_v37  ;;  %2806 = vmatpush3.msra.mxu1 %v830_v7 }
 0x38a   : > { %2774 = vmatprep.subr.mxu0 %v6162_v15  ;;  %2807 = vmatprep.subr.mxu1 %v6162_v15 }
 0x38b   : > { %2775 = vmatpush3.msra.mxu0 %v812_v39  ;;  %2808 = vmatpush3.msra.mxu1 %v829_v16 }
 0x38c   : > { %2776 = vmatprep.subr.mxu0 %v6162_v15  ;;  %2809 = vmatprep.subr.mxu1 %v6162_v15 }
 0x38d   : > { %2777 = vmatpush3.msra.mxu0 %v811_v0  ;;  %2810 = vmatpush3.msra.mxu1 %v828_v20 }
 0x38e   : > { %2778 = vmatprep.subr.mxu0 %v6162_v15  ;;  %2811 = vmatprep.subr.mxu1 %v6162_v15 }
 0x38f   : > { %2779 = vmatpush3.msra.mxu0 %v810_v4  ;;  %2812 = vmatpush3.msra.mxu1 %v827_v49 }
 0x390   : > { %2780 = vmatprep.subr.mxu0 %v6162_v15  ;;  %2813 = vmatprep.subr.mxu1 %v6162_v15 }
 0x391   : > { %2781 = vmatpush3.msra.mxu0 %v809_v33  ;;  %2814 = vmatpush3.msra.mxu1 %v826_v34 }
 0x392   : > { %2782 = vmatprep.subr.mxu0 %v6162_v15  ;;  %2815 = vmatprep.subr.mxu1 %v6162_v15 }
 0x393   : > { %2783 = vmatpush3.msra.mxu0 %v808_v8  ;;  %2816 = vmatpush3.msra.mxu1 %v825_v38 }
 0x394   : > { %2784 = vmatprep.subr.mxu0 %v6162_v15  ;;  %2817 = vmatprep.subr.mxu1 %v6162_v15 }
 0x395   : > { %2785 = vmatpush3.msra.mxu0 %v807_v12  ;;  %2818 = vmatpush3.msra.mxu1 %v824_v6 }
 0x396   : > { %2786 = vmatprep.subr.mxu0 %v6162_v15  ;;  %2819 = vmatprep.subr.mxu1 %v6162_v15 }
 0x397   : > { %2787 = vmatpush3.msra.mxu0 %v806_v32  ;;  %2820 = vmatpush3.msra.mxu1 %v823_v14 }
 0x398   : > { %2788 = vmatprep.subr.mxu0 %v6162_v15  ;;  %2821 = vmatprep.subr.mxu1 %v6162_v15 }
 0x399   : > { %2789 = vmatpush3.msra.mxu0 %v805_v2  ;;  %2822 = vmatpush3.msra.mxu1 %v822_v46 }
 0x39a   : > { %2790 = vmatprep.subr.mxu0 %v6162_v15  ;;  %2823 = vmatprep.subr.mxu1 %v6162_v15 }
 0x39b   : > { %2791 = vmatpush3.msra.mxu0 %v804_v26  ;;  %2824 = vmatpush3.msra.mxu1 %v821_v51 }
 0x39c   : > { %2792 = vmatprep.subr.mxu0 %v6162_v15  ;;  %2825 = vmatprep.subr.mxu1 %v6162_v15 }
 0x39d   : > { %2793 = vmatpush3.msra.mxu0 %v803_v22  ;;  %2826 = vmatpush3.msra.mxu1 %v820_v53 }
 0x39e   : > { %2794 = vmatprep.subr.mxu0 %v6162_v15  ;;  %2827 = vmatprep.subr.mxu1 %v6162_v15 }
 0x39f   : > { %2795 = vmatpush3.msra.mxu0 %v802_v42  ;;  %2828 = vmatpush3.msra.mxu1 %v819_v1 }
 0x3a0   : > { %2796 = vmatprep.subr.mxu0 %v6162_v15  ;;  %2829 = vmatprep.subr.mxu1 %v6162_v15 }
 0x3a1   : > { %2797 = vmatpush3.msra.mxu0 %v801_v44  ;;  %2830 = vmatpush3.msra.mxu1 %v818_v9 }
 0x3a2   : > { %2798 = vmatprep.subr.mxu0 %v6162_v15  ;;  %2831 = vmatprep.subr.mxu1 %v6162_v15 }
 0x3a3   : > { %2799 = vmatpush3.msra.mxu0 %v800_v35  ;;  %2832 = vmatpush3.msra.mxu1 %v817_v17 }
 0x3a4   : > { %2801 = vmatmul.mubr.f32.vlgmr.msra.gmra.mxu0 %v2186_v45  ;;  %2838 = vmatprep.subr.mxu0 %v6162_v15 }
 0x3a5   : > { %2870 = vmatprep.mubr.msk.f32.mxu0 %vm3193_vm0, %v6162_v15  ;;  %2833 = vmatprep.subr.mxu1 %v6162_v15 }
 0x3a6   : > { %2834 = vmatpush3.msra.mxu1 %v816_v56  ;;  %2839 = vmatpush3.msra.mxu0 %v847_v59 }
 0x3a7   : > { %2840 = vmatprep.subr.mxu0 %v6162_v15 }
 0x3a8   : > { %2841 = vmatpush3.msra.mxu0 %v846_v29 }
 0x3a9   : > { %2842 = vmatprep.subr.mxu0 %v6162_v15 }
 0x3aa   : > { %2843 = vmatpush3.msra.mxu0 %v845_v27 }
 0x3ab   : > { %2844 = vmatprep.subr.mxu0 %v6162_v15 }
 0x3ac   : > { %2845 = vmatpush3.msra.mxu0 %v844_v10 }
 0x3ad   : > { %2846 = vmatprep.subr.mxu0 %v6162_v15 }
 0x3ae   : > { %2847 = vmatpush3.msra.mxu0 %v843_v41 }
 0x3af   : > { %2848 = vmatprep.subr.mxu0 %v6162_v15 }
 0x3b0   : > { %2849 = vmatpush3.msra.mxu0 %v842_v28 }
 0x3b1   : > { %2850 = vmatprep.subr.mxu0 %v6162_v15 }
 0x3b2   : > { %2851 = vmatpush3.msra.mxu0 %v841_v50 }
 0x3b3   : > { %2852 = vmatprep.subr.mxu0 %v6162_v15 }
 0x3b4   : > { %2853 = vmatpush3.msra.mxu0 %v840_v36 }
 0x3b5   : > { %2854 = vmatprep.subr.mxu0 %v6162_v15 }
 0x3b6   : > { %2855 = vmatpush3.msra.mxu0 %v839_v47 }
 0x3b7   : > { %2856 = vmatprep.subr.mxu0 %v6162_v15 }
 0x3b8   : > { %2857 = vmatpush3.msra.mxu0 %v838_v43 }
 0x3b9   : > { %2858 = vmatprep.subr.mxu0 %v6162_v15 }
 0x3ba   : > { %2859 = vmatpush3.msra.mxu0 %v837_v48 }
 0x3bb   : > { %2860 = vmatprep.subr.mxu0 %v6162_v15 }
 0x3bc   : > { %2861 = vmatpush3.msra.mxu0 %v836_v5 }
 0x3bd   : > { %2862 = vmatprep.subr.mxu0 %v6162_v15 }
 0x3be   : > { %2863 = vmatpush3.msra.mxu0 %v835_v60 }
 0x3bf   : > { %2864 = vmatprep.subr.mxu0 %v6162_v15 }
 0x3c0   : > { %2865 = vmatpush3.msra.mxu0 %v834_v61 }
 0x3c1   : > { %2866 = vmatprep.subr.mxu0 %v6162_v15 }
 0x3c2   : > { %2867 = vmatpush3.msra.mxu0 %v833_v57 }
 0x3c3   : > { %2868 = vmatprep.subr.mxu0 %v6162_v15  ;;  %v850_v15 = vld [vmem:[%s5348_s10] sm:$0x1] }
 0x3c4   : > { %2869 = vmatpush3.msra.mxu0 %v832_v63 }
 0x444   : > { %v2679_v30 = vpop.f32.mrf.mxu0  ;;  %v2714_v18 = vpop.f32.mrf.mxu1 }
 0x446   : > { %v2680_v55 = vpop.f32.mrf.mxu0  ;;  %v2715_v21 = vpop.f32.mrf.mxu1 }
 0x447   : > { %v2681_v13 = vadd.f32 %v2680_v55, %v2679_v30  ;;  %v2716_v24 = vadd.f32 %v2715_v21, %v2714_v18 }
 0x449   : > { %v2255_v40 = vadd.f32 %v2681_v13, %v848_v58 }
 0x44b   : > { %v2325_v3 = vadd.f32 %v2716_v24, %v2255_v40 }
 0x464   : > { %v2394_v11 = vpop.f32.mrf.mxu0 }
 0x465   : > { %v2395_v62 = vadd.f32 %v2394_v11, %v2325_v3 }
 0x466   : > { %v2802_v19 = vpop.f32.mrf.mxu0 }
 0x467   : > { %v2398_v52 = vmax.f32 %v2395_v62, 0.0 }
 0x469   : > { %2836 = vmatmul.mubr.f32.vlgmr.msra.gmra.mxu1 %v2398_v52 }
 0x529   : > { %v2465_v31 = vpop.f32.mrf.mxu1 }
 0x52a   : > { %v2466_v25 = vadd.f32 %v2465_v31, %v849_v23 }
 0x52b   : > { %v2837_v37 = vpop.f32.mrf.mxu1 }
 0x52c   : > { %v2469_v39 = vmax.f32 %v2466_v25, 0.0 }
 0x52e   : > { %2871 = vmatmul.mubr.f32.vlgmr.msra.gmra.mxu0 %v2469_v39 }
 0x5ee   : > { %v2536_v0 = vpop.f32.mrf.mxu0 }
 0x5ef   : > { %v2537_v4 = vadd.f32 %v2536_v0, %v850_v15 }
 0x5f0   : > { %v2872_v33 = vpop.f32.mrf.mxu0 }
 0x5f1   : > { %2540 = vst [vmem:[%s408_s16] sm:$0x1] %v2537_v4 }
 0x5f2   : > { %3131 = shalt.err (!%p3128_p3)
}
 0x5f3   : > { %s3132_s14 = scalar_lea.hbm %s5303_s13, 16  ;;  %s3136_s29 = scalar_lea.hbm %s5349_s11, 32 }
 0x5f4   : > { %p3133_p2 = scmp.ne.s32.totalorder %s5303_s13, %s3132_s14  ;;  %p3137_p7 = scmp.lt.s32.totalorder %s5303_s13, %s5349_s11 }
 0x5f5   : > { %p3138_p6 = scmp.lt.s32.totalorder %s3136_s29, %s3132_s14 }
 0x5f6   : > { %p3134_p4 = pnand %p3133_p2, %p3293_p5 }
 0x5f7   : > { %p3139_p9 = por %p3138_p6, %p3137_p7 }
 0x5f8   : > { %p3135_p13 = pneg %p3134_p4 }
 0x5fa   : > { %p3140_p10 = pnand %p3139_p9, %p3135_p13 }
 0x5fc   : > { %3143 = shalt.err (!%p3140_p10)
}
 0x5fd   : > { %2881 = dma.vmem_to_hbm [thread:$0]  (%p3293_p5), %s2555_s26, 16, %s5303_s13, %s2542_s15  }
 0x5fe PF: > { %p2898_p12 = scmp.ge.s32.totalorder %s3186_s20, 2  ;;  %s2566_s22 = sand.u32 1, %s3174_s17  }
 0x5ff   : > { %p6263_p8 = scmp.ne.s32.totalorder %s5718_s28, 0  ;;  %s2567_s21 = scalar_lea.sflag [#allocation4], %s2566_s22 }
 0x601   : > { %p2891_p11 = pnand %p2898_p12, %p6263_p8 }
 0x603   : > { %p2892_p0 = pneg %p2891_p11 }
 0x605   : > { %3169 = dma.done.wait (%p2892_p0), %s2567_s21, 16  }
 0x606   : > { %3171 = vsyncadd (%p2892_p0), %s2567_s21, 4294967280  ;;  %s6264_s30 = sld [smem:[#allocation11_spill]]  ;;  %p23_p1 = scmp.ge.s32.totalorder %s3280_s23, 4  }
 0x607   : > { %s6265_s17 = smov %s3178_s18  ;;  %s6266_s18 = smov %s3182_s19 }
 0x608   : > { %s6268_s20 = smov %s3280_s23  ;;  %25 = sbr.rel (!%p23_p1) target bundleno = 5 (0x5), region = 108 }
 0x60c   : > { %s6267_s19 = smov %s6264_s30 }
 0x60d   :  { %2571 = vsyncpa [#allocation3], 1 }
 0x60e   :  { %2573 = vsyncpa [#allocation3 + $0x1], 1 }
 0x60f   :  { %2574 = vsyncpa [#allocation6], 1 }
 0x610   :  { %2575 = vsyncpa [#allocation4], 1 }
 0x611   :  { %2577 = vsyncpa [#allocation4 + $0x1], 1 }

</bundles_post_ra>
